<compile_context>
chip_gen: v5e
topology: v5e:2x2
jax: 0.10.0
libtpu: 0.0.40
codegen_flags: <defaults>
</compile_context>

<pallas_src>
import jax
import jax.numpy as jnp
from jax.experimental import pallas as pl
from jax.experimental.pallas import tpu as pltpu

# ---------------- problem sizes (lane-dense, MXU-tile-filling) --------------
CHUNKS = 2           # GPipe micro-batches -> grid axis ("parallel": 2 TCs on v7x)
CHUNK_BATCH = 256    # rows per micro-batch: M >= 256 keeps the MXU fed
BATCH = CHUNKS * CHUNK_BATCH
D_IN = 256           # 256-wide K/N fill a full 256x256 MXU tile on v6e/v7x
D_HID = 256
D_OUT = 256


def _gpipe_mlp_kernel(x_ref,
                      w1_ref, b1_ref,
                      w2_ref, b2_ref,
                      w3_ref, b3_ref,
                      w4_ref, b4_ref,
                      o_ref):
    """One GPipe micro-batch through all 4 partitions.

    Matmul operands are bf16 (MXU), accumulation is f32, bias/ReLU epilogue is
    f32 (safe on v5e); activations are recast to bf16 only as the next layer's
    MXU operand.  Biases are (1, D) and broadcast in-kernel.
    """
    # partition 0: Linear + ReLU  (x arrives f32; cast inside the kernel)
    h = jnp.dot(x_ref[...].astype(jnp.bfloat16), w1_ref[...],
                preferred_element_type=jnp.float32) + b1_ref[...]
    h = jnp.maximum(h, 0.0)
    # partition 1: Linear + ReLU
    h = jnp.dot(h.astype(jnp.bfloat16), w2_ref[...],
                preferred_element_type=jnp.float32) + b2_ref[...]
    h = jnp.maximum(h, 0.0)
    # partition 2: Linear + ReLU
    h = jnp.dot(h.astype(jnp.bfloat16), w3_ref[...],
                preferred_element_type=jnp.float32) + b3_ref[...]
    h = jnp.maximum(h, 0.0)
    # partition 3: Linear (no activation)
    h = jnp.dot(h.astype(jnp.bfloat16), w4_ref[...],
                preferred_element_type=jnp.float32) + b4_ref[...]

    o_ref[...] = h.astype(o_ref.dtype)


def gpipe_forward(x, params):
    """GPipe.forward: scatter into CHUNKS micro-batches (grid), run each
    through the partition chain, gather via the chunk-indexed output BlockSpec.

    params: list of (W: (in, out) bf16, b: (1, out) f32) for the 4 layers.
    Weights are stored (in, out) so the kernel computes y = x @ W + b,
    equivalent to torch.nn.Linear's x @ W_t.T + b with W = W_t.T.
    """
    (w1, b1), (w2, b2), (w3, b3), (w4, b4) = params

    def resident(shape):
        # Constant block index along the chunk axis -> single DMA, stays
        # VMEM-resident across chunks (weights & biases).
        return pl.BlockSpec(shape, lambda c: (0, 0))

    x_spec = pl.BlockSpec((CHUNK_BATCH, D_IN), lambda c: (c, 0))
    o_spec = pl.BlockSpec((CHUNK_BATCH, D_OUT), lambda c: (c, 0))

    in_specs = [x_spec]
    for w, b in params:
        in_specs.append(resident(w.shape))
        in_specs.append(resident(b.shape))

    # Advisory cost estimate: matmul flops + operand/result HBM bytes.
    flops = 2 * BATCH * (D_IN * D_HID + D_HID * D_HID
                         + D_HID * D_HID + D_HID * D_OUT)
    bytes_accessed = (x.size * x.dtype.itemsize
                      + sum(w.size * w.dtype.itemsize + b.size * b.dtype.itemsize
                            for w, b in params)
                      + BATCH * D_OUT * 4)

    return pl.pallas_call(
        _gpipe_mlp_kernel,
        out_shape=jax.ShapeDtypeStruct((BATCH, D_OUT), jnp.float32),
        grid_spec=pltpu.PrefetchScalarGridSpec(
            num_scalar_prefetch=0,
            grid=(CHUNKS,),
            in_specs=in_specs,
            out_specs=o_spec,
        ),
        compiler_params=pltpu.CompilerParams(
            dimension_semantics=("parallel",)),
        cost_estimate=pl.CostEstimate(flops=flops, transcendentals=0,
                                      bytes_accessed=bytes_accessed),
    )(x, w1, b1, w2, b2, w3, b3, w4, b4)


def _init_params(key):
    """Deterministic Kaiming-ish init for the 4 Linear layers.

    Weights are bf16 (MXU operand dtype); biases stay f32 at their natural
    (1, out) shape and are broadcast inside the kernel.
    """
    dims = [(D_IN, D_HID), (D_HID, D_HID), (D_HID, D_HID), (D_HID, D_OUT)]
    params = []
    for din, dout in dims:
        kw, kb, key = jax.random.split(key, 3)
        scale = 1.0 / jnp.sqrt(jnp.float32(din))
        w = jax.random.uniform(kw, (din, dout), jnp.float32, -scale, scale)
        b = jax.random.uniform(kb, (1, dout), jnp.float32, -scale, scale)
        params.append((w.astype(jnp.bfloat16), b))
    return params


def _reference(x, params):
    """Pure-JAX reference with the exact same dtype discipline as the kernel."""
    h = x.astype(jnp.bfloat16)
    for i, (w, b) in enumerate(params):
        acc = jnp.dot(h, w, preferred_element_type=jnp.float32) + b
        if i < len(params) - 1:
            acc = jnp.maximum(acc, 0.0)
            h = acc.astype(jnp.bfloat16)
        else:
            h = acc
    return h


if __name__ == "__main__":
    key = jax.random.PRNGKey(0)
    kx, kp = jax.random.split(key)
    x = jax.random.normal(kx, (BATCH, D_IN), jnp.float32)
    params = _init_params(kp)

    out = gpipe_forward(x, params)
    out = jax.block_until_ready(out)

    ref = _reference(x, params)
    assert out.shape == (BATCH, D_OUT)
    assert out.dtype == jnp.float32
    assert jnp.allclose(out, ref, atol=1e-3, rtol=1e-3), "mismatch vs reference"

    print("KERNEL_OK")
</pallas_src>

<mosaic_0001>
module attributes {stable_mosaic.version = 11 : i64} {
  func.func @_gpipe_mlp_kernel(%arg0: i32, %arg1: memref<256x256xf32, #tpu.memory_space<vmem>>, %arg2: memref<256x256xbf16, #tpu.memory_space<vmem>>, %arg3: memref<1x256xf32, #tpu.memory_space<vmem>>, %arg4: memref<256x256xbf16, #tpu.memory_space<vmem>>, %arg5: memref<1x256xf32, #tpu.memory_space<vmem>>, %arg6: memref<256x256xbf16, #tpu.memory_space<vmem>>, %arg7: memref<1x256xf32, #tpu.memory_space<vmem>>, %arg8: memref<256x256xbf16, #tpu.memory_space<vmem>>, %arg9: memref<1x256xf32, #tpu.memory_space<vmem>>, %arg10: memref<256x256xf32, #tpu.memory_space<vmem>>) attributes {dimension_semantics = [#tpu.dimension_semantics<parallel>], iteration_bounds = array<i64: 2>, scalar_prefetch = 0 : i64, scratch_operands = 0 : i64, tpu.core_type = #tpu.core_type<tc>, window_params = [{transform_indices = @transform_0, window_bounds = array<i64: 256, 256>}, {pipeline_mode = #tpu.pipeline_mode<synchronous>, transform_indices = @transform_1, window_bounds = array<i64: 256, 256>}, {pipeline_mode = #tpu.pipeline_mode<synchronous>, transform_indices = @transform_2, window_bounds = array<i64: 1, 256>}, {pipeline_mode = #tpu.pipeline_mode<synchronous>, transform_indices = @transform_3, window_bounds = array<i64: 256, 256>}, {pipeline_mode = #tpu.pipeline_mode<synchronous>, transform_indices = @transform_4, window_bounds = array<i64: 1, 256>}, {pipeline_mode = #tpu.pipeline_mode<synchronous>, transform_indices = @transform_5, window_bounds = array<i64: 256, 256>}, {pipeline_mode = #tpu.pipeline_mode<synchronous>, transform_indices = @transform_6, window_bounds = array<i64: 1, 256>}, {pipeline_mode = #tpu.pipeline_mode<synchronous>, transform_indices = @transform_7, window_bounds = array<i64: 256, 256>}, {pipeline_mode = #tpu.pipeline_mode<synchronous>, transform_indices = @transform_8, window_bounds = array<i64: 1, 256>}, {transform_indices = @transform_9, window_bounds = array<i64: 256, 256>}]} {
    %c0 = arith.constant 0 : index
    %c0_0 = arith.constant 0 : index
    %0 = vector.load %arg1[%c0, %c0_0] : memref<256x256xf32, #tpu.memory_space<vmem>>, vector<256x256xf32>
    %1 = arith.truncf %0 : vector<256x256xf32> to vector<256x256xbf16>
    %c0_1 = arith.constant 0 : index
    %c0_2 = arith.constant 0 : index
    %2 = vector.load %arg2[%c0_1, %c0_2] : memref<256x256xbf16, #tpu.memory_space<vmem>>, vector<256x256xbf16>
    %cst = arith.constant dense<0.000000e+00> : vector<256x256xf32>
    %3 = tpu.matmul %1, %2, %cst {dimension_numbers = #tpu.dot_dimension_numbers<[1], [0], [0], [1], [0, 0, 1, 1], [], []>} : vector<256x256xbf16>, vector<256x256xbf16>, vector<256x256xf32> -> vector<256x256xf32>
    %c0_3 = arith.constant 0 : index
    %c0_4 = arith.constant 0 : index
    %4 = vector.load %arg3[%c0_3, %c0_4] : memref<1x256xf32, #tpu.memory_space<vmem>>, vector<1x256xf32>
    %5 = vector.broadcast %4 : vector<1x256xf32> to vector<256x256xf32>
    %6 = arith.addf %3, %5 : vector<256x256xf32>
    %cst_5 = arith.constant 0.000000e+00 : f32
    %7 = vector.broadcast %cst_5 : f32 to vector<256x256xf32>
    %8 = arith.maximumf %6, %7 : vector<256x256xf32>
    %9 = arith.truncf %8 : vector<256x256xf32> to vector<256x256xbf16>
    %c0_6 = arith.constant 0 : index
    %c0_7 = arith.constant 0 : index
    %10 = vector.load %arg4[%c0_6, %c0_7] : memref<256x256xbf16, #tpu.memory_space<vmem>>, vector<256x256xbf16>
    %cst_8 = arith.constant dense<0.000000e+00> : vector<256x256xf32>
    %11 = tpu.matmul %9, %10, %cst_8 {dimension_numbers = #tpu.dot_dimension_numbers<[1], [0], [0], [1], [0, 0, 1, 1], [], []>} : vector<256x256xbf16>, vector<256x256xbf16>, vector<256x256xf32> -> vector<256x256xf32>
    %c0_9 = arith.constant 0 : index
    %c0_10 = arith.constant 0 : index
    %12 = vector.load %arg5[%c0_9, %c0_10] : memref<1x256xf32, #tpu.memory_space<vmem>>, vector<1x256xf32>
    %13 = vector.broadcast %12 : vector<1x256xf32> to vector<256x256xf32>
    %14 = arith.addf %11, %13 : vector<256x256xf32>
    %cst_11 = arith.constant 0.000000e+00 : f32
    %15 = vector.broadcast %cst_11 : f32 to vector<256x256xf32>
    %16 = arith.maximumf %14, %15 : vector<256x256xf32>
    %17 = arith.truncf %16 : vector<256x256xf32> to vector<256x256xbf16>
    %c0_12 = arith.constant 0 : index
    %c0_13 = arith.constant 0 : index
    %18 = vector.load %arg6[%c0_12, %c0_13] : memref<256x256xbf16, #tpu.memory_space<vmem>>, vector<256x256xbf16>
    %cst_14 = arith.constant dense<0.000000e+00> : vector<256x256xf32>
    %19 = tpu.matmul %17, %18, %cst_14 {dimension_numbers = #tpu.dot_dimension_numbers<[1], [0], [0], [1], [0, 0, 1, 1], [], []>} : vector<256x256xbf16>, vector<256x256xbf16>, vector<256x256xf32> -> vector<256x256xf32>
    %c0_15 = arith.constant 0 : index
    %c0_16 = arith.constant 0 : index
    %20 = vector.load %arg7[%c0_15, %c0_16] : memref<1x256xf32, #tpu.memory_space<vmem>>, vector<1x256xf32>
    %21 = vector.broadcast %20 : vector<1x256xf32> to vector<256x256xf32>
    %22 = arith.addf %19, %21 : vector<256x256xf32>
    %cst_17 = arith.constant 0.000000e+00 : f32
    %23 = vector.broadcast %cst_17 : f32 to vector<256x256xf32>
    %24 = arith.maximumf %22, %23 : vector<256x256xf32>
    %25 = arith.truncf %24 : vector<256x256xf32> to vector<256x256xbf16>
    %c0_18 = arith.constant 0 : index
    %c0_19 = arith.constant 0 : index
    %26 = vector.load %arg8[%c0_18, %c0_19] : memref<256x256xbf16, #tpu.memory_space<vmem>>, vector<256x256xbf16>
    %cst_20 = arith.constant dense<0.000000e+00> : vector<256x256xf32>
    %27 = tpu.matmul %25, %26, %cst_20 {dimension_numbers = #tpu.dot_dimension_numbers<[1], [0], [0], [1], [0, 0, 1, 1], [], []>} : vector<256x256xbf16>, vector<256x256xbf16>, vector<256x256xf32> -> vector<256x256xf32>
    %c0_21 = arith.constant 0 : index
    %c0_22 = arith.constant 0 : index
    %28 = vector.load %arg9[%c0_21, %c0_22] : memref<1x256xf32, #tpu.memory_space<vmem>>, vector<1x256xf32>
    %29 = vector.broadcast %28 : vector<1x256xf32> to vector<256x256xf32>
    %30 = arith.addf %27, %29 : vector<256x256xf32>
    %c0_23 = arith.constant 0 : index
    %c0_24 = arith.constant 0 : index
    %31 = vector.load %arg10[%c0_23, %c0_24] : memref<256x256xf32, #tpu.memory_space<vmem>>, vector<256x256xf32>
    tpu.vector_store %arg10[%c0_23, %c0_24], %30 {strides = array<i32>} : memref<256x256xf32, #tpu.memory_space<vmem>>, vector<256x256xf32>,
    return
  }
  func.func @transform_0(%arg0: i32) -> (i32, i32) {
    %c0_i32 = arith.constant 0 : i32
    %c0_i32_0 = arith.constant 0 : i32
    return %arg0, %c0_i32 : i32, i32
  }
  func.func @transform_1(%arg0: i32) -> (i32, i32) {
    %c0_i32 = arith.constant 0 : i32
    %c0_i32_0 = arith.constant 0 : i32
    %c0_i32_1 = arith.constant 0 : i32
    return %c0_i32, %c0_i32_0 : i32, i32
  }
  func.func @transform_2(%arg0: i32) -> (i32, i32) {
    %c0_i32 = arith.constant 0 : i32
    %c0_i32_0 = arith.constant 0 : i32
    %c0_i32_1 = arith.constant 0 : i32
    return %c0_i32, %c0_i32_0 : i32, i32
  }
  func.func @transform_3(%arg0: i32) -> (i32, i32) {
    %c0_i32 = arith.constant 0 : i32
    %c0_i32_0 = arith.constant 0 : i32
    %c0_i32_1 = arith.constant 0 : i32
    return %c0_i32, %c0_i32_0 : i32, i32
  }
  func.func @transform_4(%arg0: i32) -> (i32, i32) {
    %c0_i32 = arith.constant 0 : i32
    %c0_i32_0 = arith.constant 0 : i32
    %c0_i32_1 = arith.constant 0 : i32
    return %c0_i32, %c0_i32_0 : i32, i32
  }
  func.func @transform_5(%arg0: i32) -> (i32, i32) {
    %c0_i32 = arith.constant 0 : i32
    %c0_i32_0 = arith.constant 0 : i32
    %c0_i32_1 = arith.constant 0 : i32
    return %c0_i32, %c0_i32_0 : i32, i32
  }
  func.func @transform_6(%arg0: i32) -> (i32, i32) {
    %c0_i32 = arith.constant 0 : i32
    %c0_i32_0 = arith.constant 0 : i32
    %c0_i32_1 = arith.constant 0 : i32
    return %c0_i32, %c0_i32_0 : i32, i32
  }
  func.func @transform_7(%arg0: i32) -> (i32, i32) {
    %c0_i32 = arith.constant 0 : i32
    %c0_i32_0 = arith.constant 0 : i32
    %c0_i32_1 = arith.constant 0 : i32
    return %c0_i32, %c0_i32_0 : i32, i32
  }
  func.func @transform_8(%arg0: i32) -> (i32, i32) {
    %c0_i32 = arith.constant 0 : i32
    %c0_i32_0 = arith.constant 0 : i32
    %c0_i32_1 = arith.constant 0 : i32
    return %c0_i32, %c0_i32_0 : i32, i32
  }
  func.func @transform_9(%arg0: i32) -> (i32, i32) {
    %c0_i32 = arith.constant 0 : i32
    %c0_i32_0 = arith.constant 0 : i32
    return %arg0, %c0_i32 : i32, i32
  }
}

</mosaic_0001>

<bundles_post_ra>
// kernel: tpu_custom_call.1
= control target key start
LH: loop header
LB: loop body
LE: loop exit
PB: predicated region body
PF: predicated region fallthrough
CT: control target
= control target key end

     0   :  { %s5311_s0 = inlined_call_operand.hbm [shape: f32[512,256], index: 0, kind: input, shape index: {}]   ;;  %s5312_s1 = inlined_call_operand.hbm [shape: bf16[256,256], index: 1, kind: input, shape index: {}]   ;;  %s5313_s2 = inlined_call_operand.hbm [shape: f32[1,256], index: 2, kind: input, shape index: {}]   ;;  %s5314_s3 = inlined_call_operand.hbm [shape: bf16[256,256], index: 3, kind: input, shape index: {}]   ;;  %s5315_s4 = inlined_call_operand.vmem [shape: f32[1,256], index: 4, kind: input, shape index: {}]   ;;  %s5316_s5 = inlined_call_operand.hbm [shape: bf16[256,256], index: 5, kind: input, shape index: {}]   ;;  %s5317_s6 = inlined_call_operand.vmem [shape: f32[1,256], index: 6, kind: input, shape index: {}]   ;;  %s5318_s7 = inlined_call_operand.hbm [shape: bf16[256,256], index: 7, kind: input, shape index: {}]   ;;  %s5319_s8 = inlined_call_operand.vmem [shape: f32[1,256], index: 8, kind: input, shape index: {}]   ;;  %s5320_s9 = inlined_call_operand.hbm [shape: f32[512,256], index: 9, kind: output, shape index: {}]  }
   0x1   :  { %5321 = sst [smem:[#allocation19_spill]] %s5312_s1 }
   0x2   :  { %5322 = sst [smem:[#allocation20_spill]] %s5313_s2 }
   0x3   :  { %5323 = sst [smem:[#allocation21_spill]] %s5314_s3 }
   0x4   :  { %5324 = sst [smem:[#allocation22_spill]] %s5316_s5 }
   0x5   :  { %14 = vsyncpa [#allocation3], 0 }
   0x6   :  { %16 = vsyncpa [#allocation3 + $0x1], 0 }
   0x7   :  { %17 = vsyncpa [#allocation6], 0 }
   0x8   :  { %18 = vsyncpa [#allocation9], 0 }
   0x9   :  { %19 = vsyncpa [#allocation12], 0 }
   0xa   :  { %20 = vsyncpa [#allocation4], 0 }
   0xb   :  { %22 = vsyncpa [#allocation4 + $0x1], 0  ;;  %s4333_s30 = smov 0   ;;  %s4335_s10 = smov 0  }
   0xc   :  { %s4337_s11 = smov 0   ;;  %s4339_s12 = smov 0  }
   0xd LB: > { %s5325_s1 = sld [smem:[#allocation19_spill]]  ;;  %s4357_s16 = sadd.s32 4294967295, %s4270_s12   ;;  %s4270_s12 = sphi %s4339_s12, %s5340_s12   ;;  %s4266_s11 = sphi %s4337_s11, %s5339_s11   ;;  %s4262_s10 = sphi %s4335_s10, %s5338_s10   ;;  %s4258_s30 = sphi %s4333_s30, %s5337_s30  }
   0xe   : > { %p3240_p0 = scmp.ge.s32.totalorder %s4270_s12, 1  ;;  %p49_p1 = scmp.eq.s32.totalorder %s4357_s16, 0 }
   0xf   : > { %p253_p2 = scmp.lt.s32.totalorder %s4270_s12, 3  ;;  %s4272_s18 = smov [#allocation5]  }
  0x10   : > { %s266_s19 = sshll.u32 %s4272_s18, 4  ;;  %s5327_s3 = sld [smem:[#allocation21_spill]]  ;;  %s267_s19 = int_to_ptr.vmem [resolvable:$true] %s266_s19 }
  0x11   : > { %p4362_p3 = pnand %p3240_p0, %p253_p2  ;;  %s5329_s2 = sld [smem:[#allocation20_spill]] }
  0x12   : > { %s4273_s27 = smov [#allocation8]   ;;  %s4274_s29 = smov 128  }
  0x13   : > { %s264_s15 = sshll.u32 %s5325_s1, 4  ;;  %p3933_p4 = pneg %p4362_p3  ;;  %s265_s15 = int_to_ptr.hbm [resolvable:$true] %s264_s15 }
  0x14   : > { %s292_s28 = sshll.u32 %s4273_s27, 4  ;;  %s4275_s13 = smov 8   ;;  %s293_s28 = int_to_ptr.vmem [resolvable:$true] %s292_s28 }
  0x15   : > { %p4374_p6 = pnand %p3933_p4, %p49_p1  ;;  %s5330_s5 = sld [smem:[#allocation22_spill]] }
  0x16   : > { %s290_s22 = sshll.u32 %s5327_s3, 4  ;;  %s4276_s21 = smov [#allocation7]   ;;  %s291_s22 = int_to_ptr.hbm [resolvable:$true] %s290_s22 }
  0x17   : > { %s279_s26 = sshll.u32 %s5329_s2, 4  ;;  %s281_s24 = sshll.u32 %s4276_s21, 4  ;;  %s280_s26 = int_to_ptr.hbm [resolvable:$true] %s279_s26  ;;  %s282_s24 = int_to_ptr.vmem [resolvable:$true] %s281_s24 }
  0x18   : > { %3936 = dma.hbm_to_vmem [thread:$0]  (!%p4374_p6), %s265_s15, 4096, %s267_s19, [#allocation6], %s4274_s29, %s4274_s29, %s4275_s13  }
  0x19   : > { %3942 = dma.hbm_to_vmem [thread:$0]  (!%p4374_p6), %s291_s22, 4096, %s293_s28, [#allocation9], %s4274_s29, %s4274_s29, %s4275_s13  }
  0x1a   : > { %3939 = dma.hbm_to_vmem [thread:$0]  (!%p4374_p6), %s280_s26, 32, %s282_s24, [#allocation6]  }
  0x1b   : > { %s307_s20 = sshll.u32 %s5330_s5, 4  ;;  %s4277_s15 = smov [#allocation10]   ;;  %s308_s20 = int_to_ptr.hbm [resolvable:$true] %s307_s20 }
  0x1c   : > { %s309_s19 = sshll.u32 %s4277_s15, 4  ;;  %s324_s27 = sshll.u32 %s5318_s7, 4  ;;  %s310_s19 = int_to_ptr.vmem [resolvable:$true] %s309_s19  ;;  %s325_s27 = int_to_ptr.hbm [resolvable:$true] %s324_s27 }
  0x1d   : > { %3945 = dma.hbm_to_vmem [thread:$0]  (!%p4374_p6), %s308_s20, 4096, %s310_s19, [#allocation9], %s4274_s29, %s4274_s29, %s4275_s13  }
  0x1e   : > { %s4278_s28 = smov [#allocation11]   ;;  %s3239_s26 = sadd.s32 4294967294, %s4270_s12  }
  0x1f   : > { %s326_s14 = sshll.u32 %s4278_s28, 4  ;;  %s4399_s18 = sadd.s32 1, %s4270_s12   ;;  %s327_s14 = int_to_ptr.vmem [resolvable:$true] %s326_s14 }
  0x20   : > { %3948 = dma.hbm_to_vmem [thread:$0]  (!%p4374_p6), %s325_s27, 4096, %s327_s14, [#allocation12], %s4274_s29, %s4274_s29, %s4275_s13  }
  0x21   : > { %s35_s21 = sadd.s32 1, %s4266_s11  ;;  %s32_s24 = ssub.s32 %s4270_s12, %s4399_s18 }
  0x22   : > { %p42_p7 = scmp.ne.s32.totalorder %s4266_s11, %s4262_s10  ;;  %p33_p8 = scmp.eq.s32.totalorder %s32_s24, 0 }
  0x23   : > { %p43_p9 = scmp.eq.s32.totalorder %s4270_s12, 0  ;;  %p48_p10 = scmp.ne.s32.totalorder %s4262_s10, %s4258_s30 }
  0x24   : > { %p240_p11 = scmp.eq.s32.totalorder %s4357_s16, 1  ;;  %p246_p2 = scmp.eq.s32.totalorder %s3239_s26, 1 }
  0x25   : > { %s4411_s20 = scalar_select %p33_p8, %s4266_s11, %s35_s21  }
  0x26   : > { %p4413_p12 = por %p43_p9, %p42_p7  ;;  %p4419_p13 = por %p49_p1, %p48_p10 }
  0x27   : > { %p4423_p0 = por %p240_p11, %p42_p7  ;;  %p3962_p4 = scmp.lt.s32.totalorder %s4270_s12, 2 }
  0x28   : > { %s343_s13 = sand.u32 1, %s4266_s11   ;;  %p4429_p6 = por %p246_p2, %p48_p10 }
  0x29   : > { %s3247_s22 = sshll.u32 %s343_s13, 9  ;;  %s3778_s25 = sshll.u32 %s4270_s12, 9 }
  0x2a   : > { %s353_s14 = scalar_lea.hbm %s5311_s0, %s3778_s25  ;;  %s347_s24 = scalar_lea.vmem [#allocation2], %s3247_s22 }
  0x2b   : > { %s354_s21 = sshll.u32 %s353_s14, 4  ;;  %s356_s1 = sshll.u32 %s347_s24, 4  ;;  %s355_s21 = int_to_ptr.hbm [resolvable:$true] %s354_s21  ;;  %s357_s1 = int_to_ptr.vmem [resolvable:$true] %s356_s1 }
  0x2c   : > { %p4439_p7 = pnand %p3962_p4, %p4413_p12  ;;  %s344_s2 = scalar_lea.sflag [#allocation3], %s343_s13 }
  0x2d   : > { %s4162_s3 = sshra.s32 %s355_s21, 4  ;;  %s4169_s27 = scalar_lea.hbm %s5311_s0, 1024  ;;  %s4163_s3 = int_to_ptr.hbm [resolvable:$true] %s4162_s3 }
  0x2e   : > { %s4164_s5 = scalar_lea.hbm %s4163_s3, 512  ;;  %p4166_p9 = pneg %p4439_p7 }
  0x2f   : > { %p4165_p8 = scmp.ne.s32.totalorder %s4163_s3, %s4164_s5  ;;  %p4170_p12 = scmp.lt.s32.totalorder %s4163_s3, %s5311_s0 }
  0x30   : > { %p4171_p2 = scmp.lt.s32.totalorder %s4169_s27, %s4164_s5 }
  0x31   : > { %p4167_p10 = pnand %p4166_p9, %p4165_p8 }
  0x32   : > { %p4172_p4 = por %p4171_p2, %p4170_p12 }
  0x33   : > { %p4168_p11 = pneg %p4167_p10 }
  0x35   : > { %p4173_p5 = pnand %p4172_p4, %p4168_p11 }
  0x37   : > { %4176 = shalt.err (!%p4173_p5)
}
  0x38   : > { %s4279_s13 = smov 256   ;;  %s4280_s14 = smov 16  }
  0x39   : > { %3952 = dma.hbm_to_vmem [thread:$0]  (!%p4439_p7), %s355_s21, 8192, %s357_s1, %s344_s2, %s4279_s13, %s4279_s13, %s4280_s14  }
  0x3a   : > { %368 = sbr.rel (%p4362_p3) target bundleno = 1262 (0x4ee), region = 56  ;;  %s4456_s24 = sand.u32 (!%p4362_p3), 1, %s4262_s10  }
  0x3b   : > { %s3252_s3 = sshll.u32 (!%p4362_p3), %s4456_s24, 9  ;;  %s371_s5 = scalar_lea.sflag (!%p4362_p3), [#allocation3], %s4456_s24 }
  0x3c   : > { %s4462_s25 = scalar_lea.vmem (!%p4362_p3), [#allocation2], %s3252_s3 }
  0x3f   : > { %4237 = dma.done.wait (%p4419_p13), %s371_s5, 8192  }
  0x40   : > { %4239 = vsyncadd (%p4419_p13), %s371_s5, 4294959104 }
  0x41   : > { %4241 = dma.done.wait (%p49_p1), [#allocation6], 4128  }
  0x42   : > { %4243 = vsyncadd (%p49_p1), [#allocation6], 4294963168 }
  0x43   : > { %4245 = dma.done.wait (%p49_p1), [#allocation9], 8192  }
  0x44   : > { %4247 = vsyncadd (%p49_p1), [#allocation9], 4294959104 }
  0x45   : > { %4249 = dma.done.wait (%p49_p1), [#allocation12], 4096  }
  0x46   : > { %4251 = vsyncadd (%p49_p1), [#allocation12], 4294963200  ;;  %v3317_v0 = vld [vmem:[#allocation5 + $0x70] sm:$0xf]  ;;  %v3794_v1 = vld [vmem:[#allocation5 + $0x74] sm:$0xf0] }
  0x47   : > { %v3381_v2 = vld [vmem:[#allocation5 + $0xf0] sm:$0xf]  ;;  %v3318_v3 = vor.u32 %v3794_v1, %v3317_v0  ;;  %v3810_v4 = vld [vmem:[#allocation5 + $0xf4] sm:$0xf0]  ;;  %v3793_v5 = vld [vmem:[#allocation5 + $0x74] sm:$0xf] }
  0x48   : > { %v3319_v6 = vld [vmem:[#allocation5 + $0x78] sm:$0xf0]  ;;  %v3382_v7 = vor.u32 %v3810_v4, %v3381_v2  ;;  %v3809_v9 = vld [vmem:[#allocation5 + $0xf4] sm:$0xf]  ;;  %v3309_v11 = vld [vmem:[#allocation5 + $0x60] sm:$0xf] }
  0x49   : > { %v3322_v8 = vor.u32 %v3793_v5, %v3319_v6  ;;  %v3383_v10 = vld [vmem:[#allocation5 + $0xf8] sm:$0xf0]  ;;  %731 = vmatpush.bf16.msra.mxu0 %v3318_v3  ;;  %v3792_v13 = vld [vmem:[#allocation5 + $0x64] sm:$0xf0]  ;;  %v3373_v14 = vld [vmem:[#allocation5 + $0xe0] sm:$0xf] }
  0x4a   : > { %v3386_v12 = vor.u32 %v3809_v9, %v3383_v10  ;;  %v3808_v15 = vld [vmem:[#allocation5 + $0xe4] sm:$0xf0]  ;;  %820 = vmatpush.bf16.msra.mxu1 %v3382_v7  ;;  %v3310_v16 = vor.u32 %v3792_v13, %v3309_v11  ;;  %v3791_v18 = vld [vmem:[#allocation5 + $0x64] sm:$0xf]  ;;  %v3311_v19 = vld [vmem:[#allocation5 + $0x68] sm:$0xf0] }
  0x4b   : > { %909 = vmatpush.bf16.msra.mxu2 %v3322_v8  ;;  %v3374_v17 = vor.u32 %v3808_v15, %v3373_v14  ;;  %v3807_v20 = vld [vmem:[#allocation5 + $0xe4] sm:$0xf]  ;;  %v3314_v21 = vor.u32 %v3791_v18, %v3311_v19  ;;  %v3375_v22 = vld [vmem:[#allocation5 + $0xe8] sm:$0xf0]  ;;  %v3301_v23 = vld [vmem:[#allocation5 + $0x50] sm:$0xf] }
  0x4c   : > { %998 = vmatpush.bf16.msra.mxu3 %v3386_v12  ;;  %v3790_v24 = vld [vmem:[#allocation5 + $0x54] sm:$0xf0]  ;;  %v3378_v25 = vor.u32 %v3807_v20, %v3375_v22  ;;  %v3365_v26 = vld [vmem:[#allocation5 + $0xd0] sm:$0xf]  ;;  %v3789_v28 = vld [vmem:[#allocation5 + $0x54] sm:$0xf] }
  0x4d   : > { %v3806_v27 = vld [vmem:[#allocation5 + $0xd4] sm:$0xf0]  ;;  %732 = vmatpush.bf16.msra.mxu0 %v3310_v16  ;;  %v3302_v29 = vor.u32 %v3790_v24, %v3301_v23  ;;  %v3303_v30 = vld [vmem:[#allocation5 + $0x58] sm:$0xf0]  ;;  %v3805_v31 = vld [vmem:[#allocation5 + $0xd4] sm:$0xf] }
  0x4e   : > { %v3367_v32 = vld [vmem:[#allocation5 + $0xd8] sm:$0xf0]  ;;  %821 = vmatpush.bf16.msra.mxu1 %v3374_v17  ;;  %v3366_v33 = vor.u32 %v3806_v27, %v3365_v26  ;;  %v3306_v34 = vor.u32 %v3789_v28, %v3303_v30  ;;  %v3293_v35 = vld [vmem:[#allocation5 + $0x40] sm:$0xf]  ;;  %v3788_v36 = vld [vmem:[#allocation5 + $0x44] sm:$0xf0] }
  0x4f   : > { %910 = vmatpush.bf16.msra.mxu2 %v3314_v21  ;;  %v3357_v37 = vld [vmem:[#allocation5 + $0xc0] sm:$0xf]  ;;  %v3370_v38 = vor.u32 %v3805_v31, %v3367_v32  ;;  %v3804_v39 = vld [vmem:[#allocation5 + $0xc4] sm:$0xf0]  ;;  %v3787_v40 = vld [vmem:[#allocation5 + $0x44] sm:$0xf]  ;;  %v3294_v44 = vor.u32 %v3788_v36, %v3293_v35 }
  0x50   : > { %999 = vmatpush.bf16.msra.mxu3 %v3378_v25  ;;  %v3295_v41 = vld [vmem:[#allocation5 + $0x48] sm:$0xf0]  ;;  %v3803_v42 = vld [vmem:[#allocation5 + $0xc4] sm:$0xf]  ;;  %v3358_v45 = vor.u32 %v3804_v39, %v3357_v37  ;;  %v3285_v47 = vld [vmem:[#allocation5 + $0x30] sm:$0xf] }
  0x51   : > { %v3359_v43 = vld [vmem:[#allocation5 + $0xc8] sm:$0xf0]  ;;  %733 = vmatpush.bf16.msra.mxu0 %v3302_v29  ;;  %v3298_v46 = vor.u32 %v3787_v40, %v3295_v41  ;;  %v3786_v48 = vld [vmem:[#allocation5 + $0x34] sm:$0xf0]  ;;  %v3349_v49 = vld [vmem:[#allocation5 + $0xb0] sm:$0xf] }
  0x52   : > { %822 = vmatpush.bf16.msra.mxu1 %v3366_v33  ;;  %v3362_v50 = vor.u32 %v3803_v42, %v3359_v43  ;;  %v3802_v51 = vld [vmem:[#allocation5 + $0xb4] sm:$0xf0]  ;;  %v3785_v52 = vld [vmem:[#allocation5 + $0x34] sm:$0xf]  ;;  %v3287_v53 = vld [vmem:[#allocation5 + $0x38] sm:$0xf0]  ;;  %v3286_v56 = vor.u32 %v3786_v48, %v3285_v47 }
  0x53   : > { %911 = vmatpush.bf16.msra.mxu2 %v3306_v34  ;;  %v3801_v54 = vld [vmem:[#allocation5 + $0xb4] sm:$0xf]  ;;  %v3351_v55 = vld [vmem:[#allocation5 + $0xb8] sm:$0xf0]  ;;  %v3350_v57 = vor.u32 %v3802_v51, %v3349_v49  ;;  %v3290_v58 = vor.u32 %v3785_v52, %v3287_v53  ;;  %v3277_v59 = vld [vmem:[#allocation5 + $0x20] sm:$0xf] }
  0x54   : > { %1000 = vmatpush.bf16.msra.mxu3 %v3370_v38  ;;  %v3784_v60 = vld [vmem:[#allocation5 + $0x24] sm:$0xf0]  ;;  %v3341_v61 = vld [vmem:[#allocation5 + $0xa0] sm:$0xf]  ;;  %v3354_v62 = vor.u32 %v3801_v54, %v3351_v55  ;;  %v3783_v0 = vld [vmem:[#allocation5 + $0x24] sm:$0xf] }
  0x55   : > { %734 = vmatpush.bf16.msra.mxu0 %v3294_v44  ;;  %v3800_v63 = vld [vmem:[#allocation5 + $0xa4] sm:$0xf0]  ;;  %v3279_v1 = vld [vmem:[#allocation5 + $0x28] sm:$0xf0]  ;;  %v3799_v2 = vld [vmem:[#allocation5 + $0xa4] sm:$0xf]  ;;  %v3278_v4 = vor.u32 %v3784_v60, %v3277_v59 }
  0x56   : > { %823 = vmatpush.bf16.msra.mxu1 %v3358_v45  ;;  %v3343_v3 = vld [vmem:[#allocation5 + $0xa8] sm:$0xf0]  ;;  %v3342_v5 = vor.u32 %v3800_v63, %v3341_v61  ;;  %v3282_v6 = vor.u32 %v3783_v0, %v3279_v1  ;;  %v3269_v7 = vld [vmem:[#allocation5 + $0x10] sm:$0xf]  ;;  %v3782_v8 = vld [vmem:[#allocation5 + $0x14] sm:$0xf0] }
  0x57   : > { %912 = vmatpush.bf16.msra.mxu2 %v3298_v46  ;;  %v3333_v9 = vld [vmem:[#allocation5 + $0x90] sm:$0xf]  ;;  %v3346_v10 = vor.u32 %v3799_v2, %v3343_v3  ;;  %v3798_v11 = vld [vmem:[#allocation5 + $0x94] sm:$0xf0]  ;;  %v3781_v12 = vld [vmem:[#allocation5 + $0x14] sm:$0xf]  ;;  %v3270_v16 = vor.u32 %v3782_v8, %v3269_v7 }
  0x58   : > { %1001 = vmatpush.bf16.msra.mxu3 %v3362_v50  ;;  %v3271_v13 = vld [vmem:[#allocation5 + $0x18] sm:$0xf0]  ;;  %v3797_v14 = vld [vmem:[#allocation5 + $0x94] sm:$0xf]  ;;  %v3261_v17 = vld [vmem:[#allocation5] sm:$0xf]  ;;  %v3334_v19 = vor.u32 %v3798_v11, %v3333_v9 }
  0x59   : > { %735 = vmatpush.bf16.msra.mxu0 %v3286_v56  ;;  %v3335_v15 = vld [vmem:[#allocation5 + $0x98] sm:$0xf0]  ;;  %v3780_v18 = vld [vmem:[#allocation5 + $0x4] sm:$0xf0]  ;;  %v3274_v20 = vor.u32 %v3781_v12, %v3271_v13  ;;  %v3325_v21 = vld [vmem:[#allocation5 + $0x80] sm:$0xf] }
  0x5a   : > { %824 = vmatpush.bf16.msra.mxu1 %v3350_v57  ;;  %v3796_v22 = vld [vmem:[#allocation5 + $0x84] sm:$0xf0]  ;;  %v3779_v23 = vld [vmem:[#allocation5 + $0x4] sm:$0xf]  ;;  %v3338_v24 = vor.u32 %v3797_v14, %v3335_v15  ;;  %v3263_v25 = vld [vmem:[#allocation5 + $0x8] sm:$0xf0]  ;;  %v3262_v31 = vor.u32 %v3780_v18, %v3261_v17 }
  0x5b   : > { %913 = vmatpush.bf16.msra.mxu2 %v3290_v58  ;;  %v3795_v26 = vld [vmem:[#allocation5 + $0x84] sm:$0xf]  ;;  %v3327_v27 = vld [vmem:[#allocation5 + $0x88] sm:$0xf0]  ;;  %v3825_v29 = vld [vmem:[#allocation8 + $0x74] sm:$0xf]  ;;  %v3326_v35 = vor.u32 %v3796_v22, %v3325_v21  ;;  %v3266_v36 = vor.u32 %v3779_v23, %v3263_v25 }
  0x5c   : > { %1002 = vmatpush.bf16.msra.mxu3 %v3354_v62  ;;  %v437_v28 = vld [vmem:[%s4462_s25] sm:$0xff]  ;;  %v439_v32 = vld [vmem:[%s4462_s25 + $0x10] sm:$0xff]  ;;  %v438_v37 = vld [vmem:[%s4462_s25 + $0x8] sm:$0xff]  ;;  %v3330_v39 = vor.u32 %v3795_v26, %v3327_v27  ;;  %s5117_s22 = scalar_lea.vmem [#allocation13], %s3252_s3  ;;  %s3908_s27 = sshll.u32 %s4357_s16, 9 }
  0x5d   : > { %736 = vmatpush.bf16.msra.mxu0 %v3278_v4  ;;  %v3447_v30 = vld [vmem:[#allocation8 + $0x78] sm:$0xf0]  ;;  %v3841_v33 = vld [vmem:[#allocation8 + $0xf4] sm:$0xf]  ;;  %v3445_v41 = vld [vmem:[#allocation8 + $0x70] sm:$0xf]  ;;  %v501_v43 = vpack.c.bf16 %v439_v32, %v437_v28  ;;  %s3114_s13 = scalar_lea.hbm %s5320_s9, %s3908_s27 }
  0x5e   : > { %825 = vmatpush.bf16.msra.mxu1 %v3342_v5  ;;  %v3511_v34 = vld [vmem:[#allocation8 + $0xf8] sm:$0xf0]  ;;  %v3450_v40 = vor.u32 %v3825_v29, %v3447_v30  ;;  %v3826_v42 = vld [vmem:[#allocation8 + $0x74] sm:$0xf0]  ;;  %v3509_v45 = vld [vmem:[#allocation8 + $0xf0] sm:$0xf] }
  0x5f   : > { %914 = vmatpush.bf16.msra.mxu2 %v3282_v6  ;;  %v440_v38 = vld [vmem:[%s4462_s25 + $0x18] sm:$0xff]  ;;  %v3514_v44 = vor.u32 %v3841_v33, %v3511_v34  ;;  %v3446_v48 = vor.u32 %v3826_v42, %v3445_v41  ;;  %v3823_v50 = vld [vmem:[#allocation8 + $0x64] sm:$0xf]  ;;  %v3439_v51 = vld [vmem:[#allocation8 + $0x68] sm:$0xf0]  ;;  %s3115_s14 = sshll.u32 %s5117_s22, 4  ;;  %s3116_s14 = int_to_ptr.vmem [resolvable:$true] %s3115_s14 }
  0x60   : > { %1003 = vmatpush.bf16.msra.mxu3 %v3346_v10  ;;  %v3842_v46 = vld [vmem:[#allocation8 + $0xf4] sm:$0xf0]  ;;  %v502_v47 = vpack.c.bf16 %v440_v38, %v438_v37  ;;  %v3839_v52 = vld [vmem:[#allocation8 + $0xe4] sm:$0xf]  ;;  %v3442_v53 = vor.u32 %v3823_v50, %v3439_v51  ;;  %v3503_v54 = vld [vmem:[#allocation8 + $0xe8] sm:$0xf0] }
  0x61   : > { %737 = vmatpush.bf16.msra.mxu0 %v3270_v16  ;;  %v3510_v49 = vor.u32 %v3842_v46, %v3509_v45  ;;  %v3437_v55 = vld [vmem:[#allocation8 + $0x60] sm:$0xf]  ;;  %v3824_v56 = vld [vmem:[#allocation8 + $0x64] sm:$0xf0]  ;;  %v3506_v57 = vor.u32 %v3839_v52, %v3503_v54  ;;  %v443_v63 = vld [vmem:[%s4462_s25 + $0x30] sm:$0xff]  ;;  %s3117_s3 = sshll.u32 %s3114_s13, 4  ;;  %s3118_s3 = int_to_ptr.hbm [resolvable:$true] %s3117_s3 }
  0x62   : > { %826 = vmatpush.bf16.msra.mxu1 %v3334_v19  ;;  %v3438_v58 = vor.u32 %v3824_v56, %v3437_v55  ;;  %v3501_v59 = vld [vmem:[#allocation8 + $0xe0] sm:$0xf]  ;;  %v3840_v60 = vld [vmem:[#allocation8 + $0xe4] sm:$0xf0]  ;;  %v444_v1 = vld [vmem:[%s4462_s25 + $0x38] sm:$0xff]  ;;  %s3102_s16 = scalar_lea.sflag [#allocation4], %s4456_s24 }
  0x63   : > { %915 = vmatpush.bf16.msra.mxu2 %v3274_v20  ;;  %v3502_v61 = vor.u32 %v3840_v60, %v3501_v59  ;;  %v441_v62 = vld [vmem:[%s4462_s25 + $0x20] sm:$0xff]  ;;  %v442_v0 = vld [vmem:[%s4462_s25 + $0x28] sm:$0xff]  ;;  %v447_v5 = vld [vmem:[%s4462_s25 + $0x50] sm:$0xff]  ;;  %s4206_s5 = sshra.s32 %s3118_s3, 4  ;;  %s4212_s17 = scalar_lea.hbm %s5320_s9, 1024  ;;  %s4207_s5 = int_to_ptr.hbm [resolvable:$true] %s4206_s5 }
  0x64   : > { %1004 = vmatpush.bf16.msra.mxu3 %v3338_v24  ;;  %v503_v2 = vpack.c.bf16 %v443_v63, %v441_v62  ;;  %v504_v3 = vpack.c.bf16 %v444_v1, %v442_v0  ;;  %v445_v4 = vld [vmem:[%s4462_s25 + $0x40] sm:$0xff]  ;;  %v446_v6 = vld [vmem:[%s4462_s25 + $0x48] sm:$0xff]  ;;  %v448_v7 = vld [vmem:[%s4462_s25 + $0x58] sm:$0xff]  ;;  %p4213_p13 = scmp.lt.s32.totalorder %s4207_s5, %s5320_s9 }
  0x65   : > { %738 = vmatpush.bf16.msra.mxu0 %v3262_v31  ;;  %v505_v8 = vpack.c.bf16 %v447_v5, %v445_v4  ;;  %v506_v9 = vpack.c.bf16 %v448_v7, %v446_v6  ;;  %v3821_v10 = vld [vmem:[#allocation8 + $0x54] sm:$0xf]  ;;  %v3431_v11 = vld [vmem:[#allocation8 + $0x58] sm:$0xf0]  ;;  %v3429_v15 = vld [vmem:[#allocation8 + $0x50] sm:$0xf] }
  0x66   : > { %827 = vmatpush.bf16.msra.mxu1 %v3326_v35  ;;  %v3837_v12 = vld [vmem:[#allocation8 + $0xd4] sm:$0xf]  ;;  %v3434_v13 = vor.u32 %v3821_v10, %v3431_v11  ;;  %v3495_v14 = vld [vmem:[#allocation8 + $0xd8] sm:$0xf0]  ;;  %v3822_v16 = vld [vmem:[#allocation8 + $0x54] sm:$0xf0] }
  0x67   : > { %916 = vmatpush.bf16.msra.mxu2 %v3266_v36  ;;  %v3498_v17 = vor.u32 %v3837_v12, %v3495_v14  ;;  %v3430_v18 = vor.u32 %v3822_v16, %v3429_v15  ;;  %v3493_v19 = vld [vmem:[#allocation8 + $0xd0] sm:$0xf]  ;;  %v3838_v20 = vld [vmem:[#allocation8 + $0xd4] sm:$0xf0]  ;;  %v449_v22 = vld [vmem:[%s4462_s25 + $0x60] sm:$0xff] }
  0x68   : > { %1005 = vmatpush.bf16.msra.mxu3 %v3330_v39  ;;  %739 = vmatmul.bf16.vlgmr.msra.gmra.mxu0 %v501_v43  ;;  %v3494_v21 = vor.u32 %v3838_v20, %v3493_v19  ;;  %v451_v23 = vld [vmem:[%s4462_s25 + $0x70] sm:$0xff]  ;;  %v450_v24 = vld [vmem:[%s4462_s25 + $0x68] sm:$0xff]  ;;  %v452_v25 = vld [vmem:[%s4462_s25 + $0x78] sm:$0xff] }
  0x69   : > { %828 = vmatmul.bf16.vlgmr.msra.gmra.mxu1 %v502_v47  ;;  %1381 = vmatpush.bf16.msrb.mxu0 %v3446_v48  ;;  %v507_v26 = vpack.c.bf16 %v451_v23, %v449_v22  ;;  %v508_v27 = vpack.c.bf16 %v452_v25, %v450_v24  ;;  %v453_v28 = vld [vmem:[%s4462_s25 + $0x80] sm:$0xff]  ;;  %v455_v29 = vld [vmem:[%s4462_s25 + $0x90] sm:$0xff]  ;;  %v454_v30 = vld [vmem:[%s4462_s25 + $0x88] sm:$0xff] }
  0x6a   : > { %917 = vmatmul.bf16.vlgmr.msra.gmra.mxu2 %v501_v43  ;;  %1470 = vmatpush.bf16.msrb.mxu1 %v3510_v49  ;;  %v456_v31 = vld [vmem:[%s4462_s25 + $0x98] sm:$0xff]  ;;  %v509_v32 = vpack.c.bf16 %v455_v29, %v453_v28  ;;  %v3819_v34 = vld [vmem:[#allocation8 + $0x44] sm:$0xf]  ;;  %v3423_v35 = vld [vmem:[#allocation8 + $0x48] sm:$0xf0] }
  0x6b   : > { %1559 = vmatpush.bf16.msrb.mxu2 %v3450_v40  ;;  %1006 = vmatmul.bf16.vlgmr.msra.gmra.mxu3 %v502_v47  ;;  %v510_v33 = vpack.c.bf16 %v456_v31, %v454_v30  ;;  %v3835_v36 = vld [vmem:[#allocation8 + $0xc4] sm:$0xf]  ;;  %v3426_v37 = vor.u32 %v3819_v34, %v3423_v35  ;;  %v3487_v38 = vld [vmem:[#allocation8 + $0xc8] sm:$0xf0]  ;;  %v3421_v39 = vld [vmem:[#allocation8 + $0x40] sm:$0xf] }
  0x6c   : > { %1648 = vmatpush.bf16.msrb.mxu3 %v3514_v44  ;;  %v3820_v40 = vld [vmem:[#allocation8 + $0x44] sm:$0xf0]  ;;  %v3490_v41 = vor.u32 %v3835_v36, %v3487_v38  ;;  %v3485_v43 = vld [vmem:[#allocation8 + $0xc0] sm:$0xf]  ;;  %v459_v47 = vld [vmem:[%s4462_s25 + $0xb0] sm:$0xff] }
  0x6d   : > { %1382 = vmatpush.bf16.msrb.mxu0 %v3438_v58  ;;  %v3422_v42 = vor.u32 %v3820_v40, %v3421_v39  ;;  %v3836_v44 = vld [vmem:[#allocation8 + $0xc4] sm:$0xf0]  ;;  %v457_v46 = vld [vmem:[%s4462_s25 + $0xa0] sm:$0xff]  ;;  %v460_v49 = vld [vmem:[%s4462_s25 + $0xb8] sm:$0xff] }
  0x6e   : > { %1471 = vmatpush.bf16.msrb.mxu1 %v3502_v61  ;;  %v3486_v45 = vor.u32 %v3836_v44, %v3485_v43  ;;  %v458_v48 = vld [vmem:[%s4462_s25 + $0xa8] sm:$0xff]  ;;  %v511_v50 = vpack.c.bf16 %v459_v47, %v457_v46  ;;  %v461_v52 = vld [vmem:[%s4462_s25 + $0xc0] sm:$0xff]  ;;  %v464_v55 = vld [vmem:[%s4462_s25 + $0xd8] sm:$0xff] }
  0x6f   : > { %1560 = vmatpush.bf16.msrb.mxu2 %v3442_v53  ;;  %v512_v51 = vpack.c.bf16 %v460_v49, %v458_v48  ;;  %v463_v53 = vld [vmem:[%s4462_s25 + $0xd0] sm:$0xff]  ;;  %v462_v54 = vld [vmem:[%s4462_s25 + $0xc8] sm:$0xff]  ;;  %v3415_v59 = vld [vmem:[#allocation8 + $0x38] sm:$0xf0] }
  0x70   : > { %1649 = vmatpush.bf16.msrb.mxu3 %v3506_v57  ;;  %v513_v56 = vpack.c.bf16 %v463_v53, %v461_v52  ;;  %v514_v57 = vpack.c.bf16 %v464_v55, %v462_v54  ;;  %v3817_v58 = vld [vmem:[#allocation8 + $0x34] sm:$0xf]  ;;  %v3479_v62 = vld [vmem:[#allocation8 + $0xb8] sm:$0xf0]  ;;  %v3413_v5 = vld [vmem:[#allocation8 + $0x30] sm:$0xf] }
  0x71   : > { %1383 = vmatpush.bf16.msrb.mxu0 %v3430_v18  ;;  %v3833_v60 = vld [vmem:[#allocation8 + $0xb4] sm:$0xf]  ;;  %v3418_v61 = vor.u32 %v3817_v58, %v3415_v59  ;;  %v465_v0 = vld [vmem:[%s4462_s25 + $0xe0] sm:$0xff]  ;;  %v3818_v6 = vld [vmem:[#allocation8 + $0x34] sm:$0xf0] }
  0x72   : > { %1472 = vmatpush.bf16.msrb.mxu1 %v3494_v21  ;;  %v3482_v63 = vor.u32 %v3833_v60, %v3479_v62  ;;  %v467_v1 = vld [vmem:[%s4462_s25 + $0xf0] sm:$0xff]  ;;  %v3834_v10 = vld [vmem:[#allocation8 + $0xb4] sm:$0xf0]  ;;  %v565_v12 = vld [vmem:[#allocation7] sm:$0x3] }
  0x73   : > { %1561 = vmatpush.bf16.msrb.mxu2 %v3434_v13  ;;  %v515_v4 = vpack.c.bf16 %v467_v1, %v465_v0  ;;  %v3477_v7 = vld [vmem:[#allocation8 + $0xb0] sm:$0xf]  ;;  %v469_v13 = vld [vmem:[%s4462_s25 + $0x100] sm:$0xff]  ;;  %v4514_v15 = vperm.slane %v565_v12, 0  ;;  %v470_v16 = vld [vmem:[%s4462_s25 + $0x108] sm:$0xff]  ;;  %v4519_v24 = vperm.slane %v565_v12, 1 }
  0x74   : > { %1650 = vmatpush.bf16.msrb.mxu3 %v3498_v17  ;;  %v3478_v11 = vor.u32 %v3834_v10, %v3477_v7  ;;  %v471_v14 = vld [vmem:[%s4462_s25 + $0x110] sm:$0xff]  ;;  %v472_v17 = vld [vmem:[%s4462_s25 + $0x118] sm:$0xff]  ;;  %v3815_v25 = vld [vmem:[#allocation8 + $0x24] sm:$0xf] }
  0x75   : > { %1384 = vmatpush.bf16.msrb.mxu0 %v3422_v42  ;;  %v517_v18 = vpack.c.bf16 %v471_v14, %v469_v13  ;;  %v518_v20 = vpack.c.bf16 %v472_v17, %v470_v16  ;;  %v3831_v28 = vld [vmem:[#allocation8 + $0xa4] sm:$0xf]  ;;  %v3471_v29 = vld [vmem:[#allocation8 + $0xa8] sm:$0xf0]  ;;  %v476_v42 = vld [vmem:[%s4462_s25 + $0x138] sm:$0xff] }
  0x76   : > { %1473 = vmatpush.bf16.msrb.mxu1 %v3486_v45  ;;  %v3474_v31 = vor.u32 %v3831_v28, %v3471_v29  ;;  %v473_v39 = vld [vmem:[%s4462_s25 + $0x120] sm:$0xff]  ;;  %v475_v40 = vld [vmem:[%s4462_s25 + $0x130] sm:$0xff]  ;;  %v3816_v46 = vld [vmem:[#allocation8 + $0x24] sm:$0xf0] }
  0x77   : > { %1562 = vmatpush.bf16.msrb.mxu2 %v3426_v37  ;;  %v3405_v45 = vld [vmem:[#allocation8 + $0x20] sm:$0xf]  ;;  %v3832_v49 = vld [vmem:[#allocation8 + $0xa4] sm:$0xf0]  ;;  %v519_v52 = vpack.c.bf16 %v475_v40, %v473_v39  ;;  %v479_v10 = vld [vmem:[%s4462_s25 + $0x150] sm:$0xff] }
  0x78   : > { %744 = vmatmul.bf16.gmra.mxu0 %v503_v2  ;;  %1651 = vmatpush.bf16.msrb.mxu3 %v3490_v41  ;;  %v474_v41 = vld [vmem:[%s4462_s25 + $0x128] sm:$0xff]  ;;  %v3406_v47 = vor.u32 %v3816_v46, %v3405_v45  ;;  %v3469_v48 = vld [vmem:[#allocation8 + $0xa0] sm:$0xf]  ;;  %v480_v14 = vld [vmem:[%s4462_s25 + $0x158] sm:$0xff] }
  0x79   : > { %833 = vmatmul.bf16.gmra.mxu1 %v504_v3  ;;  %v3470_v53 = vor.u32 %v3832_v49, %v3469_v48  ;;  %v478_v13 = vld [vmem:[%s4462_s25 + $0x148] sm:$0xff]  ;;  %v481_v45 = vld [vmem:[%s4462_s25 + $0x160] sm:$0xff]  ;;  %v483_v46 = vld [vmem:[%s4462_s25 + $0x170] sm:$0xff] }
  0x7a   : > { %922 = vmatmul.bf16.gmra.mxu2 %v503_v2  ;;  %v466_v2 = vld [vmem:[%s4462_s25 + $0xe8] sm:$0xff]  ;;  %1474 = vmatpush.bf16.msrb.mxu1 %v3478_v11  ;;  %v484_v48 = vld [vmem:[%s4462_s25 + $0x178] sm:$0xff] }
  0x7b   : > { %1011 = vmatmul.bf16.gmra.mxu3 %v504_v3  ;;  %1563 = vmatpush.bf16.msrb.mxu2 %v3418_v61  ;;  %v468_v3 = vld [vmem:[%s4462_s25 + $0xf8] sm:$0xff] }
  0x7c   : > { %1652 = vmatpush.bf16.msrb.mxu3 %v3482_v63 }
  0x7e   : > { %1475 = vmatpush.bf16.msrb.mxu1 %v3470_v53  ;;  %v3814_v53 = vld [vmem:[#allocation8 + $0x14] sm:$0xf0] }
  0x80   : > { %1653 = vmatpush.bf16.msrb.mxu3 %v3474_v31  ;;  %v3399_v31 = vld [vmem:[#allocation8 + $0x18] sm:$0xf0] }
  0x88   : > { %749 = vmatmul.bf16.gmra.mxu0 %v505_v8 }
  0x89   : > { %838 = vmatmul.bf16.gmra.mxu1 %v506_v9 }
  0x8a   : > { %927 = vmatmul.bf16.gmra.mxu2 %v505_v8  ;;  %v516_v8 = vpack.c.bf16 %v468_v3, %v466_v2 }
  0x8b   : > { %1016 = vmatmul.bf16.gmra.mxu3 %v506_v9  ;;  %v3414_v9 = vor.u32 %v3818_v6, %v3413_v5 }
  0x8d   : > { %1385 = vmatpush.bf16.msrb.mxu0 %v3414_v9  ;;  %v477_v9 = vld [vmem:[%s4462_s25 + $0x140] sm:$0xff] }
  0x8e   : > { %v521_v17 = vpack.c.bf16 %v479_v10, %v477_v9 }
  0x91   : > { %1386 = vmatpush.bf16.msrb.mxu0 %v3406_v47  ;;  %v482_v47 = vld [vmem:[%s4462_s25 + $0x168] sm:$0xff] }
  0x98   : > { %754 = vmatmul.bf16.gmra.mxu0 %v507_v26 }
  0x99   : > { %843 = vmatmul.bf16.gmra.mxu1 %v508_v27 }
  0x9a   : > { %932 = vmatmul.bf16.gmra.mxu2 %v507_v26  ;;  %v3407_v26 = vld [vmem:[#allocation8 + $0x28] sm:$0xf0] }
  0x9b   : > { %1021 = vmatmul.bf16.gmra.mxu3 %v508_v27  ;;  %v3410_v27 = vor.u32 %v3815_v25, %v3407_v26 }
  0x9d   : > { %1564 = vmatpush.bf16.msrb.mxu2 %v3410_v27 }
  0xa8   : > { %759 = vmatmul.bf16.gmra.mxu0 %v509_v32 }
  0xa9   : > { %848 = vmatmul.bf16.gmra.mxu1 %v510_v33 }
  0xaa   : > { %937 = vmatmul.bf16.gmra.mxu2 %v509_v32 }
  0xab   : > { %1026 = vmatmul.bf16.gmra.mxu3 %v510_v33 }
  0xb8   : > { %764 = vmatmul.bf16.gmra.mxu0 %v511_v50 }
  0xb9   : > { %853 = vmatmul.bf16.gmra.mxu1 %v512_v51 }
  0xba   : > { %942 = vmatmul.bf16.gmra.mxu2 %v511_v50 }
  0xbb   : > { %1031 = vmatmul.bf16.gmra.mxu3 %v512_v51 }
  0xc8   : > { %769 = vmatmul.bf16.gmra.mxu0 %v513_v56 }
  0xc9   : > { %858 = vmatmul.bf16.gmra.mxu1 %v514_v57 }
  0xca   : > { %947 = vmatmul.bf16.gmra.mxu2 %v513_v56 }
  0xcb   : > { %1036 = vmatmul.bf16.gmra.mxu3 %v514_v57  ;;  %v520_v57 = vpack.c.bf16 %v476_v42, %v474_v41 }
  0xd8   : > { %774 = vmatmul.bf16.gmra.mxu0 %v515_v4 }
  0xd9   : > { %863 = vmatmul.bf16.gmra.mxu1 %v516_v8 }
  0xda   : > { %952 = vmatmul.bf16.gmra.mxu2 %v515_v4 }
  0xdb   : > { %1041 = vmatmul.bf16.gmra.mxu3 %v516_v8 }
  0xe5   : > { %v740_v19 = vpop.f32.mrf.mxu0 }
  0xe6   : > { %v741_v21 = vadd.f32 %v740_v19, %v4514_v15  ;;  %v829_v22 = vpop.f32.mrf.mxu1 }
  0xe8   : > { %v830_v23 = vadd.f32 %v829_v22, %v741_v21  ;;  %779 = vmatmul.bf16.gmra.mxu0 %v517_v18  ;;  %v522_v22 = vpack.c.bf16 %v480_v14, %v478_v13 }
  0xe9   : > { %868 = vmatmul.bf16.gmra.mxu1 %v518_v20 }
  0xea   : > { %957 = vmatmul.bf16.gmra.mxu2 %v517_v18  ;;  %v1087_v43 = vmax.f32 %v830_v23, 0.0 }
  0xeb   : > { %1046 = vmatmul.bf16.gmra.mxu3 %v518_v20 }
  0xed   : > { %v918_v30 = vpop.f32.mrf.mxu2  ;;  %v742_v34 = vpop.f32.mrf.mxu0 }
  0xee   : > { %v919_v32 = vadd.f32 %v918_v30, %v4519_v24  ;;  %v1007_v33 = vpop.f32.mrf.mxu3  ;;  %v743_v35 = vadd.f32 %v742_v34, %v4514_v15  ;;  %v831_v36 = vpop.f32.mrf.mxu1  ;;  %v3813_v30 = vld [vmem:[#allocation8 + $0x14] sm:$0xf]  ;;  %v3463_v34 = vld [vmem:[#allocation8 + $0x98] sm:$0xf0] }
  0xf0   : > { %v1008_v37 = vadd.f32 %v1007_v33, %v919_v32  ;;  %v832_v38 = vadd.f32 %v831_v36, %v743_v35  ;;  %v3402_v32 = vor.u32 %v3813_v30, %v3399_v31  ;;  %v3829_v33 = vld [vmem:[#allocation8 + $0x94] sm:$0xf] }
  0xf2   : > { %v1089_v44 = vmax.f32 %v832_v38, 0.0  ;;  %v1088_v62 = vmax.f32 %v1008_v37, 0.0  ;;  %v3466_v37 = vor.u32 %v3829_v33, %v3463_v34  ;;  %1565 = vmatpush.bf16.msrb.mxu2 %v3402_v32 }
  0xf4   : > { %v4527_v50 = vpack.c.bf16 %v1089_v44, %v1087_v43  ;;  %1654 = vmatpush.bf16.msrb.mxu3 %v3466_v37 }
  0xf5   : > { %v920_v51 = vpop.f32.mrf.mxu2  ;;  %v745_v56 = vpop.f32.mrf.mxu0 }
  0xf6   : > { %v921_v54 = vadd.f32 %v920_v51, %v4519_v24  ;;  %v1009_v55 = vpop.f32.mrf.mxu3  ;;  %v746_v58 = vadd.f32 %v745_v56, %v4514_v15  ;;  %v834_v59 = vpop.f32.mrf.mxu1  ;;  %v3830_v56 = vld [vmem:[#allocation8 + $0x94] sm:$0xf0] }
  0xf8   : > { %v1010_v60 = vadd.f32 %v1009_v55, %v921_v54  ;;  %v835_v61 = vadd.f32 %v834_v59, %v746_v58  ;;  %784 = vmatmul.bf16.gmra.mxu0 %v519_v52  ;;  %v3461_v55 = vld [vmem:[#allocation8 + $0x90] sm:$0xf]  ;;  %v523_v58 = vpack.c.bf16 %v483_v46, %v481_v45 }
  0xf9   : > { %873 = vmatmul.bf16.gmra.mxu1 %v520_v57  ;;  %v3462_v59 = vor.u32 %v3830_v56, %v3461_v55  ;;  %v489_v56 = vld [vmem:[%s4462_s25 + $0x1a0] sm:$0xff] }
  0xfa   : > { %v1090_v63 = vmax.f32 %v1010_v60, 0.0  ;;  %962 = vmatmul.bf16.gmra.mxu2 %v519_v52  ;;  %v1091_v11 = vmax.f32 %v835_v61, 0.0  ;;  %v3397_v52 = vld [vmem:[#allocation8 + $0x10] sm:$0xf] }
  0xfb   : > { %1051 = vmatmul.bf16.gmra.mxu3 %v520_v57  ;;  %v3398_v54 = vor.u32 %v3814_v53, %v3397_v52  ;;  %1476 = vmatpush.bf16.msrb.mxu1 %v3462_v59  ;;  %v492_v59 = vld [vmem:[%s4462_s25 + $0x1b8] sm:$0xff] }
  0xfc   : > { %v4531_v0 = vpack.c.bf16 %v1090_v63, %v1088_v62 }
  0xfd   : > { %v923_v1 = vpop.f32.mrf.mxu2  ;;  %v747_v4 = vpop.f32.mrf.mxu0  ;;  %1387 = vmatpush.bf16.msrb.mxu0 %v3398_v54 }
  0xfe   : > { %v924_v2 = vadd.f32 %v923_v1, %v4519_v24  ;;  %v1012_v3 = vpop.f32.mrf.mxu3  ;;  %v748_v5 = vadd.f32 %v747_v4, %v4514_v15  ;;  %v836_v6 = vpop.f32.mrf.mxu1  ;;  %v524_v1 = vpack.c.bf16 %v484_v48, %v482_v47 }
 0x100   : > { %v1013_v7 = vadd.f32 %v1012_v3, %v924_v2  ;;  %v837_v8 = vadd.f32 %v836_v6, %v748_v5 }
 0x102   : > { %v1093_v12 = vmax.f32 %v837_v8, 0.0  ;;  %v1092_v28 = vmax.f32 %v1013_v7, 0.0 }
 0x104   : > { %v4539_v18 = vpack.c.bf16 %v1093_v12, %v1091_v11 }
 0x105   : > { %v925_v16 = vpop.f32.mrf.mxu2  ;;  %v750_v21 = vpop.f32.mrf.mxu0 }
 0x106   : > { %v926_v19 = vadd.f32 %v925_v16, %v4519_v24  ;;  %v1014_v20 = vpop.f32.mrf.mxu3  ;;  %v751_v23 = vadd.f32 %v750_v21, %v4514_v15  ;;  %v839_v25 = vpop.f32.mrf.mxu1 }
 0x108   : > { %v1015_v26 = vadd.f32 %v1014_v20, %v926_v19  ;;  %v840_v27 = vadd.f32 %v839_v25, %v751_v23  ;;  %789 = vmatmul.bf16.gmra.mxu0 %v521_v17  ;;  %v485_v19 = vld [vmem:[%s4462_s25 + $0x180] sm:$0xff]  ;;  %v487_v20 = vld [vmem:[%s4462_s25 + $0x190] sm:$0xff]  ;;  %v486_v23 = vld [vmem:[%s4462_s25 + $0x188] sm:$0xff] }
 0x109   : > { %878 = vmatmul.bf16.gmra.mxu1 %v522_v22  ;;  %v488_v25 = vld [vmem:[%s4462_s25 + $0x198] sm:$0xff] }
 0x10a   : > { %v1094_v29 = vmax.f32 %v1015_v26, 0.0  ;;  %967 = vmatmul.bf16.gmra.mxu2 %v521_v17  ;;  %v1095_v49 = vmax.f32 %v840_v27, 0.0  ;;  %v525_v27 = vpack.c.bf16 %v487_v20, %v485_v19  ;;  %v526_v32 = vpack.c.bf16 %v488_v25, %v486_v23 }
 0x10b   : > { %1056 = vmatmul.bf16.gmra.mxu3 %v522_v22 }
 0x10c   : > { %v4543_v35 = vpack.c.bf16 %v1094_v29, %v1092_v28 }
 0x10d   : > { %v928_v36 = vpop.f32.mrf.mxu2  ;;  %v752_v40 = vpop.f32.mrf.mxu0 }
 0x10e   : > { %v929_v38 = vadd.f32 %v928_v36, %v4519_v24  ;;  %v1017_v39 = vpop.f32.mrf.mxu3  ;;  %v753_v41 = vadd.f32 %v752_v40, %v4514_v15  ;;  %v841_v42 = vpop.f32.mrf.mxu1  ;;  %v3811_v40 = vld [vmem:[#allocation8 + $0x4] sm:$0xf] }
 0x110   : > { %v1018_v43 = vadd.f32 %v1017_v39, %v929_v38  ;;  %v842_v44 = vadd.f32 %v841_v42, %v753_v41  ;;  %v3391_v41 = vld [vmem:[#allocation8 + $0x8] sm:$0xf0] }
 0x111   : > { %v3394_v42 = vor.u32 %v3811_v40, %v3391_v41 }
 0x112   : > { %v1097_v51 = vmax.f32 %v842_v44, 0.0  ;;  %v1096_v6 = vmax.f32 %v1018_v43, 0.0  ;;  %v3827_v43 = vld [vmem:[#allocation8 + $0x84] sm:$0xf]  ;;  %v3455_v44 = vld [vmem:[#allocation8 + $0x88] sm:$0xf0] }
 0x113   : > { %v3458_v47 = vor.u32 %v3827_v43, %v3455_v44  ;;  %1566 = vmatpush.bf16.msrb.mxu2 %v3394_v42 }
 0x114   : > { %v4551_v60 = vpack.c.bf16 %v1097_v51, %v1095_v49 }
 0x115   : > { %v930_v57 = vpop.f32.mrf.mxu2  ;;  %v755_v63 = vpop.f32.mrf.mxu0  ;;  %1655 = vmatpush.bf16.msrb.mxu3 %v3458_v47 }
 0x116   : > { %v931_v61 = vadd.f32 %v930_v57, %v4519_v24  ;;  %v1019_v62 = vpop.f32.mrf.mxu3  ;;  %v756_v2 = vadd.f32 %v755_v63, %v4514_v15  ;;  %v844_v3 = vpop.f32.mrf.mxu1  ;;  %v491_v57 = vld [vmem:[%s4462_s25 + $0x1b0] sm:$0xff]  ;;  %v3389_v63 = vld [vmem:[#allocation8] sm:$0xf] }
 0x118   : > { %v1020_v4 = vadd.f32 %v1019_v62, %v931_v61  ;;  %v845_v5 = vadd.f32 %v844_v3, %v756_v2  ;;  %794 = vmatmul.bf16.gmra.mxu0 %v523_v58  ;;  %v3453_v3 = vld [vmem:[#allocation8 + $0x80] sm:$0xf] }
 0x119   : > { %883 = vmatmul.bf16.gmra.mxu1 %v524_v1 }
 0x11a   : > { %v1098_v7 = vmax.f32 %v1020_v4, 0.0  ;;  %972 = vmatmul.bf16.gmra.mxu2 %v523_v58  ;;  %v1099_v21 = vmax.f32 %v845_v5, 0.0  ;;  %v490_v58 = vld [vmem:[%s4462_s25 + $0x1a8] sm:$0xff] }
 0x11b   : > { %1061 = vmatmul.bf16.gmra.mxu3 %v524_v1  ;;  %v3812_v1 = vld [vmem:[#allocation8 + $0x4] sm:$0xf0] }
 0x11c   : > { %v4555_v8 = vpack.c.bf16 %v1098_v7, %v1096_v6  ;;  %v3390_v2 = vor.u32 %v3812_v1, %v3389_v63  ;;  %v3828_v4 = vld [vmem:[#allocation8 + $0x84] sm:$0xf0]  ;;  %v527_v6 = vpack.c.bf16 %v491_v57, %v489_v56  ;;  %v3575_v56 = vld [vmem:[#allocation10 + $0x78] sm:$0xf0] }
 0x11d   : > { %v933_v9 = vpop.f32.mrf.mxu2  ;;  %v757_v12 = vpop.f32.mrf.mxu0  ;;  %v3454_v7 = vor.u32 %v3828_v4, %v3453_v3 }
 0x11e   : > { %v934_v10 = vadd.f32 %v933_v9, %v4519_v24  ;;  %v1022_v11 = vpop.f32.mrf.mxu3  ;;  %v758_v13 = vadd.f32 %v757_v12, %v4514_v15  ;;  %v846_v14 = vpop.f32.mrf.mxu1  ;;  %1388 = vmatpush.bf16.msrb.mxu0 %v3390_v2 }
 0x11f   : > { %1477 = vmatpush.bf16.msrb.mxu1 %v3454_v7 }
 0x120   : > { %v1023_v16 = vadd.f32 %v1022_v11, %v934_v10  ;;  %v847_v17 = vadd.f32 %v846_v14, %v758_v13  ;;  %v528_v13 = vpack.c.bf16 %v492_v59, %v490_v58  ;;  %v3873_v58 = vld [vmem:[#allocation10 + $0xf4] sm:$0xf]  ;;  %v3639_v59 = vld [vmem:[#allocation10 + $0xf8] sm:$0xf0] }
 0x121   : > { %v3642_v63 = vor.u32 %v3873_v58, %v3639_v59 }
 0x122   : > { %v1101_v22 = vmax.f32 %v847_v17, 0.0  ;;  %v1100_v38 = vmax.f32 %v1023_v16, 0.0 }
 0x123   : > { %2298 = vmatpush.bf16.msra.mxu3 %v3642_v63 }
 0x124   : > { %v4563_v28 = vpack.c.bf16 %v1101_v22, %v1099_v21 }
 0x125   : > { %v935_v26 = vpop.f32.mrf.mxu2  ;;  %v760_v31 = vpop.f32.mrf.mxu0 }
 0x126   : > { %v936_v29 = vadd.f32 %v935_v26, %v4519_v24  ;;  %v1024_v30 = vpop.f32.mrf.mxu3  ;;  %v761_v33 = vadd.f32 %v760_v31, %v4514_v15  ;;  %v849_v34 = vpop.f32.mrf.mxu1 }
 0x128   : > { %v1025_v36 = vadd.f32 %v1024_v30, %v936_v29  ;;  %v850_v37 = vadd.f32 %v849_v34, %v761_v33  ;;  %799 = vmatmul.bf16.gmra.mxu0 %v525_v27  ;;  %v493_v33 = vld [vmem:[%s4462_s25 + $0x1c0] sm:$0xff]  ;;  %v495_v34 = vld [vmem:[%s4462_s25 + $0x1d0] sm:$0xff] }
 0x129   : > { %888 = vmatmul.bf16.gmra.mxu1 %v526_v32  ;;  %v529_v41 = vpack.c.bf16 %v495_v34, %v493_v33 }
 0x12a   : > { %v1102_v39 = vmax.f32 %v1025_v36, 0.0  ;;  %977 = vmatmul.bf16.gmra.mxu2 %v525_v27  ;;  %v1103_v61 = vmax.f32 %v850_v37, 0.0 }
 0x12b   : > { %1066 = vmatmul.bf16.gmra.mxu3 %v526_v32 }
 0x12c   : > { %v4567_v45 = vpack.c.bf16 %v1102_v39, %v1100_v38  ;;  %v494_v38 = vld [vmem:[%s4462_s25 + $0x1c8] sm:$0xff]  ;;  %v496_v39 = vld [vmem:[%s4462_s25 + $0x1d8] sm:$0xff] }
 0x12d   : > { %v938_v46 = vpop.f32.mrf.mxu2  ;;  %v762_v51 = vpop.f32.mrf.mxu0  ;;  %v530_v47 = vpack.c.bf16 %v496_v39, %v494_v38 }
 0x12e   : > { %v939_v48 = vadd.f32 %v938_v46, %v4519_v24  ;;  %v1027_v49 = vpop.f32.mrf.mxu3  ;;  %v763_v52 = vadd.f32 %v762_v51, %v4514_v15  ;;  %v851_v53 = vpop.f32.mrf.mxu1 }
 0x130   : > { %v1028_v54 = vadd.f32 %v1027_v49, %v939_v48  ;;  %v852_v55 = vadd.f32 %v851_v53, %v763_v52 }
 0x132   : > { %v1105_v62 = vmax.f32 %v852_v55, 0.0  ;;  %v1104_v20 = vmax.f32 %v1028_v54, 0.0  ;;  %v3857_v55 = vld [vmem:[#allocation10 + $0x74] sm:$0xf] }
 0x133   : > { %v3578_v57 = vor.u32 %v3857_v55, %v3575_v56 }
 0x134   : > { %v4575_v9 = vpack.c.bf16 %v1105_v62, %v1103_v61 }
 0x135   : > { %v940_v5 = vpop.f32.mrf.mxu2  ;;  %v765_v12 = vpop.f32.mrf.mxu0  ;;  %2209 = vmatpush.bf16.msra.mxu2 %v3578_v57 }
 0x136   : > { %v941_v10 = vadd.f32 %v940_v5, %v4519_v24  ;;  %v1029_v11 = vpop.f32.mrf.mxu3  ;;  %v766_v14 = vadd.f32 %v765_v12, %v4514_v15  ;;  %v854_v16 = vpop.f32.mrf.mxu1  ;;  %v498_v12 = vld [vmem:[%s4462_s25 + $0x1e8] sm:$0xff] }
 0x138   : > { %v1030_v17 = vadd.f32 %v1029_v11, %v941_v10  ;;  %v855_v19 = vadd.f32 %v854_v16, %v766_v14  ;;  %804 = vmatmul.bf16.gmra.mxu0 %v527_v6  ;;  %v497_v10 = vld [vmem:[%s4462_s25 + $0x1e0] sm:$0xff]  ;;  %v499_v11 = vld [vmem:[%s4462_s25 + $0x1f0] sm:$0xff] }
 0x139   : > { %893 = vmatmul.bf16.gmra.mxu1 %v528_v13 }
 0x13a   : > { %v1106_v21 = vmax.f32 %v1030_v17, 0.0  ;;  %982 = vmatmul.bf16.gmra.mxu2 %v527_v6  ;;  %v1107_v36 = vmax.f32 %v855_v19, 0.0  ;;  %v3573_v17 = vld [vmem:[#allocation10 + $0x70] sm:$0xf]  ;;  %v3858_v19 = vld [vmem:[#allocation10 + $0x74] sm:$0xf0] }
 0x13b   : > { %1071 = vmatmul.bf16.gmra.mxu3 %v528_v13  ;;  %v500_v13 = vld [vmem:[%s4462_s25 + $0x1f8] sm:$0xff]  ;;  %s4208_s25 = scalar_lea.hbm %s4207_s5, 512 }
 0x13c   : > { %v4579_v22 = vpack.c.bf16 %v1106_v21, %v1104_v20  ;;  %v3574_v20 = vor.u32 %v3858_v19, %v3573_v17  ;;  %v3637_v21 = vld [vmem:[#allocation10 + $0xf0] sm:$0xf]  ;;  %v532_v33 = vpack.c.bf16 %v500_v13, %v498_v12  ;;  %p4209_p1 = scmp.ne.s32.totalorder %s4207_s5, %s4208_s25  ;;  %p4214_p7 = scmp.lt.s32.totalorder %s4212_s17, %s4208_s25 }
 0x13d   : > { %v943_v23 = vpop.f32.mrf.mxu2  ;;  %v767_v27 = vpop.f32.mrf.mxu0 }
 0x13e   : > { %v944_v25 = vadd.f32 %v943_v23, %v4519_v24  ;;  %v1032_v26 = vpop.f32.mrf.mxu3  ;;  %v768_v29 = vadd.f32 %v767_v27, %v4514_v15  ;;  %v856_v30 = vpop.f32.mrf.mxu1  ;;  %v3874_v23 = vld [vmem:[#allocation10 + $0xf4] sm:$0xf0]  ;;  %2031 = vmatpush.bf16.msra.mxu0 %v3574_v20  ;;  %p4210_p3 = pnand %p4209_p1, %p4423_p0  ;;  %p4215_p8 = por %p4214_p7, %p4213_p13 }
 0x13f   : > { %v3638_v27 = vor.u32 %v3874_v23, %v3637_v21 }
 0x140   : > { %v1033_v31 = vadd.f32 %v1032_v26, %v944_v25  ;;  %v857_v32 = vadd.f32 %v856_v30, %v768_v29  ;;  %v531_v26 = vpack.c.bf16 %v499_v11, %v497_v10  ;;  %v3871_v10 = vld [vmem:[#allocation10 + $0xe4] sm:$0xf]  ;;  %v3631_v11 = vld [vmem:[#allocation10 + $0xe8] sm:$0xf0]  ;;  %p4211_p5 = pneg %p4210_p3 }
 0x141   : > { %2120 = vmatpush.bf16.msra.mxu1 %v3638_v27  ;;  %v3856_v27 = vld [vmem:[#allocation10 + $0x64] sm:$0xf0] }
 0x142   : > { %v1109_v37 = vmax.f32 %v857_v32, 0.0  ;;  %v1108_v53 = vmax.f32 %v1033_v31, 0.0  ;;  %p4216_p9 = pnand %p4215_p8, %p4211_p5 }
 0x144   : > { %v4587_v42 = vpack.c.bf16 %v1109_v37, %v1107_v36 }
 0x145   : > { %v945_v40 = vpop.f32.mrf.mxu2  ;;  %v770_v46 = vpop.f32.mrf.mxu0 }
 0x146   : > { %v946_v43 = vadd.f32 %v945_v40, %v4519_v24  ;;  %v1034_v44 = vpop.f32.mrf.mxu3  ;;  %v771_v48 = vadd.f32 %v770_v46, %v4514_v15  ;;  %v859_v49 = vpop.f32.mrf.mxu1 }
 0x148   : > { %v1035_v51 = vadd.f32 %v1034_v44, %v946_v43  ;;  %v860_v52 = vadd.f32 %v859_v49, %v771_v48  ;;  %809 = vmatmul.bf16.gmra.mxu0 %v529_v41 }
 0x149   : > { %898 = vmatmul.bf16.gmra.mxu1 %v530_v47 }
 0x14a   : > { %v1110_v54 = vmax.f32 %v1035_v51, 0.0  ;;  %987 = vmatmul.bf16.gmra.mxu2 %v529_v41  ;;  %v1111_v14 = vmax.f32 %v860_v52, 0.0 }
 0x14b   : > { %1076 = vmatmul.bf16.gmra.mxu3 %v530_v47 }
 0x14c   : > { %v4591_v61 = vpack.c.bf16 %v1110_v54, %v1108_v53 }
 0x14d   : > { %v948_v62 = vpop.f32.mrf.mxu2  ;;  %v772_v3 = vpop.f32.mrf.mxu0 }
 0x14e   : > { %v949_v1 = vadd.f32 %v948_v62, %v4519_v24  ;;  %v1037_v2 = vpop.f32.mrf.mxu3  ;;  %v773_v4 = vadd.f32 %v772_v3, %v4514_v15  ;;  %v861_v5 = vpop.f32.mrf.mxu1 }
 0x150   : > { %v1038_v6 = vadd.f32 %v1037_v2, %v949_v1  ;;  %v862_v7 = vadd.f32 %v861_v5, %v773_v4  ;;  %v3855_v5 = vld [vmem:[#allocation10 + $0x64] sm:$0xf] }
 0x152   : > { %v1113_v16 = vmax.f32 %v862_v7, 0.0  ;;  %v1112_v39 = vmax.f32 %v1038_v6, 0.0  ;;  %v3567_v6 = vld [vmem:[#allocation10 + $0x68] sm:$0xf0] }
 0x153   : > { %v3570_v7 = vor.u32 %v3855_v5, %v3567_v6 }
 0x154   : > { %v4599_v29 = vpack.c.bf16 %v1113_v16, %v1111_v14  ;;  %v3634_v14 = vor.u32 %v3871_v10, %v3631_v11 }
 0x155   : > { %v950_v25 = vpop.f32.mrf.mxu2  ;;  %v775_v32 = vpop.f32.mrf.mxu0  ;;  %2210 = vmatpush.bf16.msra.mxu2 %v3570_v7 }
 0x156   : > { %v951_v30 = vadd.f32 %v950_v25, %v4519_v24  ;;  %v1039_v31 = vpop.f32.mrf.mxu3  ;;  %v776_v34 = vadd.f32 %v775_v32, %v4514_v15  ;;  %v864_v36 = vpop.f32.mrf.mxu1  ;;  %2299 = vmatpush.bf16.msra.mxu3 %v3634_v14  ;;  %v3872_v32 = vld [vmem:[#allocation10 + $0xe4] sm:$0xf0]  ;;  %v3559_v14 = vld [vmem:[#allocation10 + $0x58] sm:$0xf0] }
 0x158   : > { %v1040_v37 = vadd.f32 %v1039_v31, %v951_v30  ;;  %v865_v38 = vadd.f32 %v864_v36, %v776_v34  ;;  %814 = vmatmul.bf16.gmra.mxu0 %v531_v26  ;;  %v3629_v31 = vld [vmem:[#allocation10 + $0xe0] sm:$0xf] }
 0x159   : > { %903 = vmatmul.bf16.gmra.mxu1 %v532_v33  ;;  %v3630_v34 = vor.u32 %v3872_v32, %v3629_v31  ;;  %v3557_v32 = vld [vmem:[#allocation10 + $0x50] sm:$0xf] }
 0x15a   : > { %v1114_v40 = vmax.f32 %v1040_v37, 0.0  ;;  %992 = vmatmul.bf16.gmra.mxu2 %v531_v26  ;;  %v1115_v53 = vmax.f32 %v865_v38, 0.0  ;;  %v3565_v26 = vld [vmem:[#allocation10 + $0x60] sm:$0xf] }
 0x15b   : > { %1081 = vmatmul.bf16.gmra.mxu3 %v532_v33  ;;  %v3566_v30 = vor.u32 %v3856_v27, %v3565_v26  ;;  %2121 = vmatpush.bf16.msra.mxu1 %v3630_v34 }
 0x15c   : > { %v4603_v41 = vpack.c.bf16 %v1114_v40, %v1112_v39 }
 0x15d   : > { %v953_v43 = vpop.f32.mrf.mxu2  ;;  %v777_v47 = vpop.f32.mrf.mxu0  ;;  %2032 = vmatpush.bf16.msra.mxu0 %v3566_v30 }
 0x15e   : > { %v954_v44 = vadd.f32 %v953_v43, %v4519_v24  ;;  %v1042_v46 = vpop.f32.mrf.mxu3  ;;  %v778_v48 = vadd.f32 %v777_v47, %v4514_v15  ;;  %v866_v49 = vpop.f32.mrf.mxu1 }
 0x160   : > { %v1043_v51 = vadd.f32 %v1042_v46, %v954_v44  ;;  %v867_v52 = vadd.f32 %v866_v49, %v778_v48 }
 0x162   : > { %v1117_v54 = vmax.f32 %v867_v52, 0.0  ;;  %v1116_v3 = vmax.f32 %v1043_v51, 0.0 }
 0x164   : > { %v4607_v56 = vpack.c.bf16 %v1117_v54, %v1115_v53 }
 0x165   : > { %v955_v55 = vpop.f32.mrf.mxu2  ;;  %v780_v59 = vpop.f32.mrf.mxu0 }
 0x166   : > { %v956_v57 = vadd.f32 %v955_v55, %v4519_v24  ;;  %v1044_v58 = vpop.f32.mrf.mxu3  ;;  %v781_v62 = vadd.f32 %v780_v59, %v4514_v15  ;;  %v869_v63 = vpop.f32.mrf.mxu1 }
 0x168   : > { %v1045_v1 = vadd.f32 %v1044_v58, %v956_v57  ;;  %v870_v2 = vadd.f32 %v869_v63, %v781_v62  ;;  %1389 = vmatmul.bf16.vlgmr.msrb.gmra.mxu0 %v4527_v50 }
 0x169   : > { %1478 = vmatmul.bf16.vlgmr.msrb.gmra.mxu1 %v4531_v0 }
 0x16a   : > { %v1118_v4 = vmax.f32 %v1045_v1, 0.0  ;;  %1567 = vmatmul.bf16.vlgmr.msrb.gmra.mxu2 %v4527_v50  ;;  %v1119_v23 = vmax.f32 %v870_v2, 0.0 }
 0x16b   : > { %1656 = vmatmul.bf16.vlgmr.msrb.gmra.mxu3 %v4531_v0 }
 0x16c   : > { %v4615_v12 = vpack.c.bf16 %v1118_v4, %v1116_v3 }
 0x16d   : > { %v958_v13 = vpop.f32.mrf.mxu2  ;;  %v782_v19 = vpop.f32.mrf.mxu0 }
 0x16e   : > { %v959_v16 = vadd.f32 %v958_v13, %v4519_v24  ;;  %v1047_v17 = vpop.f32.mrf.mxu3  ;;  %v783_v20 = vadd.f32 %v782_v19, %v4514_v15  ;;  %v871_v21 = vpop.f32.mrf.mxu1  ;;  %v3853_v13 = vld [vmem:[#allocation10 + $0x54] sm:$0xf]  ;;  %v3623_v19 = vld [vmem:[#allocation10 + $0xd8] sm:$0xf0] }
 0x170   : > { %v1048_v50 = vadd.f32 %v1047_v17, %v959_v16  ;;  %v872_v0 = vadd.f32 %v871_v21, %v783_v20  ;;  %v3562_v16 = vor.u32 %v3853_v13, %v3559_v14  ;;  %v3869_v17 = vld [vmem:[#allocation10 + $0xd4] sm:$0xf] }
 0x172   : > { %v1121_v25 = vmax.f32 %v872_v0, 0.0  ;;  %v1120_v47 = vmax.f32 %v1048_v50, 0.0  ;;  %v3626_v50 = vor.u32 %v3869_v17, %v3623_v19  ;;  %2211 = vmatpush.bf16.msra.mxu2 %v3562_v16 }
 0x174   : > { %v4619_v36 = vpack.c.bf16 %v1121_v25, %v1119_v23  ;;  %2300 = vmatpush.bf16.msra.mxu3 %v3626_v50  ;;  %v3551_v50 = vld [vmem:[#allocation10 + $0x48] sm:$0xf0] }
 0x175   : > { %v960_v33 = vpop.f32.mrf.mxu2  ;;  %v785_v39 = vpop.f32.mrf.mxu0 }
 0x176   : > { %v961_v37 = vadd.f32 %v960_v33, %v4519_v24  ;;  %v1049_v38 = vpop.f32.mrf.mxu3  ;;  %v786_v40 = vadd.f32 %v785_v39, %v4514_v15  ;;  %v874_v43 = vpop.f32.mrf.mxu1  ;;  %v3854_v33 = vld [vmem:[#allocation10 + $0x54] sm:$0xf0] }
 0x177   : > { %v3558_v34 = vor.u32 %v3854_v33, %v3557_v32 }
 0x178   : > { %v1050_v44 = vadd.f32 %v1049_v38, %v961_v37  ;;  %v875_v46 = vadd.f32 %v874_v43, %v786_v40  ;;  %1394 = vmatmul.bf16.gmra.mxu0 %v4539_v18  ;;  %v3621_v37 = vld [vmem:[#allocation10 + $0xd0] sm:$0xf]  ;;  %v3870_v38 = vld [vmem:[#allocation10 + $0xd4] sm:$0xf0] }
 0x179   : > { %1483 = vmatmul.bf16.gmra.mxu1 %v4543_v35  ;;  %v3622_v40 = vor.u32 %v3870_v38, %v3621_v37  ;;  %2033 = vmatpush.bf16.msra.mxu0 %v3558_v34  ;;  %v3549_v38 = vld [vmem:[#allocation10 + $0x40] sm:$0xf] }
 0x17a   : > { %v1122_v48 = vmax.f32 %v1050_v44, 0.0  ;;  %1572 = vmatmul.bf16.gmra.mxu2 %v4539_v18  ;;  %v1123_v62 = vmax.f32 %v875_v46, 0.0 }
 0x17b   : > { %1661 = vmatmul.bf16.gmra.mxu3 %v4543_v35  ;;  %2122 = vmatpush.bf16.msra.mxu1 %v3622_v40 }
 0x17c   : > { %v4627_v49 = vpack.c.bf16 %v1122_v48, %v1120_v47 }
 0x17d   : > { %v963_v51 = vpop.f32.mrf.mxu2  ;;  %v787_v54 = vpop.f32.mrf.mxu0 }
 0x17e   : > { %v964_v52 = vadd.f32 %v963_v51, %v4519_v24  ;;  %v1052_v53 = vpop.f32.mrf.mxu3  ;;  %v788_v55 = vadd.f32 %v787_v54, %v4514_v15  ;;  %v876_v57 = vpop.f32.mrf.mxu1 }
 0x180   : > { %v1053_v58 = vadd.f32 %v1052_v53, %v964_v52  ;;  %v877_v59 = vadd.f32 %v876_v57, %v788_v55 }
 0x182   : > { %v1125_v63 = vmax.f32 %v877_v59, 0.0  ;;  %v1124_v10 = vmax.f32 %v1053_v58, 0.0 }
 0x184   : > { %v4631_v2 = vpack.c.bf16 %v1125_v63, %v1123_v62 }
 0x185   : > { %v965_v1 = vpop.f32.mrf.mxu2  ;;  %v790_v3 = vpop.f32.mrf.mxu0 }
 0x186   : > { %v966_v18 = vadd.f32 %v965_v1, %v4519_v24  ;;  %v1054_v35 = vpop.f32.mrf.mxu3  ;;  %v791_v4 = vadd.f32 %v790_v3, %v4514_v15  ;;  %v879_v5 = vpop.f32.mrf.mxu1 }
 0x188   : > { %v1055_v6 = vadd.f32 %v1054_v35, %v966_v18  ;;  %v880_v7 = vadd.f32 %v879_v5, %v791_v4  ;;  %1399 = vmatmul.bf16.gmra.mxu0 %v4551_v60 }
 0x189   : > { %1488 = vmatmul.bf16.gmra.mxu1 %v4555_v8 }
 0x18a   : > { %v1126_v11 = vmax.f32 %v1055_v6, 0.0  ;;  %1577 = vmatmul.bf16.gmra.mxu2 %v4551_v60  ;;  %v1127_v30 = vmax.f32 %v880_v7, 0.0 }
 0x18b   : > { %1666 = vmatmul.bf16.gmra.mxu3 %v4555_v8 }
 0x18c   : > { %v4639_v20 = vpack.c.bf16 %v1126_v11, %v1124_v10 }
 0x18d   : > { %v968_v21 = vpop.f32.mrf.mxu2  ;;  %v792_v25 = vpop.f32.mrf.mxu0 }
 0x18e   : > { %v969_v0 = vadd.f32 %v968_v21, %v4519_v24  ;;  %v1057_v23 = vpop.f32.mrf.mxu3  ;;  %v793_v26 = vadd.f32 %v792_v25, %v4514_v15  ;;  %v881_v27 = vpop.f32.mrf.mxu1  ;;  %v3851_v21 = vld [vmem:[#allocation10 + $0x44] sm:$0xf]  ;;  %v3615_v25 = vld [vmem:[#allocation10 + $0xc8] sm:$0xf0] }
 0x190   : > { %v1058_v60 = vadd.f32 %v1057_v23, %v969_v0  ;;  %v882_v8 = vadd.f32 %v881_v27, %v793_v26  ;;  %v3554_v0 = vor.u32 %v3851_v21, %v3551_v50  ;;  %v3867_v23 = vld [vmem:[#allocation10 + $0xc4] sm:$0xf] }
 0x192   : > { %v1129_v31 = vmax.f32 %v882_v8, 0.0  ;;  %v1128_v54 = vmax.f32 %v1058_v60, 0.0  ;;  %v3618_v60 = vor.u32 %v3867_v23, %v3615_v25  ;;  %2212 = vmatpush.bf16.msra.mxu2 %v3554_v0 }
 0x194   : > { %v4643_v43 = vpack.c.bf16 %v1129_v31, %v1127_v30  ;;  %2301 = vmatpush.bf16.msra.mxu3 %v3618_v60  ;;  %v3543_v60 = vld [vmem:[#allocation10 + $0x38] sm:$0xf0] }
 0x195   : > { %v970_v39 = vpop.f32.mrf.mxu2  ;;  %v795_v47 = vpop.f32.mrf.mxu0 }
 0x196   : > { %v971_v44 = vadd.f32 %v970_v39, %v4519_v24  ;;  %v1059_v46 = vpop.f32.mrf.mxu3  ;;  %v796_v48 = vadd.f32 %v795_v47, %v4514_v15  ;;  %v884_v51 = vpop.f32.mrf.mxu1  ;;  %v3852_v39 = vld [vmem:[#allocation10 + $0x44] sm:$0xf0] }
 0x197   : > { %v3550_v40 = vor.u32 %v3852_v39, %v3549_v38 }
 0x198   : > { %v1060_v52 = vadd.f32 %v1059_v46, %v971_v44  ;;  %v885_v53 = vadd.f32 %v884_v51, %v796_v48  ;;  %1404 = vmatmul.bf16.gmra.mxu0 %v4563_v28  ;;  %v3613_v44 = vld [vmem:[#allocation10 + $0xc0] sm:$0xf]  ;;  %v3868_v46 = vld [vmem:[#allocation10 + $0xc4] sm:$0xf0] }
 0x199   : > { %1493 = vmatmul.bf16.gmra.mxu1 %v4567_v45  ;;  %v3614_v48 = vor.u32 %v3868_v46, %v3613_v44  ;;  %2034 = vmatpush.bf16.msra.mxu0 %v3550_v40 }
 0x19a   : > { %v1130_v55 = vmax.f32 %v1060_v52, 0.0  ;;  %1582 = vmatmul.bf16.gmra.mxu2 %v4563_v28  ;;  %v1131_v4 = vmax.f32 %v885_v53, 0.0 }
 0x19b   : > { %1671 = vmatmul.bf16.gmra.mxu3 %v4567_v45  ;;  %2123 = vmatpush.bf16.msra.mxu1 %v3614_v48  ;;  %v3850_v48 = vld [vmem:[#allocation10 + $0x34] sm:$0xf0] }
 0x19c   : > { %v4651_v57 = vpack.c.bf16 %v1130_v55, %v1128_v54 }
 0x19d   : > { %v973_v58 = vpop.f32.mrf.mxu2  ;;  %v797_v63 = vpop.f32.mrf.mxu0 }
 0x19e   : > { %v974_v59 = vadd.f32 %v973_v58, %v4519_v24  ;;  %v1062_v62 = vpop.f32.mrf.mxu3  ;;  %v798_v1 = vadd.f32 %v797_v63, %v4514_v15  ;;  %v886_v18 = vpop.f32.mrf.mxu1 }
 0x1a0   : > { %v1063_v35 = vadd.f32 %v1062_v62, %v974_v59  ;;  %v887_v3 = vadd.f32 %v886_v18, %v798_v1 }
 0x1a2   : > { %v1133_v5 = vmax.f32 %v887_v3, 0.0  ;;  %v1132_v17 = vmax.f32 %v1063_v35, 0.0 }
 0x1a4   : > { %v4655_v7 = vpack.c.bf16 %v1133_v5, %v1131_v4 }
 0x1a5   : > { %v975_v6 = vpop.f32.mrf.mxu2  ;;  %v800_v10 = vpop.f32.mrf.mxu0 }
 0x1a6   : > { %v976_v28 = vadd.f32 %v975_v6, %v4519_v24  ;;  %v1064_v45 = vpop.f32.mrf.mxu3  ;;  %v801_v11 = vadd.f32 %v800_v10, %v4514_v15  ;;  %v889_v13 = vpop.f32.mrf.mxu1 }
 0x1a8   : > { %v1065_v14 = vadd.f32 %v1064_v45, %v976_v28  ;;  %v890_v16 = vadd.f32 %v889_v13, %v801_v11  ;;  %1409 = vmatmul.bf16.gmra.mxu0 %v4575_v9 }
 0x1a9   : > { %1498 = vmatmul.bf16.gmra.mxu1 %v4579_v22 }
 0x1aa   : > { %v1134_v19 = vmax.f32 %v1065_v14, 0.0  ;;  %1587 = vmatmul.bf16.gmra.mxu2 %v4575_v9  ;;  %v1135_v34 = vmax.f32 %v890_v16, 0.0 }
 0x1ab   : > { %1676 = vmatmul.bf16.gmra.mxu3 %v4579_v22 }
 0x1ac   : > { %v4663_v26 = vpack.c.bf16 %v1134_v19, %v1132_v17 }
 0x1ad   : > { %v978_v27 = vpop.f32.mrf.mxu2  ;;  %v802_v31 = vpop.f32.mrf.mxu0 }
 0x1ae   : > { %v979_v8 = vadd.f32 %v978_v27, %v4519_v24  ;;  %v1067_v30 = vpop.f32.mrf.mxu3  ;;  %v803_v32 = vadd.f32 %v802_v31, %v4514_v15  ;;  %v891_v33 = vpop.f32.mrf.mxu1  ;;  %v3849_v27 = vld [vmem:[#allocation10 + $0x34] sm:$0xf]  ;;  %v3607_v31 = vld [vmem:[#allocation10 + $0xb8] sm:$0xf0] }
 0x1b0   : > { %v1068_v9 = vadd.f32 %v1067_v30, %v979_v8  ;;  %v892_v22 = vadd.f32 %v891_v33, %v803_v32  ;;  %v3546_v8 = vor.u32 %v3849_v27, %v3543_v60  ;;  %v3865_v30 = vld [vmem:[#allocation10 + $0xb4] sm:$0xf] }
 0x1b2   : > { %v1137_v37 = vmax.f32 %v892_v22, 0.0  ;;  %v1136_v63 = vmax.f32 %v1068_v9, 0.0  ;;  %v3610_v9 = vor.u32 %v3865_v30, %v3607_v31  ;;  %2213 = vmatpush.bf16.msra.mxu2 %v3546_v8 }
 0x1b4   : > { %v4667_v51 = vpack.c.bf16 %v1137_v37, %v1135_v34  ;;  %2302 = vmatpush.bf16.msra.mxu3 %v3610_v9 }
 0x1b5   : > { %v980_v47 = vpop.f32.mrf.mxu2  ;;  %v805_v54 = vpop.f32.mrf.mxu0 }
 0x1b6   : > { %v981_v52 = vadd.f32 %v980_v47, %v4519_v24  ;;  %v1069_v53 = vpop.f32.mrf.mxu3  ;;  %v806_v55 = vadd.f32 %v805_v54, %v4514_v15  ;;  %v894_v58 = vpop.f32.mrf.mxu1  ;;  %v3541_v47 = vld [vmem:[#allocation10 + $0x30] sm:$0xf] }
 0x1b8   : > { %v1070_v59 = vadd.f32 %v1069_v53, %v981_v52  ;;  %v895_v62 = vadd.f32 %v894_v58, %v806_v55  ;;  %1414 = vmatmul.bf16.gmra.mxu0 %v4587_v42  ;;  %v3605_v52 = vld [vmem:[#allocation10 + $0xb0] sm:$0xf] }
 0x1b9   : > { %1503 = vmatmul.bf16.gmra.mxu1 %v4591_v61 }
 0x1ba   : > { %v1138_v1 = vmax.f32 %v1070_v59, 0.0  ;;  %1592 = vmatmul.bf16.gmra.mxu2 %v4587_v42  ;;  %v1139_v11 = vmax.f32 %v895_v62, 0.0  ;;  %v3542_v59 = vor.u32 %v3850_v48, %v3541_v47  ;;  %v3866_v62 = vld [vmem:[#allocation10 + $0xb4] sm:$0xf0] }
 0x1bb   : > { %1681 = vmatmul.bf16.gmra.mxu3 %v4591_v61 }
 0x1bc   : > { %v4675_v18 = vpack.c.bf16 %v1138_v1, %v1136_v63  ;;  %2035 = vmatpush.bf16.msra.mxu0 %v3542_v59 }
 0x1bd   : > { %v983_v35 = vpop.f32.mrf.mxu2  ;;  %v807_v5 = vpop.f32.mrf.mxu0 }
 0x1be   : > { %v984_v3 = vadd.f32 %v983_v35, %v4519_v24  ;;  %v1072_v4 = vpop.f32.mrf.mxu3  ;;  %v808_v6 = vadd.f32 %v807_v5, %v4514_v15  ;;  %v896_v28 = vpop.f32.mrf.mxu1  ;;  %v3606_v35 = vor.u32 %v3866_v62, %v3605_v52  ;;  %v3597_v62 = vld [vmem:[#allocation10 + $0xa0] sm:$0xf] }
 0x1c0   : > { %v1073_v45 = vadd.f32 %v1072_v4, %v984_v3  ;;  %v897_v10 = vadd.f32 %v896_v28, %v808_v6  ;;  %2124 = vmatpush.bf16.msra.mxu1 %v3606_v35 }
 0x1c2   : > { %v1141_v13 = vmax.f32 %v897_v10, 0.0  ;;  %v1140_v23 = vmax.f32 %v1073_v45, 0.0 }
 0x1c4   : > { %v4679_v16 = vpack.c.bf16 %v1141_v13, %v1139_v11 }
 0x1c5   : > { %v985_v14 = vpop.f32.mrf.mxu2  ;;  %v810_v17 = vpop.f32.mrf.mxu0 }
 0x1c6   : > { %v986_v42 = vadd.f32 %v985_v14, %v4519_v24  ;;  %v1074_v61 = vpop.f32.mrf.mxu3  ;;  %v811_v19 = vadd.f32 %v810_v17, %v4514_v15  ;;  %v899_v21 = vpop.f32.mrf.mxu1  ;;  %v1215_v17 = vld [vmem:[%s5315_s4] sm:$0x3] }
 0x1c7   : > { %v4715_v9 = vperm.slane %v1215_v17, 1 }
 0x1c8   : > { %v1075_v50 = vadd.f32 %v1074_v61, %v986_v42  ;;  %v900_v0 = vadd.f32 %v899_v21, %v811_v19  ;;  %1419 = vmatmul.bf16.gmra.mxu0 %v4599_v29 }
 0x1c9   : > { %1508 = vmatmul.bf16.gmra.mxu1 %v4603_v41 }
 0x1ca   : > { %v1142_v25 = vmax.f32 %v1075_v50, 0.0  ;;  %1597 = vmatmul.bf16.gmra.mxu2 %v4599_v29  ;;  %v1143_v40 = vmax.f32 %v900_v0, 0.0  ;;  %v4706_v50 = vperm.slane %v1215_v17, 0 }
 0x1cb   : > { %1686 = vmatmul.bf16.gmra.mxu3 %v4603_v41 }
 0x1cc   : > { %v4687_v32 = vpack.c.bf16 %v1142_v25, %v1140_v23 }
 0x1cd   : > { %v988_v33 = vpop.f32.mrf.mxu2  ;;  %v812_v37 = vpop.f32.mrf.mxu0 }
 0x1ce   : > { %v989_v22 = vadd.f32 %v988_v33, %v4519_v24  ;;  %v1077_v34 = vpop.f32.mrf.mxu3  ;;  %v813_v38 = vadd.f32 %v812_v37, %v4514_v15  ;;  %v901_v39 = vpop.f32.mrf.mxu1  ;;  %v3863_v37 = vld [vmem:[#allocation10 + $0xa4] sm:$0xf] }
 0x1d0   : > { %v1078_v29 = vadd.f32 %v1077_v34, %v989_v22  ;;  %v902_v41 = vadd.f32 %v901_v39, %v813_v38  ;;  %v3535_v22 = vld [vmem:[#allocation10 + $0x28] sm:$0xf0] }
 0x1d1   : > { %v3599_v38 = vld [vmem:[#allocation10 + $0xa8] sm:$0xf0] }
 0x1d2   : > { %v1145_v44 = vmax.f32 %v902_v41, 0.0  ;;  %v1144_v5 = vmax.f32 %v1078_v29, 0.0  ;;  %v3602_v41 = vor.u32 %v3863_v37, %v3599_v38 }
 0x1d4   : > { %v4691_v53 = vpack.c.bf16 %v1145_v44, %v1143_v40  ;;  %2303 = vmatpush.bf16.msra.mxu3 %v3602_v41  ;;  %v3527_v41 = vld [vmem:[#allocation10 + $0x18] sm:$0xf0] }
 0x1d5   : > { %v990_v46 = vpop.f32.mrf.mxu2  ;;  %v815_v58 = vpop.f32.mrf.mxu0 }
 0x1d6   : > { %v991_v54 = vadd.f32 %v990_v46, %v4519_v24  ;;  %v1079_v55 = vpop.f32.mrf.mxu3  ;;  %v816_v63 = vadd.f32 %v815_v58, %v4514_v15  ;;  %v904_v1 = vpop.f32.mrf.mxu1  ;;  %v3848_v58 = vld [vmem:[#allocation10 + $0x24] sm:$0xf0] }
 0x1d8   : > { %v1080_v3 = vadd.f32 %v1079_v55, %v991_v54  ;;  %v905_v4 = vadd.f32 %v904_v1, %v816_v63  ;;  %1424 = vmatmul.bf16.gmra.mxu0 %v4607_v56  ;;  %v3533_v55 = vld [vmem:[#allocation10 + $0x20] sm:$0xf]  ;;  %v3864_v63 = vld [vmem:[#allocation10 + $0xa4] sm:$0xf0] }
 0x1d9   : > { %1513 = vmatmul.bf16.gmra.mxu1 %v4615_v12  ;;  %v3534_v59 = vor.u32 %v3848_v58, %v3533_v55 }
 0x1da   : > { %v1146_v6 = vmax.f32 %v1080_v3, 0.0  ;;  %1602 = vmatmul.bf16.gmra.mxu2 %v4607_v56  ;;  %v1147_v21 = vmax.f32 %v905_v4, 0.0  ;;  %v3598_v3 = vor.u32 %v3864_v63, %v3597_v62  ;;  %v3525_v63 = vld [vmem:[#allocation10 + $0x10] sm:$0xf] }
 0x1db   : > { %1691 = vmatmul.bf16.gmra.mxu3 %v4615_v12  ;;  %2036 = vmatpush.bf16.msra.mxu0 %v3534_v59 }
 0x1dc   : > { %v4699_v28 = vpack.c.bf16 %v1146_v6, %v1144_v5  ;;  %2125 = vmatpush.bf16.msra.mxu1 %v3598_v3 }
 0x1dd   : > { %v993_v45 = vpop.f32.mrf.mxu2  ;;  %v817_v13 = vpop.f32.mrf.mxu0 }
 0x1de   : > { %v994_v10 = vadd.f32 %v993_v45, %v4519_v24  ;;  %v1082_v11 = vpop.f32.mrf.mxu3  ;;  %v818_v14 = vadd.f32 %v817_v13, %v4514_v15  ;;  %v906_v42 = vpop.f32.mrf.mxu1 }
 0x1e0   : > { %v1083_v61 = vadd.f32 %v1082_v11, %v994_v10  ;;  %v907_v19 = vadd.f32 %v906_v42, %v818_v14 }
 0x1e2   : > { %v1149_v56 = vmax.f32 %v907_v19, 0.0  ;;  %v1148_v31 = vmax.f32 %v1083_v61, 0.0 }
 0x1e4   : > { %v4708_v0 = vpack.c.bf16 %v1149_v56, %v1147_v21 }
 0x1e5   : > { %v995_v12 = vpop.f32.mrf.mxu2  ;;  %v1390_v27 = vpop.f32.mrf.mxu0 }
 0x1e6   : > { %v996_v23 = vadd.f32 %v995_v12, %v4519_v24  ;;  %v1084_v25 = vpop.f32.mrf.mxu3  ;;  %v1391_v15 = vadd.f32 %v1390_v27, %v4706_v50  ;;  %v1479_v60 = vpop.f32.mrf.mxu1  ;;  %v3847_v24 = vld [vmem:[#allocation10 + $0x24] sm:$0xf] }
 0x1e7   : > { %v3538_v34 = vor.u32 %v3847_v24, %v3535_v22 }
 0x1e8   : > { %v1085_v8 = vadd.f32 %v1084_v25, %v996_v23  ;;  %v1480_v30 = vadd.f32 %v1479_v60, %v1391_v15  ;;  %1429 = vmatmul.bf16.gmra.mxu0 %v4619_v36 }
 0x1e9   : > { %1518 = vmatmul.bf16.gmra.mxu1 %v4627_v49  ;;  %2214 = vmatpush.bf16.msra.mxu2 %v3538_v34 }
 0x1ea   : > { %v1150_v33 = vmax.f32 %v1085_v8, 0.0  ;;  %1607 = vmatmul.bf16.gmra.mxu2 %v4619_v36  ;;  %v1737_v52 = vmax.f32 %v1480_v30, 0.0 }
 0x1eb   : > { %1696 = vmatmul.bf16.gmra.mxu3 %v4627_v49 }
 0x1ec   : > { %v4718_v39 = vpack.c.bf16 %v1150_v33, %v1148_v31 }
 0x1ed   : > { %v1568_v29 = vpop.f32.mrf.mxu2  ;;  %v1392_v46 = vpop.f32.mrf.mxu0 }
 0x1ee   : > { %v1569_v40 = vadd.f32 %v1568_v29, %v4715_v9  ;;  %v1657_v44 = vpop.f32.mrf.mxu3  ;;  %v1393_v36 = vadd.f32 %v1392_v46, %v4706_v50  ;;  %v1481_v47 = vpop.f32.mrf.mxu1  ;;  %v3845_v29 = vld [vmem:[#allocation10 + $0x14] sm:$0xf]  ;;  %v3591_v46 = vld [vmem:[#allocation10 + $0x98] sm:$0xf0] }
 0x1f0   : > { %v1658_v48 = vadd.f32 %v1657_v44, %v1569_v40  ;;  %v1482_v49 = vadd.f32 %v1481_v47, %v1393_v36  ;;  %v3530_v40 = vor.u32 %v3845_v29, %v3527_v41  ;;  %v3861_v44 = vld [vmem:[#allocation10 + $0x94] sm:$0xf] }
 0x1f2   : > { %v1739_v54 = vmax.f32 %v1482_v49, 0.0  ;;  %v1738_v14 = vmax.f32 %v1658_v48, 0.0  ;;  %v3594_v48 = vor.u32 %v3861_v44, %v3591_v46  ;;  %2215 = vmatpush.bf16.msra.mxu2 %v3530_v40 }
 0x1f4   : > { %v4722_v1 = vpack.c.bf16 %v1739_v54, %v1737_v52  ;;  %2304 = vmatpush.bf16.msra.mxu3 %v3594_v48  ;;  %v3519_v48 = vld [vmem:[#allocation10 + $0x8] sm:$0xf0] }
 0x1f5   : > { %v1570_v35 = vpop.f32.mrf.mxu2  ;;  %v1395_v6 = vpop.f32.mrf.mxu0 }
 0x1f6   : > { %v1571_v4 = vadd.f32 %v1570_v35, %v4715_v9  ;;  %v1659_v5 = vpop.f32.mrf.mxu3  ;;  %v1396_v45 = vadd.f32 %v1395_v6, %v4706_v50  ;;  %v1484_v10 = vpop.f32.mrf.mxu1  ;;  %v3846_v35 = vld [vmem:[#allocation10 + $0x14] sm:$0xf0] }
 0x1f7   : > { %v3526_v3 = vor.u32 %v3846_v35, %v3525_v63 }
 0x1f8   : > { %v1660_v11 = vadd.f32 %v1659_v5, %v1571_v4  ;;  %v1485_v13 = vadd.f32 %v1484_v10, %v1396_v45  ;;  %1434 = vmatmul.bf16.gmra.mxu0 %v4631_v2  ;;  %v3589_v4 = vld [vmem:[#allocation10 + $0x90] sm:$0xf]  ;;  %v3862_v5 = vld [vmem:[#allocation10 + $0x94] sm:$0xf0] }
 0x1f9   : > { %1523 = vmatmul.bf16.gmra.mxu1 %v4639_v20  ;;  %v3590_v45 = vor.u32 %v3862_v5, %v3589_v4  ;;  %2037 = vmatpush.bf16.msra.mxu0 %v3526_v3  ;;  %v3517_v5 = vld [vmem:[#allocation10] sm:$0xf] }
 0x1fa   : > { %v1740_v42 = vmax.f32 %v1660_v11, 0.0  ;;  %1612 = vmatmul.bf16.gmra.mxu2 %v4631_v2  ;;  %v1741_v15 = vmax.f32 %v1485_v13, 0.0 }
 0x1fb   : > { %1701 = vmatmul.bf16.gmra.mxu3 %v4639_v20  ;;  %2126 = vmatpush.bf16.msra.mxu1 %v3590_v45 }
 0x1fc   : > { %v4730_v61 = vpack.c.bf16 %v1740_v42, %v1738_v14 }
 0x1fd   : > { %v1573_v17 = vpop.f32.mrf.mxu2  ;;  %v1397_v56 = vpop.f32.mrf.mxu0 }
 0x1fe   : > { %v1574_v19 = vadd.f32 %v1573_v17, %v4715_v9  ;;  %v1662_v21 = vpop.f32.mrf.mxu3  ;;  %v1398_v12 = vadd.f32 %v1397_v56, %v4706_v50  ;;  %v1486_v23 = vpop.f32.mrf.mxu1 }
 0x200   : > { %v1663_v25 = vadd.f32 %v1662_v21, %v1574_v19  ;;  %v1487_v27 = vadd.f32 %v1486_v23, %v1398_v12 }
 0x202   : > { %v1743_v60 = vmax.f32 %v1487_v27, 0.0  ;;  %v1742_v37 = vmax.f32 %v1663_v25, 0.0 }
 0x204   : > { %v4734_v30 = vpack.c.bf16 %v1743_v60, %v1741_v15 }
 0x205   : > { %v1575_v8 = vpop.f32.mrf.mxu2  ;;  %v1400_v31 = vpop.f32.mrf.mxu0 }
 0x206   : > { %v1576_v2 = vadd.f32 %v1575_v8, %v4715_v9  ;;  %v1664_v20 = vpop.f32.mrf.mxu3  ;;  %v1401_v33 = vadd.f32 %v1400_v31, %v4706_v50  ;;  %v1489_v24 = vpop.f32.mrf.mxu1 }
 0x208   : > { %v1665_v22 = vadd.f32 %v1664_v20, %v1576_v2  ;;  %v1490_v34 = vadd.f32 %v1489_v24, %v1401_v33  ;;  %1439 = vmatmul.bf16.gmra.mxu0 %v4643_v43 }
 0x209   : > { %1528 = vmatmul.bf16.gmra.mxu1 %v4651_v57 }
 0x20a   : > { %v1744_v38 = vmax.f32 %v1665_v22, 0.0  ;;  %1617 = vmatmul.bf16.gmra.mxu2 %v4643_v43  ;;  %v1745_v59 = vmax.f32 %v1490_v34, 0.0 }
 0x20b   : > { %1706 = vmatmul.bf16.gmra.mxu3 %v4651_v57 }
 0x20c   : > { %v4742_v36 = vpack.c.bf16 %v1744_v38, %v1742_v37 }
 0x20d   : > { %v1578_v47 = vpop.f32.mrf.mxu2  ;;  %v1402_v54 = vpop.f32.mrf.mxu0 }
 0x20e   : > { %v1579_v49 = vadd.f32 %v1578_v47, %v4715_v9  ;;  %v1667_v52 = vpop.f32.mrf.mxu3  ;;  %v1403_v55 = vadd.f32 %v1402_v54, %v4706_v50  ;;  %v1491_v58 = vpop.f32.mrf.mxu1  ;;  %v3843_v47 = vld [vmem:[#allocation10 + $0x4] sm:$0xf]  ;;  %v3583_v54 = vld [vmem:[#allocation10 + $0x88] sm:$0xf0] }
 0x210   : > { %v1668_v43 = vadd.f32 %v1667_v52, %v1579_v49  ;;  %v1492_v57 = vadd.f32 %v1491_v58, %v1403_v55  ;;  %v3522_v49 = vor.u32 %v3843_v47, %v3519_v48  ;;  %v3859_v52 = vld [vmem:[#allocation10 + $0x84] sm:$0xf] }
 0x212   : > { %v1747_v62 = vmax.f32 %v1492_v57, 0.0  ;;  %v1746_v56 = vmax.f32 %v1668_v43, 0.0  ;;  %v3586_v43 = vor.u32 %v3859_v52, %v3583_v54  ;;  %2216 = vmatpush.bf16.msra.mxu2 %v3522_v49 }
 0x214   : > { %v4746_v10 = vpack.c.bf16 %v1747_v62, %v1745_v59  ;;  %2305 = vmatpush.bf16.msra.mxu3 %v3586_v43  ;;  %v3703_v43 = vld [vmem:[#allocation11 + $0x78] sm:$0xf0] }
 0x215   : > { %v1580_v6 = vpop.f32.mrf.mxu2  ;;  %v1405_v14 = vpop.f32.mrf.mxu0 }
 0x216   : > { %v1581_v11 = vadd.f32 %v1580_v6, %v4715_v9  ;;  %v1669_v13 = vpop.f32.mrf.mxu3  ;;  %v1406_v42 = vadd.f32 %v1405_v14, %v4706_v50  ;;  %v1494_v17 = vpop.f32.mrf.mxu1  ;;  %v3844_v6 = vld [vmem:[#allocation10 + $0x4] sm:$0xf0] }
 0x217   : > { %v3518_v45 = vor.u32 %v3844_v6, %v3517_v5 }
 0x218   : > { %v1670_v19 = vadd.f32 %v1669_v13, %v1581_v11  ;;  %v1495_v21 = vadd.f32 %v1494_v17, %v1406_v42  ;;  %1444 = vmatmul.bf16.gmra.mxu0 %v4655_v7  ;;  %v3581_v11 = vld [vmem:[#allocation10 + $0x80] sm:$0xf]  ;;  %v3860_v13 = vld [vmem:[#allocation10 + $0x84] sm:$0xf0] }
 0x219   : > { %1533 = vmatmul.bf16.gmra.mxu1 %v4663_v26  ;;  %v3582_v42 = vor.u32 %v3860_v13, %v3581_v11  ;;  %2038 = vmatpush.bf16.msra.mxu0 %v3518_v45  ;;  %v3701_v13 = vld [vmem:[#allocation11 + $0x70] sm:$0xf] }
 0x21a   : > { %v1748_v12 = vmax.f32 %v1670_v19, 0.0  ;;  %1622 = vmatmul.bf16.gmra.mxu2 %v4655_v7  ;;  %v1749_v33 = vmax.f32 %v1495_v21, 0.0 }
 0x21b   : > { %1711 = vmatmul.bf16.gmra.mxu3 %v4663_v26  ;;  %2127 = vmatpush.bf16.msra.mxu1 %v3582_v42 }
 0x21c   : > { %v4754_v23 = vpack.c.bf16 %v1748_v12, %v1746_v56 }
 0x21d   : > { %v1583_v25 = vpop.f32.mrf.mxu2  ;;  %v1407_v60 = vpop.f32.mrf.mxu0 }
 0x21e   : > { %v1584_v27 = vadd.f32 %v1583_v25, %v4715_v9  ;;  %v1672_v15 = vpop.f32.mrf.mxu3  ;;  %v1408_v8 = vadd.f32 %v1407_v60, %v4706_v50  ;;  %v1496_v2 = vpop.f32.mrf.mxu1 }
 0x220   : > { %v1673_v20 = vadd.f32 %v1672_v15, %v1584_v27  ;;  %v1497_v31 = vadd.f32 %v1496_v2, %v1408_v8 }
 0x222   : > { %v1751_v24 = vmax.f32 %v1497_v31, 0.0  ;;  %v1750_v44 = vmax.f32 %v1673_v20, 0.0 }
 0x224   : > { %v4758_v34 = vpack.c.bf16 %v1751_v24, %v1749_v33 }
 0x225   : > { %v1585_v22 = vpop.f32.mrf.mxu2  ;;  %v1410_v37 = vpop.f32.mrf.mxu0 }
 0x226   : > { %v1586_v7 = vadd.f32 %v1585_v22, %v4715_v9  ;;  %v1674_v26 = vpop.f32.mrf.mxu3  ;;  %v1411_v38 = vadd.f32 %v1410_v37, %v4706_v50  ;;  %v1499_v29 = vpop.f32.mrf.mxu1 }
 0x228   : > { %v1675_v41 = vadd.f32 %v1674_v26, %v1586_v7  ;;  %v1500_v40 = vadd.f32 %v1499_v29, %v1411_v38  ;;  %1449 = vmatmul.bf16.gmra.mxu0 %v4667_v51 }
 0x229   : > { %1538 = vmatmul.bf16.gmra.mxu1 %v4675_v18 }
 0x22a   : > { %v1752_v46 = vmax.f32 %v1675_v41, 0.0  ;;  %1627 = vmatmul.bf16.gmra.mxu2 %v4667_v51  ;;  %v1753_v3 = vmax.f32 %v1500_v40, 0.0 }
 0x22b   : > { %1716 = vmatmul.bf16.gmra.mxu3 %v4675_v18 }
 0x22c   : > { %v4766_v55 = vpack.c.bf16 %v1752_v46, %v1750_v44 }
 0x22d   : > { %v1588_v58 = vpop.f32.mrf.mxu2  ;;  %v1412_v62 = vpop.f32.mrf.mxu0 }
 0x22e   : > { %v1589_v57 = vadd.f32 %v1588_v58, %v4715_v9  ;;  %v1677_v59 = vpop.f32.mrf.mxu3  ;;  %v1413_v63 = vadd.f32 %v1412_v62, %v4706_v50  ;;  %v1501_v35 = vpop.f32.mrf.mxu1  ;;  %v3889_v58 = vld [vmem:[#allocation11 + $0x74] sm:$0xf]  ;;  %v3767_v62 = vld [vmem:[#allocation11 + $0xf8] sm:$0xf0] }
 0x230   : > { %v1678_v51 = vadd.f32 %v1677_v59, %v1589_v57  ;;  %v1502_v18 = vadd.f32 %v1501_v35, %v1413_v63  ;;  %v3706_v57 = vor.u32 %v3889_v58, %v3703_v43  ;;  %v3905_v59 = vld [vmem:[#allocation11 + $0xf4] sm:$0xf] }
 0x232   : > { %v1755_v4 = vmax.f32 %v1502_v18, 0.0  ;;  %v1754_v60 = vmax.f32 %v1678_v51, 0.0  ;;  %v3770_v51 = vor.u32 %v3905_v59, %v3767_v62  ;;  %2859 = vmatpush.bf16.msrb.mxu2 %v3706_v57 }
 0x234   : > { %v4770_v17 = vpack.c.bf16 %v1755_v4, %v1753_v3  ;;  %2948 = vmatpush.bf16.msrb.mxu3 %v3770_v51  ;;  %v3695_v51 = vld [vmem:[#allocation11 + $0x68] sm:$0xf0] }
 0x235   : > { %v1590_v14 = vpop.f32.mrf.mxu2  ;;  %v1415_v56 = vpop.f32.mrf.mxu0 }
 0x236   : > { %v1591_v19 = vadd.f32 %v1590_v14, %v4715_v9  ;;  %v1679_v21 = vpop.f32.mrf.mxu3  ;;  %v1416_v12 = vadd.f32 %v1415_v56, %v4706_v50  ;;  %v1504_v25 = vpop.f32.mrf.mxu1  ;;  %v3890_v14 = vld [vmem:[#allocation11 + $0x74] sm:$0xf0] }
 0x237   : > { %v3702_v42 = vor.u32 %v3890_v14, %v3701_v13 }
 0x238   : > { %v1680_v27 = vadd.f32 %v1679_v21, %v1591_v19  ;;  %v1505_v15 = vadd.f32 %v1504_v25, %v1416_v12  ;;  %1454 = vmatmul.bf16.gmra.mxu0 %v4679_v16  ;;  %v3765_v19 = vld [vmem:[#allocation11 + $0xf0] sm:$0xf]  ;;  %v3906_v21 = vld [vmem:[#allocation11 + $0xf4] sm:$0xf0] }
 0x239   : > { %1543 = vmatmul.bf16.gmra.mxu1 %v4687_v32  ;;  %v3766_v12 = vor.u32 %v3906_v21, %v3765_v19  ;;  %2681 = vmatpush.bf16.msrb.mxu0 %v3702_v42  ;;  %v3693_v21 = vld [vmem:[#allocation11 + $0x60] sm:$0xf] }
 0x23a   : > { %v1756_v8 = vmax.f32 %v1680_v27, 0.0  ;;  %1632 = vmatmul.bf16.gmra.mxu2 %v4679_v16  ;;  %v1757_v38 = vmax.f32 %v1505_v15, 0.0 }
 0x23b   : > { %1721 = vmatmul.bf16.gmra.mxu3 %v4687_v32  ;;  %2770 = vmatpush.bf16.msrb.mxu1 %v3766_v12 }
 0x23c   : > { %v4778_v2 = vpack.c.bf16 %v1756_v8, %v1754_v60 }
 0x23d   : > { %v1593_v20 = vpop.f32.mrf.mxu2  ;;  %v1417_v24 = vpop.f32.mrf.mxu0 }
 0x23e   : > { %v1594_v31 = vadd.f32 %v1593_v20, %v4715_v9  ;;  %v1682_v33 = vpop.f32.mrf.mxu3  ;;  %v1418_v22 = vadd.f32 %v1417_v24, %v4706_v50  ;;  %v1506_v7 = vpop.f32.mrf.mxu1 }
 0x240   : > { %v1683_v26 = vadd.f32 %v1682_v33, %v1594_v31  ;;  %v1507_v37 = vadd.f32 %v1506_v7, %v1418_v22 }
 0x242   : > { %v1759_v29 = vmax.f32 %v1507_v37, 0.0  ;;  %v1758_v52 = vmax.f32 %v1683_v26, 0.0 }
 0x244   : > { %v4782_v40 = vpack.c.bf16 %v1759_v29, %v1757_v38 }
 0x245   : > { %v1595_v41 = vpop.f32.mrf.mxu2  ;;  %v1420_v44 = vpop.f32.mrf.mxu0 }
 0x246   : > { %v1596_v16 = vadd.f32 %v1595_v41, %v4715_v9  ;;  %v1684_v32 = vpop.f32.mrf.mxu3  ;;  %v1421_v46 = vadd.f32 %v1420_v44, %v4706_v50  ;;  %v1509_v47 = vpop.f32.mrf.mxu1 }
 0x248   : > { %v1685_v48 = vadd.f32 %v1684_v32, %v1596_v16  ;;  %v1510_v49 = vadd.f32 %v1509_v47, %v1421_v46  ;;  %1459 = vmatmul.bf16.gmra.mxu0 %v4691_v53 }
 0x249   : > { %1548 = vmatmul.bf16.gmra.mxu1 %v4699_v28 }
 0x24a   : > { %v1760_v54 = vmax.f32 %v1685_v48, 0.0  ;;  %1637 = vmatmul.bf16.gmra.mxu2 %v4691_v53  ;;  %v1761_v45 = vmax.f32 %v1510_v49, 0.0 }
 0x24b   : > { %1726 = vmatmul.bf16.gmra.mxu3 %v4699_v28 }
 0x24c   : > { %v4790_v63 = vpack.c.bf16 %v1760_v54, %v1758_v52 }
 0x24d   : > { %v1598_v35 = vpop.f32.mrf.mxu2  ;;  %v1422_v4 = vpop.f32.mrf.mxu0 }
 0x24e   : > { %v1599_v18 = vadd.f32 %v1598_v35, %v4715_v9  ;;  %v1687_v3 = vpop.f32.mrf.mxu3  ;;  %v1423_v5 = vadd.f32 %v1422_v4, %v4706_v50  ;;  %v1511_v6 = vpop.f32.mrf.mxu1  ;;  %v3887_v35 = vld [vmem:[#allocation11 + $0x64] sm:$0xf]  ;;  %v3759_v4 = vld [vmem:[#allocation11 + $0xe8] sm:$0xf0] }
 0x250   : > { %v1688_v53 = vadd.f32 %v1687_v3, %v1599_v18  ;;  %v1512_v28 = vadd.f32 %v1511_v6, %v1423_v5  ;;  %v3698_v18 = vor.u32 %v3887_v35, %v3695_v51  ;;  %v3903_v3 = vld [vmem:[#allocation11 + $0xe4] sm:$0xf] }
 0x252   : > { %v1763_v11 = vmax.f32 %v1512_v28, 0.0  ;;  %v1762_v24 = vmax.f32 %v1688_v53, 0.0  ;;  %v3762_v53 = vor.u32 %v3903_v3, %v3759_v4  ;;  %2860 = vmatpush.bf16.msrb.mxu2 %v3698_v18 }
 0x254   : > { %v4794_v25 = vpack.c.bf16 %v1763_v11, %v1761_v45  ;;  %2949 = vmatpush.bf16.msrb.mxu3 %v3762_v53  ;;  %v3687_v53 = vld [vmem:[#allocation11 + $0x58] sm:$0xf0] }
 0x255   : > { %v1600_v56 = vpop.f32.mrf.mxu2  ;;  %v1425_v60 = vpop.f32.mrf.mxu0 }
 0x256   : > { %v1601_v27 = vadd.f32 %v1600_v56, %v4715_v9  ;;  %v1689_v15 = vpop.f32.mrf.mxu3  ;;  %v1426_v8 = vadd.f32 %v1425_v60, %v4706_v50  ;;  %v1514_v20 = vpop.f32.mrf.mxu1  ;;  %v3888_v56 = vld [vmem:[#allocation11 + $0x64] sm:$0xf0] }
 0x257   : > { %v3694_v12 = vor.u32 %v3888_v56, %v3693_v21 }
 0x258   : > { %v1690_v31 = vadd.f32 %v1689_v15, %v1601_v27  ;;  %v1515_v33 = vadd.f32 %v1514_v20, %v1426_v8  ;;  %1464 = vmatmul.bf16.gmra.mxu0 %v4708_v0  ;;  %v3757_v27 = vld [vmem:[#allocation11 + $0xe0] sm:$0xf]  ;;  %v3904_v15 = vld [vmem:[#allocation11 + $0xe4] sm:$0xf0] }
 0x259   : > { %1553 = vmatmul.bf16.gmra.mxu1 %v4718_v39  ;;  %v3758_v8 = vor.u32 %v3904_v15, %v3757_v27  ;;  %2682 = vmatpush.bf16.msrb.mxu0 %v3694_v12  ;;  %v3685_v15 = vld [vmem:[#allocation11 + $0x50] sm:$0xf] }
 0x25a   : > { %v1764_v22 = vmax.f32 %v1690_v31, 0.0  ;;  %1642 = vmatmul.bf16.gmra.mxu2 %v4708_v0  ;;  %v1765_v46 = vmax.f32 %v1515_v33, 0.0 }
 0x25b   : > { %1731 = vmatmul.bf16.gmra.mxu3 %v4718_v39  ;;  %2771 = vmatpush.bf16.msrb.mxu1 %v3758_v8 }
 0x25c   : > { %v4802_v7 = vpack.c.bf16 %v1764_v22, %v1762_v24 }
 0x25d   : > { %v1603_v26 = vpop.f32.mrf.mxu2  ;;  %v1427_v29 = vpop.f32.mrf.mxu0 }
 0x25e   : > { %v1604_v37 = vadd.f32 %v1603_v26, %v4715_v9  ;;  %v1692_v38 = vpop.f32.mrf.mxu3  ;;  %v1428_v41 = vadd.f32 %v1427_v29, %v4706_v50  ;;  %v1516_v16 = vpop.f32.mrf.mxu1 }
 0x260   : > { %v1693_v32 = vadd.f32 %v1692_v38, %v1604_v37  ;;  %v1517_v44 = vadd.f32 %v1516_v16, %v1428_v41 }
 0x262   : > { %v1767_v47 = vmax.f32 %v1517_v44, 0.0  ;;  %v1766_v59 = vmax.f32 %v1693_v32, 0.0 }
 0x264   : > { %v4806_v49 = vpack.c.bf16 %v1767_v47, %v1765_v46 }
 0x265   : > { %v1605_v48 = vpop.f32.mrf.mxu2  ;;  %v1430_v52 = vpop.f32.mrf.mxu0 }
 0x266   : > { %v1606_v0 = vadd.f32 %v1605_v48, %v4715_v9  ;;  %v1694_v39 = vpop.f32.mrf.mxu3  ;;  %v1431_v54 = vadd.f32 %v1430_v52, %v4706_v50  ;;  %v1519_v58 = vpop.f32.mrf.mxu1 }
 0x268   : > { %v1695_v43 = vadd.f32 %v1694_v39, %v1606_v0  ;;  %v1520_v57 = vadd.f32 %v1519_v58, %v1431_v54  ;;  %2039 = vmatmul.bf16.vlgmr.msra.gmra.mxu0 %v4722_v1 }
 0x269   : > { %2128 = vmatmul.bf16.vlgmr.msra.gmra.mxu1 %v4730_v61 }
 0x26a   : > { %v1768_v62 = vmax.f32 %v1695_v43, 0.0  ;;  %2217 = vmatmul.bf16.vlgmr.msra.gmra.mxu2 %v4722_v1  ;;  %v1769_v42 = vmax.f32 %v1520_v57, 0.0 }
 0x26b   : > { %2306 = vmatmul.bf16.vlgmr.msra.gmra.mxu3 %v4730_v61 }
 0x26c   : > { %v4814_v5 = vpack.c.bf16 %v1768_v62, %v1766_v59 }
 0x26d   : > { %v1608_v6 = vpop.f32.mrf.mxu2  ;;  %v1432_v11 = vpop.f32.mrf.mxu0 }
 0x26e   : > { %v1609_v28 = vadd.f32 %v1608_v6, %v4715_v9  ;;  %v1697_v45 = vpop.f32.mrf.mxu3  ;;  %v1433_v13 = vadd.f32 %v1432_v11, %v4706_v50  ;;  %v1521_v14 = vpop.f32.mrf.mxu1  ;;  %v3885_v6 = vld [vmem:[#allocation11 + $0x54] sm:$0xf]  ;;  %v3751_v11 = vld [vmem:[#allocation11 + $0xd8] sm:$0xf0] }
 0x270   : > { %v1698_v1 = vadd.f32 %v1697_v45, %v1609_v28  ;;  %v1522_v61 = vadd.f32 %v1521_v14, %v1433_v13  ;;  %v3690_v28 = vor.u32 %v3885_v6, %v3687_v53  ;;  %v3901_v45 = vld [vmem:[#allocation11 + $0xd4] sm:$0xf] }
 0x272   : > { %v1771_v19 = vmax.f32 %v1522_v61, 0.0  ;;  %v1770_v29 = vmax.f32 %v1698_v1, 0.0  ;;  %v3754_v1 = vor.u32 %v3901_v45, %v3751_v11  ;;  %2861 = vmatpush.bf16.msrb.mxu2 %v3690_v28 }
 0x274   : > { %v4818_v20 = vpack.c.bf16 %v1771_v19, %v1769_v42  ;;  %2950 = vmatpush.bf16.msrb.mxu3 %v3754_v1  ;;  %v3679_v1 = vld [vmem:[#allocation11 + $0x48] sm:$0xf0] }
 0x275   : > { %v1610_v60 = vpop.f32.mrf.mxu2  ;;  %v1435_v24 = vpop.f32.mrf.mxu0 }
 0x276   : > { %v1611_v31 = vadd.f32 %v1610_v60, %v4715_v9  ;;  %v1699_v33 = vpop.f32.mrf.mxu3  ;;  %v1436_v22 = vadd.f32 %v1435_v24, %v4706_v50  ;;  %v1524_v26 = vpop.f32.mrf.mxu1  ;;  %v3886_v60 = vld [vmem:[#allocation11 + $0x54] sm:$0xf0] }
 0x277   : > { %v3686_v8 = vor.u32 %v3886_v60, %v3685_v15 }
 0x278   : > { %v1700_v37 = vadd.f32 %v1699_v33, %v1611_v31  ;;  %v1525_v38 = vadd.f32 %v1524_v26, %v1436_v22  ;;  %2044 = vmatmul.bf16.gmra.mxu0 %v4734_v30  ;;  %v3749_v31 = vld [vmem:[#allocation11 + $0xd0] sm:$0xf]  ;;  %v3902_v33 = vld [vmem:[#allocation11 + $0xd4] sm:$0xf0] }
 0x279   : > { %2133 = vmatmul.bf16.gmra.mxu1 %v4742_v36  ;;  %v3750_v22 = vor.u32 %v3902_v33, %v3749_v31  ;;  %2683 = vmatpush.bf16.msrb.mxu0 %v3686_v8  ;;  %v3677_v33 = vld [vmem:[#allocation11 + $0x40] sm:$0xf] }
 0x27a   : > { %v1772_v41 = vmax.f32 %v1700_v37, 0.0  ;;  %2222 = vmatmul.bf16.gmra.mxu2 %v4734_v30  ;;  %v1773_v54 = vmax.f32 %v1525_v38, 0.0 }
 0x27b   : > { %2311 = vmatmul.bf16.gmra.mxu3 %v4742_v36  ;;  %2772 = vmatpush.bf16.msrb.mxu1 %v3750_v22 }
 0x27c   : > { %v4826_v16 = vpack.c.bf16 %v1772_v41, %v1770_v29 }
 0x27d   : > { %v1613_v32 = vpop.f32.mrf.mxu2  ;;  %v1437_v47 = vpop.f32.mrf.mxu0 }
 0x27e   : > { %v1614_v44 = vadd.f32 %v1613_v32, %v4715_v9  ;;  %v1702_v46 = vpop.f32.mrf.mxu3  ;;  %v1438_v48 = vadd.f32 %v1437_v47, %v4706_v50  ;;  %v1526_v0 = vpop.f32.mrf.mxu1 }
 0x280   : > { %v1703_v39 = vadd.f32 %v1702_v46, %v1614_v44  ;;  %v1527_v52 = vadd.f32 %v1526_v0, %v1438_v48 }
 0x282   : > { %v1775_v58 = vmax.f32 %v1527_v52, 0.0  ;;  %v1774_v3 = vmax.f32 %v1703_v39, 0.0 }
 0x284   : > { %v4830_v57 = vpack.c.bf16 %v1775_v58, %v1773_v54 }
 0x285   : > { %v1615_v43 = vpop.f32.mrf.mxu2  ;;  %v1440_v59 = vpop.f32.mrf.mxu0 }
 0x286   : > { %v1616_v30 = vadd.f32 %v1615_v43, %v4715_v9  ;;  %v1704_v36 = vpop.f32.mrf.mxu3  ;;  %v1441_v62 = vadd.f32 %v1440_v59, %v4706_v50  ;;  %v1529_v35 = vpop.f32.mrf.mxu1 }
 0x288   : > { %v1705_v51 = vadd.f32 %v1704_v36, %v1616_v30  ;;  %v1530_v18 = vadd.f32 %v1529_v35, %v1441_v62  ;;  %2049 = vmatmul.bf16.gmra.mxu0 %v4746_v10 }
 0x289   : > { %2138 = vmatmul.bf16.gmra.mxu1 %v4754_v23 }
 0x28a   : > { %v1776_v4 = vmax.f32 %v1705_v51, 0.0  ;;  %2227 = vmatmul.bf16.gmra.mxu2 %v4746_v10  ;;  %v1777_v12 = vmax.f32 %v1530_v18, 0.0 }
 0x28b   : > { %2316 = vmatmul.bf16.gmra.mxu3 %v4754_v23 }
 0x28c   : > { %v4838_v13 = vpack.c.bf16 %v1776_v4, %v1774_v3 }
 0x28d   : > { %v1618_v14 = vpop.f32.mrf.mxu2  ;;  %v1442_v19 = vpop.f32.mrf.mxu0 }
 0x28e   : > { %v1619_v61 = vadd.f32 %v1618_v14, %v4715_v9  ;;  %v1707_v42 = vpop.f32.mrf.mxu3  ;;  %v1443_v21 = vadd.f32 %v1442_v19, %v4706_v50  ;;  %v1531_v56 = vpop.f32.mrf.mxu1  ;;  %v3883_v14 = vld [vmem:[#allocation11 + $0x44] sm:$0xf]  ;;  %v3743_v19 = vld [vmem:[#allocation11 + $0xc8] sm:$0xf0] }
 0x290   : > { %v1708_v10 = vadd.f32 %v1707_v42, %v1619_v61  ;;  %v1532_v23 = vadd.f32 %v1531_v56, %v1443_v21  ;;  %v3682_v61 = vor.u32 %v3883_v14, %v3679_v1  ;;  %v3899_v42 = vld [vmem:[#allocation11 + $0xc4] sm:$0xf] }
 0x292   : > { %v1779_v27 = vmax.f32 %v1532_v23, 0.0  ;;  %v1778_v47 = vmax.f32 %v1708_v10, 0.0  ;;  %v3746_v10 = vor.u32 %v3899_v42, %v3743_v19  ;;  %2862 = vmatpush.bf16.msrb.mxu2 %v3682_v61 }
 0x294   : > { %v4842_v26 = vpack.c.bf16 %v1779_v27, %v1777_v12  ;;  %2951 = vmatpush.bf16.msrb.mxu3 %v3746_v10  ;;  %v3671_v10 = vld [vmem:[#allocation11 + $0x38] sm:$0xf0] }
 0x295   : > { %v1620_v24 = vpop.f32.mrf.mxu2  ;;  %v1445_v29 = vpop.f32.mrf.mxu0 }
 0x296   : > { %v1621_v37 = vadd.f32 %v1620_v24, %v4715_v9  ;;  %v1709_v38 = vpop.f32.mrf.mxu3  ;;  %v1446_v41 = vadd.f32 %v1445_v29, %v4706_v50  ;;  %v1534_v32 = vpop.f32.mrf.mxu1  ;;  %v3884_v24 = vld [vmem:[#allocation11 + $0x44] sm:$0xf0] }
 0x297   : > { %v3678_v22 = vor.u32 %v3884_v24, %v3677_v33 }
 0x298   : > { %v1710_v44 = vadd.f32 %v1709_v38, %v1621_v37  ;;  %v1535_v46 = vadd.f32 %v1534_v32, %v1446_v41  ;;  %2054 = vmatmul.bf16.gmra.mxu0 %v4758_v34  ;;  %v3741_v37 = vld [vmem:[#allocation11 + $0xc0] sm:$0xf]  ;;  %v3900_v38 = vld [vmem:[#allocation11 + $0xc4] sm:$0xf0] }
 0x299   : > { %2143 = vmatmul.bf16.gmra.mxu1 %v4766_v55  ;;  %v3742_v41 = vor.u32 %v3900_v38, %v3741_v37  ;;  %2684 = vmatpush.bf16.msrb.mxu0 %v3678_v22 }
 0x29a   : > { %v1780_v48 = vmax.f32 %v1710_v44, 0.0  ;;  %2232 = vmatmul.bf16.gmra.mxu2 %v4758_v34  ;;  %v1781_v62 = vmax.f32 %v1535_v46, 0.0 }
 0x29b   : > { %2321 = vmatmul.bf16.gmra.mxu3 %v4766_v55  ;;  %2773 = vmatpush.bf16.msrb.mxu1 %v3742_v41  ;;  %v3882_v41 = vld [vmem:[#allocation11 + $0x34] sm:$0xf0] }
 0x29c   : > { %v4850_v0 = vpack.c.bf16 %v1780_v48, %v1778_v47 }
 0x29d   : > { %v1623_v39 = vpop.f32.mrf.mxu2  ;;  %v1447_v58 = vpop.f32.mrf.mxu0 }
 0x29e   : > { %v1624_v52 = vadd.f32 %v1623_v39, %v4715_v9  ;;  %v1712_v54 = vpop.f32.mrf.mxu3  ;;  %v1448_v43 = vadd.f32 %v1447_v58, %v4706_v50  ;;  %v1536_v30 = vpop.f32.mrf.mxu1 }
 0x2a0   : > { %v1713_v36 = vadd.f32 %v1712_v54, %v1624_v52  ;;  %v1537_v59 = vadd.f32 %v1536_v30, %v1448_v43 }
 0x2a2   : > { %v1783_v35 = vmax.f32 %v1537_v59, 0.0  ;;  %v1782_v45 = vmax.f32 %v1713_v36, 0.0 }
 0x2a4   : > { %v4854_v18 = vpack.c.bf16 %v1783_v35, %v1781_v62 }
 0x2a5   : > { %v1625_v51 = vpop.f32.mrf.mxu2  ;;  %v1450_v3 = vpop.f32.mrf.mxu0 }
 0x2a6   : > { %v1626_v34 = vadd.f32 %v1625_v51, %v4715_v9  ;;  %v1714_v55 = vpop.f32.mrf.mxu3  ;;  %v1451_v4 = vadd.f32 %v1450_v3, %v4706_v50  ;;  %v1539_v6 = vpop.f32.mrf.mxu1 }
 0x2a8   : > { %v1715_v53 = vadd.f32 %v1714_v55, %v1626_v34  ;;  %v1540_v28 = vadd.f32 %v1539_v6, %v1451_v4  ;;  %2059 = vmatmul.bf16.gmra.mxu0 %v4770_v17 }
 0x2a9   : > { %2148 = vmatmul.bf16.gmra.mxu1 %v4778_v2 }
 0x2aa   : > { %v1784_v11 = vmax.f32 %v1715_v53, 0.0  ;;  %2237 = vmatmul.bf16.gmra.mxu2 %v4770_v17  ;;  %v1785_v8 = vmax.f32 %v1540_v28, 0.0 }
 0x2ab   : > { %2326 = vmatmul.bf16.gmra.mxu3 %v4778_v2 }
 0x2ac   : > { %v4862_v21 = vpack.c.bf16 %v1784_v11, %v1782_v45 }
 0x2ad   : > { %v1628_v56 = vpop.f32.mrf.mxu2  ;;  %v1452_v27 = vpop.f32.mrf.mxu0 }
 0x2ae   : > { %v1629_v23 = vadd.f32 %v1628_v56, %v4715_v9  ;;  %v1717_v12 = vpop.f32.mrf.mxu3  ;;  %v1453_v15 = vadd.f32 %v1452_v27, %v4706_v50  ;;  %v1541_v60 = vpop.f32.mrf.mxu1  ;;  %v3881_v56 = vld [vmem:[#allocation11 + $0x34] sm:$0xf]  ;;  %v3735_v27 = vld [vmem:[#allocation11 + $0xb8] sm:$0xf0] }
 0x2b0   : > { %v1718_v17 = vadd.f32 %v1717_v12, %v1629_v23  ;;  %v1542_v2 = vadd.f32 %v1541_v60, %v1453_v15  ;;  %v3674_v23 = vor.u32 %v3881_v56, %v3671_v10  ;;  %v3897_v12 = vld [vmem:[#allocation11 + $0xb4] sm:$0xf] }
 0x2b2   : > { %v1787_v31 = vmax.f32 %v1542_v2, 0.0  ;;  %v1786_v58 = vmax.f32 %v1718_v17, 0.0  ;;  %v3738_v17 = vor.u32 %v3897_v12, %v3735_v27  ;;  %2863 = vmatpush.bf16.msrb.mxu2 %v3674_v23 }
 0x2b4   : > { %v4866_v32 = vpack.c.bf16 %v1787_v31, %v1785_v8  ;;  %2952 = vmatpush.bf16.msrb.mxu3 %v3738_v17 }
 0x2b5   : > { %v1630_v29 = vpop.f32.mrf.mxu2  ;;  %v1455_v47 = vpop.f32.mrf.mxu0 }
 0x2b6   : > { %v1631_v44 = vadd.f32 %v1630_v29, %v4715_v9  ;;  %v1719_v46 = vpop.f32.mrf.mxu3  ;;  %v1456_v48 = vadd.f32 %v1455_v47, %v4706_v50  ;;  %v1544_v39 = vpop.f32.mrf.mxu1  ;;  %v3669_v29 = vld [vmem:[#allocation11 + $0x30] sm:$0xf] }
 0x2b8   : > { %v1720_v52 = vadd.f32 %v1719_v46, %v1631_v44  ;;  %v1545_v54 = vadd.f32 %v1544_v39, %v1456_v48  ;;  %2064 = vmatmul.bf16.gmra.mxu0 %v4782_v40  ;;  %v3733_v44 = vld [vmem:[#allocation11 + $0xb0] sm:$0xf] }
 0x2b9   : > { %2153 = vmatmul.bf16.gmra.mxu1 %v4790_v63 }
 0x2ba   : > { %v1788_v43 = vmax.f32 %v1720_v52, 0.0  ;;  %2242 = vmatmul.bf16.gmra.mxu2 %v4782_v40  ;;  %v1789_v4 = vmax.f32 %v1545_v54, 0.0  ;;  %v3670_v52 = vor.u32 %v3882_v41, %v3669_v29  ;;  %v3898_v54 = vld [vmem:[#allocation11 + $0xb4] sm:$0xf0] }
 0x2bb   : > { %2331 = vmatmul.bf16.gmra.mxu3 %v4790_v63 }
 0x2bc   : > { %v4874_v30 = vpack.c.bf16 %v1788_v43, %v1786_v58  ;;  %2685 = vmatpush.bf16.msrb.mxu0 %v3670_v52 }
 0x2bd   : > { %v1633_v36 = vpop.f32.mrf.mxu2  ;;  %v1457_v35 = vpop.f32.mrf.mxu0 }
 0x2be   : > { %v1634_v59 = vadd.f32 %v1633_v36, %v4715_v9  ;;  %v1722_v62 = vpop.f32.mrf.mxu3  ;;  %v1458_v51 = vadd.f32 %v1457_v35, %v4706_v50  ;;  %v1546_v34 = vpop.f32.mrf.mxu1  ;;  %v3734_v36 = vor.u32 %v3898_v54, %v3733_v44  ;;  %v3725_v54 = vld [vmem:[#allocation11 + $0xa0] sm:$0xf] }
 0x2c0   : > { %v1723_v55 = vadd.f32 %v1722_v62, %v1634_v59  ;;  %v1547_v3 = vadd.f32 %v1546_v34, %v1458_v51  ;;  %2774 = vmatpush.bf16.msrb.mxu1 %v3734_v36 }
 0x2c2   : > { %v1791_v6 = vmax.f32 %v1547_v3, 0.0  ;;  %v1790_v42 = vmax.f32 %v1723_v55, 0.0 }
 0x2c4   : > { %v4878_v28 = vpack.c.bf16 %v1791_v6, %v1789_v4 }
 0x2c5   : > { %v1635_v53 = vpop.f32.mrf.mxu2  ;;  %v1460_v45 = vpop.f32.mrf.mxu0 }
 0x2c6   : > { %v1636_v40 = vadd.f32 %v1635_v53, %v4715_v9  ;;  %v1724_v63 = vpop.f32.mrf.mxu3  ;;  %v1461_v11 = vadd.f32 %v1460_v45, %v4706_v50  ;;  %v1549_v14 = vpop.f32.mrf.mxu1  ;;  %v1865_v45 = vld [vmem:[%s5317_s6] sm:$0x3] }
 0x2c7   : > { %v4914_v17 = vperm.slane %v1865_v45, 1 }
 0x2c8   : > { %v1725_v1 = vadd.f32 %v1724_v63, %v1636_v40  ;;  %v1550_v61 = vadd.f32 %v1549_v14, %v1461_v11  ;;  %2069 = vmatmul.bf16.gmra.mxu0 %v4794_v25 }
 0x2c9   : > { %2158 = vmatmul.bf16.gmra.mxu1 %v4802_v7 }
 0x2ca   : > { %v1792_v19 = vmax.f32 %v1725_v1, 0.0  ;;  %2247 = vmatmul.bf16.gmra.mxu2 %v4794_v25  ;;  %v1793_v22 = vmax.f32 %v1550_v61, 0.0  ;;  %v4905_v1 = vperm.slane %v1865_v45, 0 }
 0x2cb   : > { %2336 = vmatmul.bf16.gmra.mxu3 %v4802_v7 }
 0x2cc   : > { %v4886_v15 = vpack.c.bf16 %v1792_v19, %v1790_v42 }
 0x2cd   : > { %v1638_v60 = vpop.f32.mrf.mxu2  ;;  %v1462_v31 = vpop.f32.mrf.mxu0 }
 0x2ce   : > { %v1639_v2 = vadd.f32 %v1638_v60, %v4715_v9  ;;  %v1727_v8 = vpop.f32.mrf.mxu3  ;;  %v1463_v33 = vadd.f32 %v1462_v31, %v4706_v50  ;;  %v1551_v24 = vpop.f32.mrf.mxu1  ;;  %v3895_v31 = vld [vmem:[#allocation11 + $0xa4] sm:$0xf] }
 0x2d0   : > { %v1728_v25 = vadd.f32 %v1727_v8, %v1639_v2  ;;  %v1552_v7 = vadd.f32 %v1551_v24, %v1463_v33  ;;  %v3663_v2 = vld [vmem:[#allocation11 + $0x28] sm:$0xf0] }
 0x2d1   : > { %v3727_v33 = vld [vmem:[#allocation11 + $0xa8] sm:$0xf0] }
 0x2d2   : > { %v1795_v37 = vmax.f32 %v1552_v7, 0.0  ;;  %v1794_v35 = vmax.f32 %v1728_v25, 0.0  ;;  %v3730_v7 = vor.u32 %v3895_v31, %v3727_v33 }
 0x2d4   : > { %v4890_v46 = vpack.c.bf16 %v1795_v37, %v1793_v22  ;;  %2953 = vmatpush.bf16.msrb.mxu3 %v3730_v7  ;;  %v3655_v7 = vld [vmem:[#allocation11 + $0x18] sm:$0xf0] }
 0x2d5   : > { %v1640_v38 = vpop.f32.mrf.mxu2  ;;  %v1465_v39 = vpop.f32.mrf.mxu0 }
 0x2d6   : > { %v1641_v47 = vadd.f32 %v1640_v38, %v4715_v9  ;;  %v1729_v48 = vpop.f32.mrf.mxu3  ;;  %v1466_v58 = vadd.f32 %v1465_v39, %v4706_v50  ;;  %v1554_v43 = vpop.f32.mrf.mxu1  ;;  %v3880_v39 = vld [vmem:[#allocation11 + $0x24] sm:$0xf0] }
 0x2d8   : > { %v1730_v59 = vadd.f32 %v1729_v48, %v1641_v47  ;;  %v1555_v62 = vadd.f32 %v1554_v43, %v1466_v58  ;;  %2074 = vmatmul.bf16.gmra.mxu0 %v4806_v49  ;;  %v3661_v48 = vld [vmem:[#allocation11 + $0x20] sm:$0xf]  ;;  %v3896_v58 = vld [vmem:[#allocation11 + $0xa4] sm:$0xf0] }
 0x2d9   : > { %2163 = vmatmul.bf16.gmra.mxu1 %v4814_v5  ;;  %v3662_v52 = vor.u32 %v3880_v39, %v3661_v48 }
 0x2da   : > { %v1796_v51 = vmax.f32 %v1730_v59, 0.0  ;;  %2252 = vmatmul.bf16.gmra.mxu2 %v4806_v49  ;;  %v1797_v14 = vmax.f32 %v1555_v62, 0.0  ;;  %v3726_v59 = vor.u32 %v3896_v58, %v3725_v54  ;;  %v3653_v58 = vld [vmem:[#allocation11 + $0x10] sm:$0xf] }
 0x2db   : > { %2341 = vmatmul.bf16.gmra.mxu3 %v4814_v5  ;;  %2686 = vmatpush.bf16.msrb.mxu0 %v3662_v52 }
 0x2dc   : > { %v4898_v34 = vpack.c.bf16 %v1796_v51, %v1794_v35  ;;  %2775 = vmatpush.bf16.msrb.mxu1 %v3726_v59 }
 0x2dd   : > { %v1643_v55 = vpop.f32.mrf.mxu2  ;;  %v1467_v6 = vpop.f32.mrf.mxu0 }
 0x2de   : > { %v1644_v3 = vadd.f32 %v1643_v55, %v4715_v9  ;;  %v1732_v4 = vpop.f32.mrf.mxu3  ;;  %v1468_v53 = vadd.f32 %v1467_v6, %v4706_v50  ;;  %v1556_v40 = vpop.f32.mrf.mxu1 }
 0x2e0   : > { %v1733_v63 = vadd.f32 %v1732_v4, %v1644_v3  ;;  %v1557_v11 = vadd.f32 %v1556_v40, %v1468_v53 }
 0x2e2   : > { %v1799_v49 = vmax.f32 %v1557_v11, 0.0  ;;  %v1798_v27 = vmax.f32 %v1733_v63, 0.0 }
 0x2e4   : > { %v4907_v61 = vpack.c.bf16 %v1799_v49, %v1797_v14 }
 0x2e5   : > { %v1645_v5 = vpop.f32.mrf.mxu2  ;;  %v2040_v56 = vpop.f32.mrf.mxu0 }
 0x2e6   : > { %v1646_v42 = vadd.f32 %v1645_v5, %v4715_v9  ;;  %v1734_v19 = vpop.f32.mrf.mxu3  ;;  %v2041_v50 = vadd.f32 %v2040_v56, %v4905_v1  ;;  %v2129_v10 = vpop.f32.mrf.mxu1  ;;  %v3879_v9 = vld [vmem:[#allocation11 + $0x24] sm:$0xf] }
 0x2e7   : > { %v3666_v8 = vor.u32 %v3879_v9, %v3663_v2 }
 0x2e8   : > { %v1735_v23 = vadd.f32 %v1734_v19, %v1646_v42  ;;  %v2130_v12 = vadd.f32 %v2129_v10, %v2041_v50  ;;  %2079 = vmatmul.bf16.gmra.mxu0 %v4818_v20 }
 0x2e9   : > { %2168 = vmatmul.bf16.gmra.mxu1 %v4826_v16  ;;  %2864 = vmatpush.bf16.msrb.mxu2 %v3666_v8 }
 0x2ea   : > { %v1800_v60 = vmax.f32 %v1735_v23, 0.0  ;;  %2257 = vmatmul.bf16.gmra.mxu2 %v4818_v20  ;;  %v2387_v44 = vmax.f32 %v2130_v12, 0.0 }
 0x2eb   : > { %2346 = vmatmul.bf16.gmra.mxu3 %v4826_v16 }
 0x2ec   : > { %v4917_v24 = vpack.c.bf16 %v1800_v60, %v1798_v27 }
 0x2ed   : > { %v2218_v25 = vpop.f32.mrf.mxu2  ;;  %v2042_v38 = vpop.f32.mrf.mxu0 }
 0x2ee   : > { %v2219_v22 = vadd.f32 %v2218_v25, %v4914_v17  ;;  %v2307_v37 = vpop.f32.mrf.mxu3  ;;  %v2043_v20 = vadd.f32 %v2042_v38, %v4905_v1  ;;  %v2131_v29 = vpop.f32.mrf.mxu1  ;;  %v3877_v25 = vld [vmem:[#allocation11 + $0x14] sm:$0xf]  ;;  %v3719_v38 = vld [vmem:[#allocation11 + $0x98] sm:$0xf0] }
 0x2f0   : > { %v2308_v41 = vadd.f32 %v2307_v37, %v2219_v22  ;;  %v2132_v16 = vadd.f32 %v2131_v29, %v2043_v20  ;;  %v3658_v22 = vor.u32 %v3877_v25, %v3655_v7  ;;  %v3893_v37 = vld [vmem:[#allocation11 + $0x94] sm:$0xf] }
 0x2f2   : > { %v2389_v47 = vmax.f32 %v2132_v16, 0.0  ;;  %v2388_v53 = vmax.f32 %v2308_v41, 0.0  ;;  %v3722_v41 = vor.u32 %v3893_v37, %v3719_v38  ;;  %2865 = vmatpush.bf16.msrb.mxu2 %v3658_v22 }
 0x2f4   : > { %v4921_v43 = vpack.c.bf16 %v2389_v47, %v2387_v44  ;;  %2954 = vmatpush.bf16.msrb.mxu3 %v3722_v41  ;;  %v3647_v41 = vld [vmem:[#allocation11 + $0x8] sm:$0xf0] }
 0x2f5   : > { %v2220_v36 = vpop.f32.mrf.mxu2  ;;  %v2045_v51 = vpop.f32.mrf.mxu0 }
 0x2f6   : > { %v2221_v62 = vadd.f32 %v2220_v36, %v4914_v17  ;;  %v2309_v35 = vpop.f32.mrf.mxu3  ;;  %v2046_v55 = vadd.f32 %v2045_v51, %v4905_v1  ;;  %v2134_v3 = vpop.f32.mrf.mxu1  ;;  %v3878_v36 = vld [vmem:[#allocation11 + $0x14] sm:$0xf0] }
 0x2f7   : > { %v3654_v59 = vor.u32 %v3878_v36, %v3653_v58 }
 0x2f8   : > { %v2310_v4 = vadd.f32 %v2309_v35, %v2221_v62  ;;  %v2135_v6 = vadd.f32 %v2134_v3, %v2046_v55  ;;  %2084 = vmatmul.bf16.gmra.mxu0 %v4830_v57  ;;  %v3717_v62 = vld [vmem:[#allocation11 + $0x90] sm:$0xf]  ;;  %v3894_v35 = vld [vmem:[#allocation11 + $0x94] sm:$0xf0] }
 0x2f9   : > { %2173 = vmatmul.bf16.gmra.mxu1 %v4838_v13  ;;  %v3718_v55 = vor.u32 %v3894_v35, %v3717_v62  ;;  %2687 = vmatpush.bf16.msrb.mxu0 %v3654_v59  ;;  %v3645_v35 = vld [vmem:[#allocation11] sm:$0xf] }
 0x2fa   : > { %v2390_v40 = vmax.f32 %v2310_v4, 0.0  ;;  %2262 = vmatmul.bf16.gmra.mxu2 %v4830_v57  ;;  %v2391_v50 = vmax.f32 %v2135_v6, 0.0 }
 0x2fb   : > { %2351 = vmatmul.bf16.gmra.mxu3 %v4838_v13  ;;  %2776 = vmatpush.bf16.msrb.mxu1 %v3718_v55 }
 0x2fc   : > { %v4929_v63 = vpack.c.bf16 %v2390_v40, %v2388_v53 }
 0x2fd   : > { %v2223_v45 = vpop.f32.mrf.mxu2  ;;  %v2047_v49 = vpop.f32.mrf.mxu0 }
 0x2fe   : > { %v2224_v11 = vadd.f32 %v2223_v45, %v4914_v17  ;;  %v2312_v14 = vpop.f32.mrf.mxu3  ;;  %v2048_v5 = vadd.f32 %v2047_v49, %v4905_v1  ;;  %v2136_v42 = vpop.f32.mrf.mxu1 }
 0x300   : > { %v2313_v19 = vadd.f32 %v2312_v14, %v2224_v11  ;;  %v2137_v56 = vadd.f32 %v2136_v42, %v2048_v5 }
 0x302   : > { %v2393_v10 = vmax.f32 %v2137_v56, 0.0  ;;  %v2392_v31 = vmax.f32 %v2313_v19, 0.0 }
 0x304   : > { %v4933_v12 = vpack.c.bf16 %v2393_v10, %v2391_v50 }
 0x305   : > { %v2225_v23 = vpop.f32.mrf.mxu2  ;;  %v2050_v27 = vpop.f32.mrf.mxu0 }
 0x306   : > { %v2226_v57 = vadd.f32 %v2225_v23, %v4914_v17  ;;  %v2314_v13 = vpop.f32.mrf.mxu3  ;;  %v2051_v60 = vadd.f32 %v2050_v27, %v4905_v1  ;;  %v2139_v9 = vpop.f32.mrf.mxu1 }
 0x308   : > { %v2315_v2 = vadd.f32 %v2314_v13, %v2226_v57  ;;  %v2140_v8 = vadd.f32 %v2139_v9, %v2051_v60  ;;  %2089 = vmatmul.bf16.gmra.mxu0 %v4842_v26 }
 0x309   : > { %2178 = vmatmul.bf16.gmra.mxu1 %v4850_v0 }
 0x30a   : > { %v2394_v33 = vmax.f32 %v2315_v2, 0.0  ;;  %2267 = vmatmul.bf16.gmra.mxu2 %v4842_v26  ;;  %v2395_v52 = vmax.f32 %v2140_v8, 0.0 }
 0x30b   : > { %2356 = vmatmul.bf16.gmra.mxu3 %v4850_v0 }
 0x30c   : > { %v4941_v20 = vpack.c.bf16 %v2394_v33, %v2392_v31 }
 0x30d   : > { %v2228_v29 = vpop.f32.mrf.mxu2  ;;  %v2052_v47 = vpop.f32.mrf.mxu0 }
 0x30e   : > { %v2229_v16 = vadd.f32 %v2228_v29, %v4914_v17  ;;  %v2317_v44 = vpop.f32.mrf.mxu3  ;;  %v2053_v48 = vadd.f32 %v2052_v47, %v4905_v1  ;;  %v2141_v39 = vpop.f32.mrf.mxu1  ;;  %v3875_v29 = vld [vmem:[#allocation11 + $0x4] sm:$0xf]  ;;  %v3711_v47 = vld [vmem:[#allocation11 + $0x88] sm:$0xf0] }
 0x310   : > { %v2318_v26 = vadd.f32 %v2317_v44, %v2229_v16  ;;  %v2142_v0 = vadd.f32 %v2141_v39, %v2053_v48  ;;  %v3650_v16 = vor.u32 %v3875_v29, %v3647_v41  ;;  %v3891_v44 = vld [vmem:[#allocation11 + $0x84] sm:$0xf] }
 0x312   : > { %v2397_v54 = vmax.f32 %v2142_v0, 0.0  ;;  %v2396_v49 = vmax.f32 %v2318_v26, 0.0  ;;  %v3714_v26 = vor.u32 %v3891_v44, %v3711_v47  ;;  %2866 = vmatpush.bf16.msrb.mxu2 %v3650_v16 }
 0x314   : > { %v4945_v3 = vpack.c.bf16 %v2397_v54, %v2395_v52  ;;  %2955 = vmatpush.bf16.msrb.mxu3 %v3714_v26 }
 0x315   : > { %v2230_v51 = vpop.f32.mrf.mxu2  ;;  %v2055_v53 = vpop.f32.mrf.mxu0 }
 0x316   : > { %v2231_v4 = vadd.f32 %v2230_v51, %v4914_v17  ;;  %v2319_v6 = vpop.f32.mrf.mxu3  ;;  %v2056_v40 = vadd.f32 %v2055_v53, %v4905_v1  ;;  %v2144_v45 = vpop.f32.mrf.mxu1  ;;  %v3876_v51 = vld [vmem:[#allocation11 + $0x4] sm:$0xf0] }
 0x317   : > { %v3646_v55 = vor.u32 %v3876_v51, %v3645_v35 }
 0x318   : > { %v2320_v11 = vadd.f32 %v2319_v6, %v2231_v4  ;;  %v2145_v14 = vadd.f32 %v2144_v45, %v2056_v40  ;;  %2094 = vmatmul.bf16.gmra.mxu0 %v4854_v18  ;;  %v3709_v4 = vld [vmem:[#allocation11 + $0x80] sm:$0xf]  ;;  %v3892_v6 = vld [vmem:[#allocation11 + $0x84] sm:$0xf0] }
 0x319   : > { %2183 = vmatmul.bf16.gmra.mxu1 %v4862_v21  ;;  %v3710_v40 = vor.u32 %v3892_v6, %v3709_v4  ;;  %2688 = vmatpush.bf16.msrb.mxu0 %v3646_v55 }
 0x31a   : > { %v2398_v5 = vmax.f32 %v2320_v11, 0.0  ;;  %2272 = vmatmul.bf16.gmra.mxu2 %v4854_v18  ;;  %v2399_v60 = vmax.f32 %v2145_v14, 0.0 }
 0x31b   : > { %2361 = vmatmul.bf16.gmra.mxu3 %v4862_v21  ;;  %2777 = vmatpush.bf16.msrb.mxu1 %v3710_v40 }
 0x31c   : > { %v4953_v42 = vpack.c.bf16 %v2398_v5, %v2396_v49 }
 0x31d   : > { %v2233_v19 = vpop.f32.mrf.mxu2  ;;  %v2057_v10 = vpop.f32.mrf.mxu0 }
 0x31e   : > { %v2234_v56 = vadd.f32 %v2233_v19, %v4914_v17  ;;  %v2322_v50 = vpop.f32.mrf.mxu3  ;;  %v2058_v23 = vadd.f32 %v2057_v10, %v4905_v1  ;;  %v2146_v57 = vpop.f32.mrf.mxu1 }
 0x320   : > { %v2323_v13 = vadd.f32 %v2322_v50, %v2234_v56  ;;  %v2147_v27 = vadd.f32 %v2146_v57, %v2058_v23 }
 0x322   : > { %v2401_v9 = vmax.f32 %v2147_v27, 0.0  ;;  %v2400_v37 = vmax.f32 %v2323_v13, 0.0 }
 0x324   : > { %v4957_v8 = vpack.c.bf16 %v2401_v9, %v2399_v60 }
 0x325   : > { %v2235_v2 = vpop.f32.mrf.mxu2  ;;  %v2060_v31 = vpop.f32.mrf.mxu0 }
 0x326   : > { %v2236_v18 = vadd.f32 %v2235_v2, %v4914_v17  ;;  %v2324_v21 = vpop.f32.mrf.mxu3  ;;  %v2061_v33 = vadd.f32 %v2060_v31, %v4905_v1  ;;  %v2149_v25 = vpop.f32.mrf.mxu1 }
 0x328   : > { %v2325_v7 = vadd.f32 %v2324_v21, %v2236_v18  ;;  %v2150_v22 = vadd.f32 %v2149_v25, %v2061_v33  ;;  %2099 = vmatmul.bf16.gmra.mxu0 %v4866_v32 }
 0x329   : > { %2188 = vmatmul.bf16.gmra.mxu1 %v4874_v30 }
 0x32a   : > { %v2402_v38 = vmax.f32 %v2325_v7, 0.0  ;;  %2277 = vmatmul.bf16.gmra.mxu2 %v4866_v32  ;;  %v2403_v59 = vmax.f32 %v2150_v22, 0.0 }
 0x32b   : > { %2366 = vmatmul.bf16.gmra.mxu3 %v4874_v30 }
 0x32c   : > { %v4965_v48 = vpack.c.bf16 %v2402_v38, %v2400_v37 }
 0x32d   : > { %v2238_v39 = vpop.f32.mrf.mxu2  ;;  %v2062_v54 = vpop.f32.mrf.mxu0 }
 0x32e   : > { %v2239_v0 = vadd.f32 %v2238_v39, %v4914_v17  ;;  %v2327_v52 = vpop.f32.mrf.mxu3  ;;  %v2063_v58 = vadd.f32 %v2062_v54, %v4905_v1  ;;  %v2151_v36 = vpop.f32.mrf.mxu1 }
 0x330   : > { %v2328_v32 = vadd.f32 %v2327_v52, %v2239_v0  ;;  %v2152_v30 = vadd.f32 %v2151_v36, %v2063_v58 }
 0x332   : > { %v2405_v62 = vmax.f32 %v2152_v30, 0.0  ;;  %v2404_v10 = vmax.f32 %v2328_v32, 0.0 }
 0x334   : > { %v4969_v45 = vpack.c.bf16 %v2405_v62, %v2403_v59 }
 0x335   : > { %v2240_v53 = vpop.f32.mrf.mxu2  ;;  %v2065_v49 = vpop.f32.mrf.mxu0 }
 0x336   : > { %v2241_v11 = vadd.f32 %v2240_v53, %v4914_v17  ;;  %v2329_v14 = vpop.f32.mrf.mxu3  ;;  %v2066_v5 = vadd.f32 %v2065_v49, %v4905_v1  ;;  %v2154_v19 = vpop.f32.mrf.mxu1 }
 0x338   : > { %v2330_v56 = vadd.f32 %v2329_v14, %v2241_v11  ;;  %v2155_v50 = vadd.f32 %v2154_v19, %v2066_v5  ;;  %2104 = vmatmul.bf16.gmra.mxu0 %v4878_v28 }
 0x339   : > { %2193 = vmatmul.bf16.gmra.mxu1 %v4886_v15 }
 0x33a   : > { %v2406_v23 = vmax.f32 %v2330_v56, 0.0  ;;  %2282 = vmatmul.bf16.gmra.mxu2 %v4878_v28  ;;  %v2407_v33 = vmax.f32 %v2155_v50, 0.0 }
 0x33b   : > { %2371 = vmatmul.bf16.gmra.mxu3 %v4886_v15 }
 0x33c   : > { %v4977_v57 = vpack.c.bf16 %v2406_v23, %v2404_v10 }
 0x33d   : > { %v2243_v13 = vpop.f32.mrf.mxu2  ;;  %v2067_v9 = vpop.f32.mrf.mxu0 }
 0x33e   : > { %v2244_v27 = vadd.f32 %v2243_v13, %v4914_v17  ;;  %v2332_v60 = vpop.f32.mrf.mxu3  ;;  %v2068_v2 = vadd.f32 %v2067_v9, %v4905_v1  ;;  %v2156_v18 = vpop.f32.mrf.mxu1 }
 0x340   : > { %v2333_v21 = vadd.f32 %v2332_v60, %v2244_v27  ;;  %v2157_v31 = vadd.f32 %v2156_v18, %v2068_v2 }
 0x342   : > { %v2409_v25 = vmax.f32 %v2157_v31, 0.0  ;;  %v2408_v44 = vmax.f32 %v2333_v21, 0.0 }
 0x344   : > { %v4981_v22 = vpack.c.bf16 %v2409_v25, %v2407_v33 }
 0x345   : > { %v2245_v7 = vpop.f32.mrf.mxu2  ;;  %v2070_v37 = vpop.f32.mrf.mxu0 }
 0x346   : > { %v2246_v28 = vadd.f32 %v2245_v7, %v4914_v17  ;;  %v2334_v15 = vpop.f32.mrf.mxu3  ;;  %v2071_v38 = vadd.f32 %v2070_v37, %v4905_v1  ;;  %v2159_v29 = vpop.f32.mrf.mxu1 }
 0x348   : > { %v2335_v41 = vadd.f32 %v2334_v15, %v2246_v28  ;;  %v2160_v16 = vadd.f32 %v2159_v29, %v2071_v38  ;;  %2109 = vmatmul.bf16.gmra.mxu0 %v4890_v46 }
 0x349   : > { %2198 = vmatmul.bf16.gmra.mxu1 %v4898_v34 }
 0x34a   : > { %v2410_v47 = vmax.f32 %v2335_v41, 0.0  ;;  %2287 = vmatmul.bf16.gmra.mxu2 %v4890_v46  ;;  %v2411_v59 = vmax.f32 %v2160_v16, 0.0 }
 0x34b   : > { %2376 = vmatmul.bf16.gmra.mxu3 %v4898_v34 }
 0x34c   : > { %v4989_v39 = vpack.c.bf16 %v2410_v47, %v2408_v44 }
 0x34d   : > { %v2248_v26 = vpop.f32.mrf.mxu2  ;;  %v2072_v54 = vpop.f32.mrf.mxu0 }
 0x34e   : > { %v2249_v0 = vadd.f32 %v2248_v26, %v4914_v17  ;;  %v2337_v52 = vpop.f32.mrf.mxu3  ;;  %v2073_v58 = vadd.f32 %v2072_v54, %v4905_v1  ;;  %v2161_v36 = vpop.f32.mrf.mxu1 }
 0x350   : > { %v2338_v32 = vadd.f32 %v2337_v52, %v2249_v0  ;;  %v2162_v30 = vadd.f32 %v2161_v36, %v2073_v58 }
 0x352   : > { %v2413_v62 = vmax.f32 %v2162_v30, 0.0  ;;  %v2412_v11 = vmax.f32 %v2338_v32, 0.0 }
 0x354   : > { %v4993_v51 = vpack.c.bf16 %v2413_v62, %v2411_v59 }
 0x355   : > { %v2250_v35 = vpop.f32.mrf.mxu2  ;;  %v2075_v55 = vpop.f32.mrf.mxu0 }
 0x356   : > { %v2251_v46 = vadd.f32 %v2250_v35, %v4914_v17  ;;  %v2339_v34 = vpop.f32.mrf.mxu3  ;;  %v2076_v4 = vadd.f32 %v2075_v55, %v4905_v1  ;;  %v2164_v6 = vpop.f32.mrf.mxu1 }
 0x358   : > { %v2340_v53 = vadd.f32 %v2339_v34, %v2251_v46  ;;  %v2165_v40 = vadd.f32 %v2164_v6, %v2076_v4  ;;  %2114 = vmatmul.bf16.gmra.mxu0 %v4907_v61 }
 0x359   : > { %2203 = vmatmul.bf16.gmra.mxu1 %v4917_v24 }
 0x35a   : > { %v2414_v14 = vmax.f32 %v2340_v53, 0.0  ;;  %2292 = vmatmul.bf16.gmra.mxu2 %v4907_v61  ;;  %v2415_v60 = vmax.f32 %v2165_v40, 0.0 }
 0x35b   : > { %2381 = vmatmul.bf16.gmra.mxu3 %v4917_v24 }
 0x35c   : > { %v5001_v49 = vpack.c.bf16 %v2414_v14, %v2412_v11 }
 0x35d   : > { %v2253_v5 = vpop.f32.mrf.mxu2  ;;  %v2077_v50 = vpop.f32.mrf.mxu0 }
 0x35e   : > { %v2254_v19 = vadd.f32 %v2253_v5, %v4914_v17  ;;  %v2342_v56 = vpop.f32.mrf.mxu3  ;;  %v2078_v10 = vadd.f32 %v2077_v50, %v4905_v1  ;;  %v2166_v23 = vpop.f32.mrf.mxu1 }
 0x360   : > { %v2343_v13 = vadd.f32 %v2342_v56, %v2254_v19  ;;  %v2167_v27 = vadd.f32 %v2166_v23, %v2078_v10 }
 0x362   : > { %v2417_v9 = vmax.f32 %v2167_v27, 0.0  ;;  %v2416_v28 = vmax.f32 %v2343_v13, 0.0 }
 0x364   : > { %v5005_v18 = vpack.c.bf16 %v2417_v9, %v2415_v60 }
 0x365   : > { %v2255_v2 = vpop.f32.mrf.mxu2  ;;  %v2080_v21 = vpop.f32.mrf.mxu0 }
 0x366   : > { %v2256_v61 = vadd.f32 %v2255_v2, %v4914_v17  ;;  %v2344_v24 = vpop.f32.mrf.mxu3  ;;  %v2081_v31 = vadd.f32 %v2080_v21, %v4905_v1  ;;  %v2169_v33 = vpop.f32.mrf.mxu1 }
 0x368   : > { %v2345_v25 = vadd.f32 %v2344_v24, %v2256_v61  ;;  %v2170_v7 = vadd.f32 %v2169_v33, %v2081_v31  ;;  %2689 = vmatmul.bf16.vlgmr.msrb.gmra.mxu0 %v4921_v43 }
 0x369   : > { %2778 = vmatmul.bf16.vlgmr.msrb.gmra.mxu1 %v4929_v63 }
 0x36a   : > { %v2418_v15 = vmax.f32 %v2345_v25, 0.0  ;;  %2867 = vmatmul.bf16.vlgmr.msrb.gmra.mxu2 %v4921_v43  ;;  %v2419_v52 = vmax.f32 %v2170_v7, 0.0 }
 0x36b   : > { %2956 = vmatmul.bf16.vlgmr.msrb.gmra.mxu3 %v4929_v63 }
 0x36c   : > { %v5013_v37 = vpack.c.bf16 %v2418_v15, %v2416_v28 }
 0x36d   : > { %v2258_v38 = vpop.f32.mrf.mxu2  ;;  %v2082_v16 = vpop.f32.mrf.mxu0 }
 0x36e   : > { %v2259_v29 = vadd.f32 %v2258_v38, %v4914_v17  ;;  %v2347_v41 = vpop.f32.mrf.mxu3  ;;  %v2083_v44 = vadd.f32 %v2082_v16, %v4905_v1  ;;  %v2171_v47 = vpop.f32.mrf.mxu1 }
 0x370   : > { %v2348_v26 = vadd.f32 %v2347_v41, %v2259_v29  ;;  %v2172_v0 = vadd.f32 %v2171_v47, %v2083_v44 }
 0x372   : > { %v2421_v54 = vmax.f32 %v2172_v0, 0.0  ;;  %v2420_v46 = vmax.f32 %v2348_v26, 0.0 }
 0x374   : > { %v5017_v36 = vpack.c.bf16 %v2421_v54, %v2419_v52 }
 0x375   : > { %v2260_v58 = vpop.f32.mrf.mxu2  ;;  %v2085_v32 = vpop.f32.mrf.mxu0 }
 0x376   : > { %v2261_v43 = vadd.f32 %v2260_v58, %v4914_v17  ;;  %v2349_v63 = vpop.f32.mrf.mxu3  ;;  %v2086_v30 = vadd.f32 %v2085_v32, %v4905_v1  ;;  %v2174_v59 = vpop.f32.mrf.mxu1 }
 0x378   : > { %v2350_v62 = vadd.f32 %v2349_v63, %v2261_v43  ;;  %v2175_v35 = vadd.f32 %v2174_v59, %v2086_v30  ;;  %2694 = vmatmul.bf16.gmra.mxu0 %v4933_v12 }
 0x379   : > { %2783 = vmatmul.bf16.gmra.mxu1 %v4941_v20 }
 0x37a   : > { %v2422_v34 = vmax.f32 %v2350_v62, 0.0  ;;  %2872 = vmatmul.bf16.gmra.mxu2 %v4933_v12  ;;  %v2423_v56 = vmax.f32 %v2175_v35, 0.0 }
 0x37b   : > { %2961 = vmatmul.bf16.gmra.mxu3 %v4941_v20 }
 0x37c   : > { %v5025_v55 = vpack.c.bf16 %v2422_v34, %v2420_v46 }
 0x37d   : > { %v2263_v4 = vpop.f32.mrf.mxu2  ;;  %v2087_v40 = vpop.f32.mrf.mxu0 }
 0x37e   : > { %v2264_v6 = vadd.f32 %v2263_v4, %v4914_v17  ;;  %v2352_v53 = vpop.f32.mrf.mxu3  ;;  %v2088_v11 = vadd.f32 %v2087_v40, %v4905_v1  ;;  %v2176_v14 = vpop.f32.mrf.mxu1 }
 0x380   : > { %v2353_v5 = vadd.f32 %v2352_v53, %v2264_v6  ;;  %v2177_v19 = vadd.f32 %v2176_v14, %v2088_v11 }
 0x382   : > { %v2425_v50 = vmax.f32 %v2177_v19, 0.0  ;;  %v2424_v61 = vmax.f32 %v2353_v5, 0.0 }
 0x384   : > { %v5029_v23 = vpack.c.bf16 %v2425_v50, %v2423_v56 }
 0x385   : > { %v2265_v10 = vpop.f32.mrf.mxu2  ;;  %v2090_v13 = vpop.f32.mrf.mxu0 }
 0x386   : > { %v2266_v12 = vadd.f32 %v2265_v10, %v4914_v17  ;;  %v2354_v20 = vpop.f32.mrf.mxu3  ;;  %v2091_v27 = vadd.f32 %v2090_v13, %v4905_v1  ;;  %v2179_v60 = vpop.f32.mrf.mxu1 }
 0x388   : > { %v2355_v9 = vadd.f32 %v2354_v20, %v2266_v12  ;;  %v2180_v2 = vadd.f32 %v2179_v60, %v2091_v27  ;;  %2699 = vmatmul.bf16.gmra.mxu0 %v4945_v3 }
 0x389   : > { %2788 = vmatmul.bf16.gmra.mxu1 %v4953_v42 }
 0x38a   : > { %v2426_v24 = vmax.f32 %v2355_v9, 0.0  ;;  %2877 = vmatmul.bf16.gmra.mxu2 %v4945_v3  ;;  %v2427_v41 = vmax.f32 %v2180_v2, 0.0 }
 0x38b   : > { %2966 = vmatmul.bf16.gmra.mxu3 %v4953_v42 }
 0x38c   : > { %v5037_v21 = vpack.c.bf16 %v2426_v24, %v2424_v61 }
 0x38d   : > { %v2268_v31 = vpop.f32.mrf.mxu2  ;;  %v2092_v7 = vpop.f32.mrf.mxu0 }
 0x38e   : > { %v2269_v33 = vadd.f32 %v2268_v31, %v4914_v17  ;;  %v2357_v25 = vpop.f32.mrf.mxu3  ;;  %v2093_v28 = vadd.f32 %v2092_v7, %v4905_v1  ;;  %v2181_v15 = vpop.f32.mrf.mxu1 }
 0x390   : > { %v2358_v38 = vadd.f32 %v2357_v25, %v2269_v33  ;;  %v2182_v29 = vadd.f32 %v2181_v15, %v2093_v28 }
 0x392   : > { %v2429_v16 = vmax.f32 %v2182_v29, 0.0  ;;  %v2428_v43 = vmax.f32 %v2358_v38, 0.0 }
 0x394   : > { %v5041_v47 = vpack.c.bf16 %v2429_v16, %v2427_v41 }
 0x395   : > { %v2270_v44 = vpop.f32.mrf.mxu2  ;;  %v2095_v26 = vpop.f32.mrf.mxu0 }
 0x396   : > { %v2271_v3 = vadd.f32 %v2270_v44, %v4914_v17  ;;  %v2359_v42 = vpop.f32.mrf.mxu3  ;;  %v2096_v0 = vadd.f32 %v2095_v26, %v4905_v1  ;;  %v2184_v52 = vpop.f32.mrf.mxu1 }
 0x398   : > { %v2360_v54 = vadd.f32 %v2359_v42, %v2271_v3  ;;  %v2185_v58 = vadd.f32 %v2184_v52, %v2096_v0  ;;  %2704 = vmatmul.bf16.gmra.mxu0 %v4957_v8 }
 0x399   : > { %2793 = vmatmul.bf16.gmra.mxu1 %v4965_v48 }
 0x39a   : > { %v2430_v63 = vmax.f32 %v2360_v54, 0.0  ;;  %2882 = vmatmul.bf16.gmra.mxu2 %v4957_v8  ;;  %v2431_v53 = vmax.f32 %v2185_v58, 0.0 }
 0x39b   : > { %2971 = vmatmul.bf16.gmra.mxu3 %v4965_v48 }
 0x39c   : > { %v5049_v32 = vpack.c.bf16 %v2430_v63, %v2428_v43 }
 0x39d   : > { %v2273_v30 = vpop.f32.mrf.mxu2  ;;  %v2097_v35 = vpop.f32.mrf.mxu0 }
 0x39e   : > { %v2274_v59 = vadd.f32 %v2273_v30, %v4914_v17  ;;  %v2362_v62 = vpop.f32.mrf.mxu3  ;;  %v2098_v46 = vadd.f32 %v2097_v35, %v4905_v1  ;;  %v2186_v34 = vpop.f32.mrf.mxu1 }
 0x3a0   : > { %v2363_v4 = vadd.f32 %v2362_v62, %v2274_v59  ;;  %v2187_v6 = vadd.f32 %v2186_v34, %v2098_v46 }
 0x3a2   : > { %v2433_v40 = vmax.f32 %v2187_v6, 0.0  ;;  %v2432_v12 = vmax.f32 %v2363_v4, 0.0 }
 0x3a4   : > { %v5053_v14 = vpack.c.bf16 %v2433_v40, %v2431_v53 }
 0x3a5   : > { %v2275_v11 = vpop.f32.mrf.mxu2  ;;  %v2100_v5 = vpop.f32.mrf.mxu0 }
 0x3a6   : > { %v2276_v8 = vadd.f32 %v2275_v11, %v4914_v17  ;;  %v2364_v48 = vpop.f32.mrf.mxu3  ;;  %v2101_v19 = vadd.f32 %v2100_v5, %v4905_v1  ;;  %v2189_v56 = vpop.f32.mrf.mxu1 }
 0x3a8   : > { %v2365_v50 = vadd.f32 %v2364_v48, %v2276_v8  ;;  %v2190_v10 = vadd.f32 %v2189_v56, %v2101_v19  ;;  %2709 = vmatmul.bf16.gmra.mxu0 %v4969_v45 }
 0x3a9   : > { %2798 = vmatmul.bf16.gmra.mxu1 %v4977_v57 }
 0x3aa   : > { %v2434_v20 = vmax.f32 %v2365_v50, 0.0  ;;  %2887 = vmatmul.bf16.gmra.mxu2 %v4969_v45  ;;  %v2435_v25 = vmax.f32 %v2190_v10, 0.0 }
 0x3ab   : > { %2976 = vmatmul.bf16.gmra.mxu3 %v4977_v57 }
 0x3ac   : > { %v5061_v13 = vpack.c.bf16 %v2434_v20, %v2432_v12 }
 0x3ad   : > { %v2278_v27 = vpop.f32.mrf.mxu2  ;;  %v2102_v2 = vpop.f32.mrf.mxu0 }
 0x3ae   : > { %v2279_v60 = vadd.f32 %v2278_v27, %v4914_v17  ;;  %v2367_v9 = vpop.f32.mrf.mxu3  ;;  %v2103_v61 = vadd.f32 %v2102_v2, %v4905_v1  ;;  %v2191_v24 = vpop.f32.mrf.mxu1 }
 0x3b0   : > { %v2368_v31 = vadd.f32 %v2367_v9, %v2279_v60  ;;  %v2192_v33 = vadd.f32 %v2191_v24, %v2103_v61 }
 0x3b2   : > { %v2437_v7 = vmax.f32 %v2192_v33, 0.0  ;;  %v2436_v3 = vmax.f32 %v2368_v31, 0.0 }
 0x3b4   : > { %v5065_v15 = vpack.c.bf16 %v2437_v7, %v2435_v25 }
 0x3b5   : > { %v2280_v28 = vpop.f32.mrf.mxu2  ;;  %v2105_v38 = vpop.f32.mrf.mxu0 }
 0x3b6   : > { %v2281_v45 = vadd.f32 %v2280_v28, %v4914_v17  ;;  %v2369_v57 = vpop.f32.mrf.mxu3  ;;  %v2106_v29 = vadd.f32 %v2105_v38, %v4905_v1  ;;  %v2194_v41 = vpop.f32.mrf.mxu1 }
 0x3b8   : > { %v2370_v16 = vadd.f32 %v2369_v57, %v2281_v45  ;;  %v2195_v44 = vadd.f32 %v2194_v41, %v2106_v29  ;;  %2714 = vmatmul.bf16.gmra.mxu0 %v4981_v22 }
 0x3b9   : > { %2803 = vmatmul.bf16.gmra.mxu1 %v4989_v39 }
 0x3ba   : > { %v2438_v42 = vmax.f32 %v2370_v16, 0.0  ;;  %2892 = vmatmul.bf16.gmra.mxu2 %v4981_v22  ;;  %v2439_v62 = vmax.f32 %v2195_v44, 0.0 }
 0x3bb   : > { %2981 = vmatmul.bf16.gmra.mxu3 %v4989_v39 }
 0x3bc   : > { %v5073_v26 = vpack.c.bf16 %v2438_v42, %v2436_v3 }
 0x3bd   : > { %v2283_v0 = vpop.f32.mrf.mxu2  ;;  %v2107_v58 = vpop.f32.mrf.mxu0 }
 0x3be   : > { %v2284_v52 = vadd.f32 %v2283_v0, %v4914_v17  ;;  %v2372_v54 = vpop.f32.mrf.mxu3  ;;  %v2108_v43 = vadd.f32 %v2107_v58, %v4905_v1  ;;  %v2196_v63 = vpop.f32.mrf.mxu1 }
 0x3c0   : > { %v2373_v30 = vadd.f32 %v2372_v54, %v2284_v52  ;;  %v2197_v59 = vadd.f32 %v2196_v63, %v2108_v43  ;;  %v2515_v52 = vld [vmem:[%s5319_s8] sm:$0x3] }
 0x3c1   : > { %v5104_v43 = vperm.slane %v2515_v52, 0 }
 0x3c2   : > { %v2441_v35 = vmax.f32 %v2197_v59, 0.0  ;;  %v2440_v8 = vmax.f32 %v2373_v30, 0.0 }
 0x3c4   : > { %v5077_v34 = vpack.c.bf16 %v2441_v35, %v2439_v62 }
 0x3c5   : > { %v2285_v46 = vpop.f32.mrf.mxu2  ;;  %v2110_v4 = vpop.f32.mrf.mxu0 }
 0x3c6   : > { %v2286_v22 = vadd.f32 %v2285_v46, %v4914_v17  ;;  %v2374_v39 = vpop.f32.mrf.mxu3  ;;  %v2111_v6 = vadd.f32 %v2110_v4, %v4905_v1  ;;  %v2199_v53 = vpop.f32.mrf.mxu1 }
 0x3c8   : > { %v2375_v40 = vadd.f32 %v2374_v39, %v2286_v22  ;;  %v2200_v11 = vadd.f32 %v2199_v53, %v2111_v6  ;;  %2719 = vmatmul.bf16.gmra.mxu0 %v4993_v51  ;;  %v5113_v6 = vperm.slane %v2515_v52, 1 }
 0x3c9   : > { %2808 = vmatmul.bf16.gmra.mxu1 %v5001_v49 }
 0x3ca   : > { %v2442_v48 = vmax.f32 %v2375_v40, 0.0  ;;  %2897 = vmatmul.bf16.gmra.mxu2 %v4993_v51  ;;  %v2443_v9 = vmax.f32 %v2200_v11, 0.0 }
 0x3cb   : > { %2986 = vmatmul.bf16.gmra.mxu3 %v5001_v49 }
 0x3cc   : > { %v5085_v5 = vpack.c.bf16 %v2442_v48, %v2440_v8 }
 0x3cd   : > { %v2288_v19 = vpop.f32.mrf.mxu2  ;;  %v2112_v10 = vpop.f32.mrf.mxu0 }
 0x3ce   : > { %v2289_v56 = vadd.f32 %v2288_v19, %v4914_v17  ;;  %v2377_v50 = vpop.f32.mrf.mxu3  ;;  %v2113_v12 = vadd.f32 %v2112_v10, %v4905_v1  ;;  %v2201_v20 = vpop.f32.mrf.mxu1 }
 0x3d0   : > { %v2378_v27 = vadd.f32 %v2377_v50, %v2289_v56  ;;  %v2202_v60 = vadd.f32 %v2201_v20, %v2113_v12 }
 0x3d2   : > { %v2445_v2 = vmax.f32 %v2202_v60, 0.0  ;;  %v2444_v45 = vmax.f32 %v2378_v27, 0.0 }
 0x3d4   : > { %v5089_v24 = vpack.c.bf16 %v2445_v2, %v2443_v9 }
 0x3d5   : > { %v2290_v61 = vpop.f32.mrf.mxu2  ;;  %v2115_v31 = vpop.f32.mrf.mxu0 }
 0x3d6   : > { %v2291_v51 = vadd.f32 %v2290_v61, %v4914_v17  ;;  %v2379_v49 = vpop.f32.mrf.mxu3  ;;  %v2116_v33 = vadd.f32 %v2115_v31, %v4905_v1  ;;  %v2204_v25 = vpop.f32.mrf.mxu1 }
 0x3d8   : > { %v2380_v7 = vadd.f32 %v2379_v49, %v2291_v51  ;;  %v2205_v28 = vadd.f32 %v2204_v25, %v2116_v33  ;;  %2724 = vmatmul.bf16.gmra.mxu0 %v5005_v18 }
 0x3d9   : > { %2813 = vmatmul.bf16.gmra.mxu1 %v5013_v37 }
 0x3da   : > { %v2446_v57 = vmax.f32 %v2380_v7, 0.0  ;;  %2902 = vmatmul.bf16.gmra.mxu2 %v5005_v18  ;;  %v2447_v58 = vmax.f32 %v2205_v28, 0.0 }
 0x3db   : > { %2991 = vmatmul.bf16.gmra.mxu3 %v5013_v37 }
 0x3dc   : > { %v5097_v38 = vpack.c.bf16 %v2446_v57, %v2444_v45 }
 0x3dd   : > { %v2293_v29 = vpop.f32.mrf.mxu2  ;;  %v2117_v44 = vpop.f32.mrf.mxu0 }
 0x3de   : > { %v2294_v41 = vadd.f32 %v2293_v29, %v4914_v17  ;;  %v2382_v16 = vpop.f32.mrf.mxu3  ;;  %v2118_v3 = vadd.f32 %v2117_v44, %v4905_v1  ;;  %v2206_v42 = vpop.f32.mrf.mxu1 }
 0x3e0   : > { %v2383_v0 = vadd.f32 %v2382_v16, %v2294_v41  ;;  %v2207_v54 = vadd.f32 %v2206_v42, %v2118_v3 }
 0x3e2   : > { %v2449_v18 = vmax.f32 %v2207_v54, 0.0  ;;  %v2448_v39 = vmax.f32 %v2383_v0, 0.0 }
 0x3e4   : > { %v5106_v63 = vpack.c.bf16 %v2449_v18, %v2447_v58 }
 0x3e5   : > { %v2295_v37 = vpop.f32.mrf.mxu2  ;;  %v2690_v62 = vpop.f32.mrf.mxu0 }
 0x3e6   : > { %v2296_v30 = vadd.f32 %v2295_v37, %v4914_v17  ;;  %v2384_v59 = vpop.f32.mrf.mxu3  ;;  %v2691_v1 = vadd.f32 %v2690_v62, %v5104_v43  ;;  %v2779_v35 = vpop.f32.mrf.mxu1 }
 0x3e8   : > { %v2385_v46 = vadd.f32 %v2384_v59, %v2296_v30  ;;  %v2780_v22 = vadd.f32 %v2779_v35, %v2691_v1  ;;  %2729 = vmatmul.bf16.gmra.mxu0 %v5017_v36 }
 0x3e9   : > { %2818 = vmatmul.bf16.gmra.mxu1 %v5025_v55 }
 0x3ea   : > { %v2450_v4 = vmax.f32 %v2385_v46, 0.0  ;;  %2907 = vmatmul.bf16.gmra.mxu2 %v5017_v36  ;;  %3037 = vst [vmem:[%s5117_s22] sm:$0xff] %v2780_v22 }
 0x3eb   : > { %2996 = vmatmul.bf16.gmra.mxu3 %v5025_v55 }
 0x3ec   : > { %v5121_v17 = vpack.c.bf16 %v2450_v4, %v2448_v39 }
 0x3ed   : > { %v2868_v53 = vpop.f32.mrf.mxu2  ;;  %v2692_v8 = vpop.f32.mrf.mxu0 }
 0x3ee   : > { %v2869_v40 = vadd.f32 %v2868_v53, %v5113_v6  ;;  %v2957_v11 = vpop.f32.mrf.mxu3  ;;  %v2693_v36 = vadd.f32 %v2692_v8, %v5104_v43  ;;  %v2781_v48 = vpop.f32.mrf.mxu1 }
 0x3f0   : > { %v2958_v19 = vadd.f32 %v2957_v11, %v2869_v40  ;;  %v2782_v56 = vadd.f32 %v2781_v48, %v2693_v36 }
 0x3f2   : > { %3038 = vst [vmem:[%s5117_s22 + $0x8] sm:$0xff] %v2958_v19 }
 0x3f3   : > { %3039 = vst [vmem:[%s5117_s22 + $0x10] sm:$0xff] %v2782_v56 }
 0x3f5   : > { %v2870_v50 = vpop.f32.mrf.mxu2  ;;  %v2695_v12 = vpop.f32.mrf.mxu0 }
 0x3f6   : > { %v2871_v10 = vadd.f32 %v2870_v50, %v5113_v6  ;;  %v2959_v55 = vpop.f32.mrf.mxu3  ;;  %v2696_v20 = vadd.f32 %v2695_v12, %v5104_v43  ;;  %v2784_v27 = vpop.f32.mrf.mxu1 }
 0x3f8   : > { %v2960_v60 = vadd.f32 %v2959_v55, %v2871_v10  ;;  %v2785_v9 = vadd.f32 %v2784_v27, %v2696_v20  ;;  %2734 = vmatmul.bf16.gmra.mxu0 %v5029_v23 }
 0x3f9   : > { %2823 = vmatmul.bf16.gmra.mxu1 %v5037_v21 }
 0x3fa   : > { %3040 = vst [vmem:[%s5117_s22 + $0x18] sm:$0xff] %v2960_v60  ;;  %2912 = vmatmul.bf16.gmra.mxu2 %v5029_v23 }
 0x3fb   : > { %3041 = vst [vmem:[%s5117_s22 + $0x20] sm:$0xff] %v2785_v9  ;;  %3001 = vmatmul.bf16.gmra.mxu3 %v5037_v21 }
 0x3fd   : > { %v2873_v2 = vpop.f32.mrf.mxu2  ;;  %v2697_v49 = vpop.f32.mrf.mxu0 }
 0x3fe   : > { %v2874_v61 = vadd.f32 %v2873_v2, %v5113_v6  ;;  %v2962_v51 = vpop.f32.mrf.mxu3  ;;  %v2698_v31 = vadd.f32 %v2697_v49, %v5104_v43  ;;  %v2786_v33 = vpop.f32.mrf.mxu1 }
 0x400   : > { %v2963_v25 = vadd.f32 %v2962_v51, %v2874_v61  ;;  %v2787_v7 = vadd.f32 %v2786_v33, %v2698_v31 }
 0x402   : > { %3042 = vst [vmem:[%s5117_s22 + $0x28] sm:$0xff] %v2963_v25 }
 0x403   : > { %3043 = vst [vmem:[%s5117_s22 + $0x30] sm:$0xff] %v2787_v7 }
 0x405   : > { %v2875_v28 = vpop.f32.mrf.mxu2  ;;  %v2700_v57 = vpop.f32.mrf.mxu0 }
 0x406   : > { %v2876_v23 = vadd.f32 %v2875_v28, %v5113_v6  ;;  %v2964_v45 = vpop.f32.mrf.mxu3  ;;  %v2701_v21 = vadd.f32 %v2700_v57, %v5104_v43  ;;  %v2789_v29 = vpop.f32.mrf.mxu1 }
 0x408   : > { %v2965_v41 = vadd.f32 %v2964_v45, %v2876_v23  ;;  %v2790_v16 = vadd.f32 %v2789_v29, %v2701_v21  ;;  %2739 = vmatmul.bf16.gmra.mxu0 %v5041_v47 }
 0x409   : > { %2828 = vmatmul.bf16.gmra.mxu1 %v5049_v32 }
 0x40a   : > { %3044 = vst [vmem:[%s5117_s22 + $0x38] sm:$0xff] %v2965_v41  ;;  %2917 = vmatmul.bf16.gmra.mxu2 %v5041_v47 }
 0x40b   : > { %3045 = vst [vmem:[%s5117_s22 + $0x40] sm:$0xff] %v2790_v16  ;;  %3006 = vmatmul.bf16.gmra.mxu3 %v5049_v32 }
 0x40d   : > { %v2878_v44 = vpop.f32.mrf.mxu2  ;;  %v2702_v0 = vpop.f32.mrf.mxu0 }
 0x40e   : > { %v2879_v3 = vadd.f32 %v2878_v44, %v5113_v6  ;;  %v2967_v42 = vpop.f32.mrf.mxu3  ;;  %v2703_v52 = vadd.f32 %v2702_v0, %v5104_v43  ;;  %v2791_v54 = vpop.f32.mrf.mxu1 }
 0x410   : > { %v2968_v58 = vadd.f32 %v2967_v42, %v2879_v3  ;;  %v2792_v18 = vadd.f32 %v2791_v54, %v2703_v52 }
 0x412   : > { %3046 = vst [vmem:[%s5117_s22 + $0x48] sm:$0xff] %v2968_v58 }
 0x413   : > { %3047 = vst [vmem:[%s5117_s22 + $0x50] sm:$0xff] %v2792_v18 }
 0x415   : > { %v2880_v37 = vpop.f32.mrf.mxu2  ;;  %v2705_v59 = vpop.f32.mrf.mxu0 }
 0x416   : > { %v2881_v47 = vadd.f32 %v2880_v37, %v5113_v6  ;;  %v2969_v30 = vpop.f32.mrf.mxu3  ;;  %v2706_v32 = vadd.f32 %v2705_v59, %v5104_v43  ;;  %v2794_v62 = vpop.f32.mrf.mxu1 }
 0x418   : > { %v2970_v1 = vadd.f32 %v2969_v30, %v2881_v47  ;;  %v2795_v35 = vadd.f32 %v2794_v62, %v2706_v32  ;;  %2744 = vmatmul.bf16.gmra.mxu0 %v5053_v14 }
 0x419   : > { %2833 = vmatmul.bf16.gmra.mxu1 %v5061_v13 }
 0x41a   : > { %3048 = vst [vmem:[%s5117_s22 + $0x58] sm:$0xff] %v2970_v1  ;;  %2922 = vmatmul.bf16.gmra.mxu2 %v5053_v14 }
 0x41b   : > { %3049 = vst [vmem:[%s5117_s22 + $0x60] sm:$0xff] %v2795_v35  ;;  %3011 = vmatmul.bf16.gmra.mxu3 %v5061_v13 }
 0x41d   : > { %v2883_v46 = vpop.f32.mrf.mxu2  ;;  %v2707_v4 = vpop.f32.mrf.mxu0 }
 0x41e   : > { %v2884_v22 = vadd.f32 %v2883_v46, %v5113_v6  ;;  %v2972_v39 = vpop.f32.mrf.mxu3  ;;  %v2708_v53 = vadd.f32 %v2707_v4, %v5104_v43  ;;  %v2796_v40 = vpop.f32.mrf.mxu1 }
 0x420   : > { %v2973_v11 = vadd.f32 %v2972_v39, %v2884_v22  ;;  %v2797_v8 = vadd.f32 %v2796_v40, %v2708_v53 }
 0x422   : > { %3050 = vst [vmem:[%s5117_s22 + $0x68] sm:$0xff] %v2973_v11 }
 0x423   : > { %3051 = vst [vmem:[%s5117_s22 + $0x70] sm:$0xff] %v2797_v8 }
 0x425   : > { %v2885_v36 = vpop.f32.mrf.mxu2  ;;  %v2710_v19 = vpop.f32.mrf.mxu0 }
 0x426   : > { %v2886_v14 = vadd.f32 %v2885_v36, %v5113_v6  ;;  %v2974_v48 = vpop.f32.mrf.mxu3  ;;  %v2711_v13 = vadd.f32 %v2710_v19, %v5104_v43  ;;  %v2799_v56 = vpop.f32.mrf.mxu1 }
 0x428   : > { %v2975_v50 = vadd.f32 %v2974_v48, %v2886_v14  ;;  %v2800_v10 = vadd.f32 %v2799_v56, %v2711_v13  ;;  %2749 = vmatmul.bf16.gmra.mxu0 %v5065_v15 }
 0x429   : > { %2838 = vmatmul.bf16.gmra.mxu1 %v5073_v26 }
 0x42a   : > { %3052 = vst [vmem:[%s5117_s22 + $0x78] sm:$0xff] %v2975_v50  ;;  %2927 = vmatmul.bf16.gmra.mxu2 %v5065_v15 }
 0x42b   : > { %3053 = vst [vmem:[%s5117_s22 + $0x80] sm:$0xff] %v2800_v10  ;;  %3016 = vmatmul.bf16.gmra.mxu3 %v5073_v26 }
 0x42d   : > { %v2888_v55 = vpop.f32.mrf.mxu2  ;;  %v2712_v27 = vpop.f32.mrf.mxu0 }
 0x42e   : > { %v2889_v12 = vadd.f32 %v2888_v55, %v5113_v6  ;;  %v2977_v20 = vpop.f32.mrf.mxu3  ;;  %v2713_v60 = vadd.f32 %v2712_v27, %v5104_v43  ;;  %v2801_v9 = vpop.f32.mrf.mxu1 }
 0x430   : > { %v2978_v2 = vadd.f32 %v2977_v20, %v2889_v12  ;;  %v2802_v61 = vadd.f32 %v2801_v9, %v2713_v60 }
 0x432   : > { %3054 = vst [vmem:[%s5117_s22 + $0x88] sm:$0xff] %v2978_v2 }
 0x433   : > { %3055 = vst [vmem:[%s5117_s22 + $0x90] sm:$0xff] %v2802_v61 }
 0x435   : > { %v2890_v51 = vpop.f32.mrf.mxu2  ;;  %v2715_v31 = vpop.f32.mrf.mxu0 }
 0x436   : > { %v2891_v15 = vadd.f32 %v2890_v51, %v5113_v6  ;;  %v2979_v49 = vpop.f32.mrf.mxu3  ;;  %v2716_v26 = vadd.f32 %v2715_v31, %v5104_v43  ;;  %v2804_v33 = vpop.f32.mrf.mxu1 }
 0x438   : > { %v2980_v25 = vadd.f32 %v2979_v49, %v2891_v15  ;;  %v2805_v7 = vadd.f32 %v2804_v33, %v2716_v26  ;;  %2754 = vmatmul.bf16.gmra.mxu0 %v5077_v34 }
 0x439   : > { %2843 = vmatmul.bf16.gmra.mxu1 %v5085_v5 }
 0x43a   : > { %3056 = vst [vmem:[%s5117_s22 + $0x98] sm:$0xff] %v2980_v25  ;;  %2932 = vmatmul.bf16.gmra.mxu2 %v5077_v34 }
 0x43b   : > { %3057 = vst [vmem:[%s5117_s22 + $0xa0] sm:$0xff] %v2805_v7  ;;  %3021 = vmatmul.bf16.gmra.mxu3 %v5085_v5 }
 0x43d   : > { %v2893_v28 = vpop.f32.mrf.mxu2  ;;  %v2717_v57 = vpop.f32.mrf.mxu0 }
 0x43e   : > { %v2894_v23 = vadd.f32 %v2893_v28, %v5113_v6  ;;  %v2982_v45 = vpop.f32.mrf.mxu3  ;;  %v2718_v21 = vadd.f32 %v2717_v57, %v5104_v43  ;;  %v2806_v29 = vpop.f32.mrf.mxu1 }
 0x440   : > { %v2983_v41 = vadd.f32 %v2982_v45, %v2894_v23  ;;  %v2807_v16 = vadd.f32 %v2806_v29, %v2718_v21 }
 0x442   : > { %3058 = vst [vmem:[%s5117_s22 + $0xa8] sm:$0xff] %v2983_v41 }
 0x443   : > { %3059 = vst [vmem:[%s5117_s22 + $0xb0] sm:$0xff] %v2807_v16 }
 0x445   : > { %v2895_v44 = vpop.f32.mrf.mxu2  ;;  %v2720_v42 = vpop.f32.mrf.mxu0 }
 0x446   : > { %v2896_v34 = vadd.f32 %v2895_v44, %v5113_v6  ;;  %v2984_v3 = vpop.f32.mrf.mxu3  ;;  %v2721_v5 = vadd.f32 %v2720_v42, %v5104_v43  ;;  %v2809_v0 = vpop.f32.mrf.mxu1 }
 0x448   : > { %v2985_v52 = vadd.f32 %v2984_v3, %v2896_v34  ;;  %v2810_v54 = vadd.f32 %v2809_v0, %v2721_v5  ;;  %2759 = vmatmul.bf16.gmra.mxu0 %v5089_v24 }
 0x449   : > { %2848 = vmatmul.bf16.gmra.mxu1 %v5097_v38 }
 0x44a   : > { %3060 = vst [vmem:[%s5117_s22 + $0xb8] sm:$0xff] %v2985_v52  ;;  %2937 = vmatmul.bf16.gmra.mxu2 %v5089_v24 }
 0x44b   : > { %3061 = vst [vmem:[%s5117_s22 + $0xc0] sm:$0xff] %v2810_v54  ;;  %3026 = vmatmul.bf16.gmra.mxu3 %v5097_v38 }
 0x44d   : > { %v2898_v58 = vpop.f32.mrf.mxu2  ;;  %v2722_v47 = vpop.f32.mrf.mxu0 }
 0x44e   : > { %v2899_v18 = vadd.f32 %v2898_v58, %v5113_v6  ;;  %v2987_v37 = vpop.f32.mrf.mxu3  ;;  %v2723_v30 = vadd.f32 %v2722_v47, %v5104_v43  ;;  %v2811_v59 = vpop.f32.mrf.mxu1 }
 0x450   : > { %v2988_v32 = vadd.f32 %v2987_v37, %v2899_v18  ;;  %v2812_v62 = vadd.f32 %v2811_v59, %v2723_v30 }
 0x452   : > { %3062 = vst [vmem:[%s5117_s22 + $0xc8] sm:$0xff] %v2988_v32 }
 0x453   : > { %3063 = vst [vmem:[%s5117_s22 + $0xd0] sm:$0xff] %v2812_v62 }
 0x455   : > { %v2900_v1 = vpop.f32.mrf.mxu2  ;;  %v2725_v46 = vpop.f32.mrf.mxu0 }
 0x456   : > { %v2901_v24 = vadd.f32 %v2900_v1, %v5113_v6  ;;  %v2989_v35 = vpop.f32.mrf.mxu3  ;;  %v2726_v38 = vadd.f32 %v2725_v46, %v5104_v43  ;;  %v2814_v22 = vpop.f32.mrf.mxu1 }
 0x458   : > { %v2990_v39 = vadd.f32 %v2989_v35, %v2901_v24  ;;  %v2815_v4 = vadd.f32 %v2814_v22, %v2726_v38  ;;  %2764 = vmatmul.bf16.gmra.mxu0 %v5106_v63 }
 0x459   : > { %2853 = vmatmul.bf16.gmra.mxu1 %v5121_v17 }
 0x45a   : > { %3064 = vst [vmem:[%s5117_s22 + $0xd8] sm:$0xff] %v2990_v39  ;;  %2942 = vmatmul.bf16.gmra.mxu2 %v5106_v63 }
 0x45b   : > { %3065 = vst [vmem:[%s5117_s22 + $0xe0] sm:$0xff] %v2815_v4  ;;  %3031 = vmatmul.bf16.gmra.mxu3 %v5121_v17 }
 0x45d   : > { %v2903_v53 = vpop.f32.mrf.mxu2  ;;  %v2727_v8 = vpop.f32.mrf.mxu0 }
 0x45e   : > { %v2904_v40 = vadd.f32 %v2903_v53, %v5113_v6  ;;  %v2992_v11 = vpop.f32.mrf.mxu3  ;;  %v2728_v36 = vadd.f32 %v2727_v8, %v5104_v43  ;;  %v2816_v14 = vpop.f32.mrf.mxu1 }
 0x460   : > { %v2993_v48 = vadd.f32 %v2992_v11, %v2904_v40  ;;  %v2817_v19 = vadd.f32 %v2816_v14, %v2728_v36 }
 0x462   : > { %3066 = vst [vmem:[%s5117_s22 + $0xe8] sm:$0xff] %v2993_v48 }
 0x463   : > { %3067 = vst [vmem:[%s5117_s22 + $0xf0] sm:$0xff] %v2817_v19 }
 0x465   : > { %v2905_v13 = vpop.f32.mrf.mxu2  ;;  %v2730_v17 = vpop.f32.mrf.mxu0 }
 0x466   : > { %v2906_v63 = vadd.f32 %v2905_v13, %v5113_v6  ;;  %v2994_v56 = vpop.f32.mrf.mxu3  ;;  %v2731_v50 = vadd.f32 %v2730_v17, %v5104_v43  ;;  %v2819_v10 = vpop.f32.mrf.mxu1 }
 0x468   : > { %v2995_v55 = vadd.f32 %v2994_v56, %v2906_v63  ;;  %v2820_v12 = vadd.f32 %v2819_v10, %v2731_v50 }
 0x46a   : > { %3068 = vst [vmem:[%s5117_s22 + $0xf8] sm:$0xff] %v2995_v55 }
 0x46b   : > { %3069 = vst [vmem:[%s5117_s22 + $0x100] sm:$0xff] %v2820_v12 }
 0x46d   : > { %v2908_v20 = vpop.f32.mrf.mxu2  ;;  %v2732_v9 = vpop.f32.mrf.mxu0 }
 0x46e   : > { %v2909_v27 = vadd.f32 %v2908_v20, %v5113_v6  ;;  %v2997_v60 = vpop.f32.mrf.mxu3  ;;  %v2733_v2 = vadd.f32 %v2732_v9, %v5104_v43  ;;  %v2821_v61 = vpop.f32.mrf.mxu1 }
 0x470   : > { %v2998_v51 = vadd.f32 %v2997_v60, %v2909_v27  ;;  %v2822_v15 = vadd.f32 %v2821_v61, %v2733_v2 }
 0x472   : > { %3070 = vst [vmem:[%s5117_s22 + $0x108] sm:$0xff] %v2998_v51 }
 0x473   : > { %3071 = vst [vmem:[%s5117_s22 + $0x110] sm:$0xff] %v2822_v15 }
 0x475   : > { %v2910_v49 = vpop.f32.mrf.mxu2  ;;  %v2735_v33 = vpop.f32.mrf.mxu0 }
 0x476   : > { %v2911_v31 = vadd.f32 %v2910_v49, %v5113_v6  ;;  %v2999_v26 = vpop.f32.mrf.mxu3  ;;  %v2736_v25 = vadd.f32 %v2735_v33, %v5104_v43  ;;  %v2824_v7 = vpop.f32.mrf.mxu1 }
 0x478   : > { %v3000_v28 = vadd.f32 %v2999_v26, %v2911_v31  ;;  %v2825_v23 = vadd.f32 %v2824_v7, %v2736_v25 }
 0x47a   : > { %3072 = vst [vmem:[%s5117_s22 + $0x118] sm:$0xff] %v3000_v28 }
 0x47b   : > { %3073 = vst [vmem:[%s5117_s22 + $0x120] sm:$0xff] %v2825_v23 }
 0x47d   : > { %v2913_v45 = vpop.f32.mrf.mxu2  ;;  %v2737_v29 = vpop.f32.mrf.mxu0 }
 0x47e   : > { %v2914_v57 = vadd.f32 %v2913_v45, %v5113_v6  ;;  %v3002_v21 = vpop.f32.mrf.mxu3  ;;  %v2738_v41 = vadd.f32 %v2737_v29, %v5104_v43  ;;  %v2826_v16 = vpop.f32.mrf.mxu1 }
 0x480   : > { %v3003_v44 = vadd.f32 %v3002_v21, %v2914_v57  ;;  %v2827_v34 = vadd.f32 %v2826_v16, %v2738_v41 }
 0x482   : > { %3074 = vst [vmem:[%s5117_s22 + $0x128] sm:$0xff] %v3003_v44 }
 0x483   : > { %3075 = vst [vmem:[%s5117_s22 + $0x130] sm:$0xff] %v2827_v34 }
 0x485   : > { %v2915_v3 = vpop.f32.mrf.mxu2  ;;  %v2740_v0 = vpop.f32.mrf.mxu0 }
 0x486   : > { %v2916_v42 = vadd.f32 %v2915_v3, %v5113_v6  ;;  %v3004_v5 = vpop.f32.mrf.mxu3  ;;  %v2741_v52 = vadd.f32 %v2740_v0, %v5104_v43  ;;  %v2829_v54 = vpop.f32.mrf.mxu1 }
 0x488   : > { %v3005_v58 = vadd.f32 %v3004_v5, %v2916_v42  ;;  %v2830_v18 = vadd.f32 %v2829_v54, %v2741_v52 }
 0x48a   : > { %3076 = vst [vmem:[%s5117_s22 + $0x138] sm:$0xff] %v3005_v58 }
 0x48b   : > { %3077 = vst [vmem:[%s5117_s22 + $0x140] sm:$0xff] %v2830_v18 }
 0x48d   : > { %v2918_v37 = vpop.f32.mrf.mxu2  ;;  %v2742_v59 = vpop.f32.mrf.mxu0 }
 0x48e   : > { %v2919_v47 = vadd.f32 %v2918_v37, %v5113_v6  ;;  %v3007_v30 = vpop.f32.mrf.mxu3  ;;  %v2743_v32 = vadd.f32 %v2742_v59, %v5104_v43  ;;  %v2831_v62 = vpop.f32.mrf.mxu1 }
 0x490   : > { %v3008_v1 = vadd.f32 %v3007_v30, %v2919_v47  ;;  %v2832_v24 = vadd.f32 %v2831_v62, %v2743_v32 }
 0x492   : > { %3078 = vst [vmem:[%s5117_s22 + $0x148] sm:$0xff] %v3008_v1 }
 0x493   : > { %3079 = vst [vmem:[%s5117_s22 + $0x150] sm:$0xff] %v2832_v24 }
 0x495   : > { %v2920_v35 = vpop.f32.mrf.mxu2  ;;  %v2745_v22 = vpop.f32.mrf.mxu0 }
 0x496   : > { %v2921_v46 = vadd.f32 %v2920_v35, %v5113_v6  ;;  %v3009_v38 = vpop.f32.mrf.mxu3  ;;  %v2746_v39 = vadd.f32 %v2745_v22, %v5104_v43  ;;  %v2834_v4 = vpop.f32.mrf.mxu1 }
 0x498   : > { %v3010_v53 = vadd.f32 %v3009_v38, %v2921_v46  ;;  %v2835_v40 = vadd.f32 %v2834_v4, %v2746_v39 }
 0x49a   : > { %3080 = vst [vmem:[%s5117_s22 + $0x158] sm:$0xff] %v3010_v53 }
 0x49b   : > { %3081 = vst [vmem:[%s5117_s22 + $0x160] sm:$0xff] %v2835_v40 }
 0x49d   : > { %v2923_v11 = vpop.f32.mrf.mxu2  ;;  %v2747_v14 = vpop.f32.mrf.mxu0 }
 0x49e   : > { %v2924_v8 = vadd.f32 %v2923_v11, %v5113_v6  ;;  %v3012_v36 = vpop.f32.mrf.mxu3  ;;  %v2748_v48 = vadd.f32 %v2747_v14, %v5104_v43  ;;  %v2836_v19 = vpop.f32.mrf.mxu1 }
 0x4a0   : > { %v3013_v13 = vadd.f32 %v3012_v36, %v2924_v8  ;;  %v2837_v63 = vadd.f32 %v2836_v19, %v2748_v48 }
 0x4a2   : > { %3082 = vst [vmem:[%s5117_s22 + $0x168] sm:$0xff] %v3013_v13 }
 0x4a3   : > { %3083 = vst [vmem:[%s5117_s22 + $0x170] sm:$0xff] %v2837_v63 }
 0x4a5   : > { %v2925_v56 = vpop.f32.mrf.mxu2  ;;  %v2750_v10 = vpop.f32.mrf.mxu0 }
 0x4a6   : > { %v2926_v17 = vadd.f32 %v2925_v56, %v5113_v6  ;;  %v3014_v50 = vpop.f32.mrf.mxu3  ;;  %v2751_v55 = vadd.f32 %v2750_v10, %v5104_v43  ;;  %v2839_v12 = vpop.f32.mrf.mxu1 }
 0x4a8   : > { %v3015_v20 = vadd.f32 %v3014_v50, %v2926_v17  ;;  %v2840_v27 = vadd.f32 %v2839_v12, %v2751_v55 }
 0x4aa   : > { %3084 = vst [vmem:[%s5117_s22 + $0x178] sm:$0xff] %v3015_v20 }
 0x4ab   : > { %3085 = vst [vmem:[%s5117_s22 + $0x180] sm:$0xff] %v2840_v27 }
 0x4ad   : > { %v2928_v60 = vpop.f32.mrf.mxu2  ;;  %v2752_v61 = vpop.f32.mrf.mxu0 }
 0x4ae   : > { %v2929_v9 = vadd.f32 %v2928_v60, %v5113_v6  ;;  %v3017_v2 = vpop.f32.mrf.mxu3  ;;  %v2753_v51 = vadd.f32 %v2752_v61, %v5104_v43  ;;  %v2841_v15 = vpop.f32.mrf.mxu1 }
 0x4b0   : > { %v3018_v49 = vadd.f32 %v3017_v2, %v2929_v9  ;;  %v2842_v31 = vadd.f32 %v2841_v15, %v2753_v51 }
 0x4b2   : > { %3086 = vst [vmem:[%s5117_s22 + $0x188] sm:$0xff] %v3018_v49 }
 0x4b3   : > { %3087 = vst [vmem:[%s5117_s22 + $0x190] sm:$0xff] %v2842_v31 }
 0x4b5   : > { %v2930_v26 = vpop.f32.mrf.mxu2  ;;  %v2755_v7 = vpop.f32.mrf.mxu0 }
 0x4b6   : > { %v2931_v33 = vadd.f32 %v2930_v26, %v5113_v6  ;;  %v3019_v25 = vpop.f32.mrf.mxu3  ;;  %v2756_v28 = vadd.f32 %v2755_v7, %v5104_v43  ;;  %v2844_v23 = vpop.f32.mrf.mxu1 }
 0x4b8   : > { %v3020_v45 = vadd.f32 %v3019_v25, %v2931_v33  ;;  %v2845_v57 = vadd.f32 %v2844_v23, %v2756_v28 }
 0x4ba   : > { %3088 = vst [vmem:[%s5117_s22 + $0x198] sm:$0xff] %v3020_v45 }
 0x4bb   : > { %3089 = vst [vmem:[%s5117_s22 + $0x1a0] sm:$0xff] %v2845_v57 }
 0x4bd   : > { %v2933_v21 = vpop.f32.mrf.mxu2  ;;  %v2757_v16 = vpop.f32.mrf.mxu0 }
 0x4be   : > { %v2934_v29 = vadd.f32 %v2933_v21, %v5113_v6  ;;  %v3022_v41 = vpop.f32.mrf.mxu3  ;;  %v2758_v44 = vadd.f32 %v2757_v16, %v5104_v43  ;;  %v2846_v34 = vpop.f32.mrf.mxu1 }
 0x4c0   : > { %v3023_v3 = vadd.f32 %v3022_v41, %v2934_v29  ;;  %v2847_v42 = vadd.f32 %v2846_v34, %v2758_v44 }
 0x4c2   : > { %3090 = vst [vmem:[%s5117_s22 + $0x1a8] sm:$0xff] %v3023_v3 }
 0x4c3   : > { %3091 = vst [vmem:[%s5117_s22 + $0x1b0] sm:$0xff] %v2847_v42 }
 0x4c5   : > { %v2935_v5 = vpop.f32.mrf.mxu2  ;;  %v2760_v54 = vpop.f32.mrf.mxu0 }
 0x4c6   : > { %v2936_v0 = vadd.f32 %v2935_v5, %v5113_v6  ;;  %v3024_v52 = vpop.f32.mrf.mxu3  ;;  %v2761_v58 = vadd.f32 %v2760_v54, %v5104_v43  ;;  %v2849_v18 = vpop.f32.mrf.mxu1 }
 0x4c8   : > { %v3025_v37 = vadd.f32 %v3024_v52, %v2936_v0  ;;  %v2850_v47 = vadd.f32 %v2849_v18, %v2761_v58 }
 0x4ca   : > { %3092 = vst [vmem:[%s5117_s22 + $0x1b8] sm:$0xff] %v3025_v37 }
 0x4cb   : > { %3093 = vst [vmem:[%s5117_s22 + $0x1c0] sm:$0xff] %v2850_v47 }
 0x4cd   : > { %v2938_v30 = vpop.f32.mrf.mxu2  ;;  %v2762_v62 = vpop.f32.mrf.mxu0 }
 0x4ce   : > { %v2939_v59 = vadd.f32 %v2938_v30, %v5113_v6  ;;  %v3027_v32 = vpop.f32.mrf.mxu3  ;;  %v2763_v1 = vadd.f32 %v2762_v62, %v5104_v43  ;;  %v2851_v24 = vpop.f32.mrf.mxu1 }
 0x4d0   : > { %v3028_v35 = vadd.f32 %v3027_v32, %v2939_v59  ;;  %v2852_v46 = vadd.f32 %v2851_v24, %v2763_v1 }
 0x4d2   : > { %3094 = vst [vmem:[%s5117_s22 + $0x1c8] sm:$0xff] %v3028_v35 }
 0x4d3   : > { %3095 = vst [vmem:[%s5117_s22 + $0x1d0] sm:$0xff] %v2852_v46 }
 0x4d5   : > { %v2940_v38 = vpop.f32.mrf.mxu2  ;;  %v2765_v4 = vpop.f32.mrf.mxu0 }
 0x4d6   : > { %v2941_v22 = vadd.f32 %v2940_v38, %v5113_v6  ;;  %v3029_v39 = vpop.f32.mrf.mxu3  ;;  %v2766_v53 = vadd.f32 %v2765_v4, %v5104_v43  ;;  %v2854_v40 = vpop.f32.mrf.mxu1 }
 0x4d8   : > { %v3030_v11 = vadd.f32 %v3029_v39, %v2941_v22  ;;  %v2855_v8 = vadd.f32 %v2854_v40, %v2766_v53 }
 0x4da   : > { %3096 = vst [vmem:[%s5117_s22 + $0x1d8] sm:$0xff] %v3030_v11 }
 0x4db   : > { %3097 = vst [vmem:[%s5117_s22 + $0x1e0] sm:$0xff] %v2855_v8 }
 0x4dd   : > { %v2943_v36 = vpop.f32.mrf.mxu2  ;;  %v2767_v19 = vpop.f32.mrf.mxu0 }
 0x4de   : > { %v2944_v14 = vadd.f32 %v2943_v36, %v5113_v6  ;;  %v3032_v48 = vpop.f32.mrf.mxu3  ;;  %v2768_v13 = vadd.f32 %v2767_v19, %v5104_v43  ;;  %v2856_v56 = vpop.f32.mrf.mxu1 }
 0x4e0   : > { %v3033_v63 = vadd.f32 %v3032_v48, %v2944_v14  ;;  %v2857_v17 = vadd.f32 %v2856_v56, %v2768_v13 }
 0x4e2   : > { %3098 = vst [vmem:[%s5117_s22 + $0x1e8] sm:$0xff] %v3033_v63 }
 0x4e3   : > { %3099 = vst [vmem:[%s5117_s22 + $0x1f0] sm:$0xff] %v2857_v17 }
 0x4e5   : > { %v2945_v50 = vpop.f32.mrf.mxu2 }
 0x4e6   : > { %v2946_v10 = vadd.f32 %v2945_v50, %v5113_v6  ;;  %v3034_v55 = vpop.f32.mrf.mxu3 }
 0x4e8   : > { %v3035_v43 = vadd.f32 %v3034_v55, %v2946_v10 }
 0x4ea   : > { %3100 = vst [vmem:[%s5117_s22 + $0x1f8] sm:$0xff] %v3035_v43 }
 0x4eb   : > { %4219 = shalt.err (!%p4216_p9)
}
 0x4ec   : > { %s4281_s24 = smov 256   ;;  %s4282_s26 = smov 16  }
 0x4ed   : > { %3931 = dma.vmem_to_hbm [thread:$0]  (%p4423_p0), %s3116_s14, 8192, %s3118_s3, %s3102_s16, %s4281_s24, %s4281_s24, %s4282_s26  }
 0x4ee PF: > { %s3132_s22 = sand.u32 1, %s4258_s30   ;;  %p5336_p10 = scmp.ge.s32.totalorder %s4270_s12, 2 }
 0x4ef   : > { %s3133_s27 = scalar_lea.sflag [#allocation4], %s3132_s22 }
 0x4f0   : > { %p3954_p11 = pnand %p5336_p10, %p4429_p6 }
 0x4f2   : > { %p3955_p12 = pneg %p3954_p11 }
 0x4f4   : > { %4253 = dma.done.wait (%p3955_p12), %s3133_s27, 8192  }
 0x4f5   : > { %4255 = vsyncadd (%p3955_p12), %s3133_s27, 4294959104  ;;  %p25_p2 = scmp.ge.s32.totalorder %s4399_s18, 4   ;;  %s5337_s30 = smov %s4262_s10 }
 0x4f6   : > { %s5338_s10 = smov %s4266_s11  ;;  %s5339_s11 = smov %s4411_s20 }
 0x4f7   : > { %s5340_s12 = smov %s4399_s18  ;;  %27 = sbr.rel (!%p25_p2) target bundleno = 13 (0xd), region = 121 }
 0x4fc   :  { %3139 = vsyncpa [#allocation3], 1 }
 0x4fd   :  { %3141 = vsyncpa [#allocation3 + $0x1], 1 }
 0x4fe   :  { %3142 = vsyncpa [#allocation6], 1 }
 0x4ff   :  { %3143 = vsyncpa [#allocation9], 1 }
 0x500   :  { %3144 = vsyncpa [#allocation12], 1 }
 0x501   :  { %3145 = vsyncpa [#allocation4], 1 }
 0x502   :  { %3147 = vsyncpa [#allocation4 + $0x1], 1 }

</bundles_post_ra>
